<compile_context>
chip_gen: v7x
topology: tpu7x:2x2x1
jax: 0.10.0
libtpu: 0.0.40
codegen_flags: <defaults>
</compile_context>

<pallas_src>
import functools

import jax
import jax.numpy as jnp
from jax.experimental import pallas as pl
from jax.experimental.pallas import tpu as pltpu

# ----------------------------- config (small synthetic scale) ----------------
FRAME = 64            # samples per analysis frame (stands in for the STFT hop)
N_MELS = 80           # num_mel_bins in Wav2Vec2BertProcessor
N_MELS_PAD = 128      # mel bins padded to a full lane tile
STRIDE = 2            # processor stride (frame stacking)
FEAT_DIM = N_MELS_PAD * STRIDE          # 256, lane-dense stacked feature dim
FEAT_VALID = N_MELS * STRIDE            # 160 valid dims inside FEAT_DIM
HIDDEN = 64           # stands in for the 1024-dim hidden size
HEADS = 4
HEAD_DIM = HIDDEN // HEADS
LAYERS = 2            # stands in for the 24 conformer layers
FFN = 4 * HIDDEN
CODEBOOK = 256        # stands in for codebook_size=2048
OUTPUT_LAYER = -1     # config.output_layer


# ----------------------------- in-kernel helpers ------------------------------
def _ln_f32(x, g, b, eps):
    mean = jnp.mean(x, axis=-1, keepdims=True)
    var = jnp.mean(jnp.square(x - mean), axis=-1, keepdims=True)
    return (x - mean) * jax.lax.rsqrt(var + eps) * g + b


# ----------------------------- Pallas kernels --------------------------------
def _processor_kernel(fr_ref, fb_ref, fbb_ref, o_ref, *, eps, frame):
    """Framing -> (synthetic) filterbank -> log -> CMVN -> stride-2 stacking.

    The input block holds the two stacked raw frames per output step in the
    lane dim (T, 2*FRAME); the output is written directly in the stacked
    layout (T, 2*N_MELS_PAD), so the wrapper never needs a relayout reshape.
    """
    # TODO(synk): the real processor computes a log-mel STFT (FFT has no clean
    # Pallas equivalent); a synthetic learned filterbank matmul stands in.
    f = fr_ref[0].astype(jnp.bfloat16)                      # (T, 2*FRAME)
    fb = fb_ref[...]                                        # (FRAME, NMP) bf16
    fbb = fbb_ref[...].astype(jnp.float32)                  # (1, NMP)
    mel_e = jnp.dot(f[:, :frame], fb, preferred_element_type=jnp.float32) + fbb
    mel_o = jnp.dot(f[:, frame:], fb, preferred_element_type=jnp.float32) + fbb
    mel_e = jnp.log(jnp.abs(mel_e) + 1e-6)                  # (T, NMP) f32
    mel_o = jnp.log(jnp.abs(mel_o) + 1e-6)
    # per-utterance CMVN over all 2*T frames, per mel bin
    n_frames = 2.0 * mel_e.shape[0]
    mean = (jnp.sum(mel_e, axis=0, keepdims=True)
            + jnp.sum(mel_o, axis=0, keepdims=True)) / n_frames
    var = (jnp.sum(jnp.square(mel_e - mean), axis=0, keepdims=True)
           + jnp.sum(jnp.square(mel_o - mean), axis=0, keepdims=True)) / n_frames
    inv = jax.lax.rsqrt(var + eps)
    y = jnp.concatenate([(mel_e - mean) * inv, (mel_o - mean) * inv], axis=-1)
    o_ref[...] = y[None].astype(o_ref.dtype)                # (1, T, 2*NMP) bf16


def _featproj_kernel(x_ref, g_ref, b_ref, w_ref, wb_ref, o_ref, *, eps, n_valid):
    """Feature projection: masked LayerNorm(160-of-256) + Linear, fused.

    Pad lanes of x are exactly zero (produced so by the processor), so the LN
    statistics over the 160 valid dims can be recovered from full-lane sums.
    """
    x = x_ref[...].astype(jnp.float32)                      # (tm, FEAT_DIM)
    n_pad = x.shape[-1] - n_valid
    mean = jnp.sum(x, axis=-1, keepdims=True) / n_valid
    d = x - mean
    ss = jnp.sum(d * d, axis=-1, keepdims=True) - n_pad * mean * mean
    var = ss / n_valid
    h = d * jax.lax.rsqrt(var + eps) * g_ref[...].astype(jnp.float32) \
        + b_ref[...].astype(jnp.float32)
    y = jnp.dot(h.astype(jnp.bfloat16), w_ref[...],
                preferred_element_type=jnp.float32)
    o_ref[...] = (y + wb_ref[...].astype(jnp.float32)).astype(o_ref.dtype)


def _encoder_layer_kernel(x_ref, kb_ref,
                          ln1g_ref, ln1b_ref,
                          wqkv_ref, bqkv_ref, wo_ref, bo_ref,
                          ln2g_ref, ln2b_ref,
                          w1_ref, b1_ref, w2_ref, b2_ref,
                          o_ref, *, heads, head_dim, eps, scale):
    """One full transformer encoder layer for one batch element, fused."""
    # TODO(synk): the real Wav2Vec2BertEncoderLayer (conformer) also has a
    # second half-step FFN, a depthwise-conv module and rel-pos attention.
    x = x_ref[0].astype(jnp.float32)                        # (T, D)
    d = heads * head_dim

    # --- self-attention block (pre-LN) ---
    h = _ln_f32(x, ln1g_ref[...].astype(jnp.float32),
                ln1b_ref[...].astype(jnp.float32), eps)
    # single fused, lane-dense QKV matmul + single bias add
    qkv = jnp.dot(h.astype(jnp.bfloat16), wqkv_ref[...],
                  preferred_element_type=jnp.float32)
    qkv = (qkv + bqkv_ref[...].astype(jnp.float32)).astype(jnp.bfloat16)  # (T, 3D)

    # heads-batched attention: stack static lane slices -> (H, T, dh)
    q = jnp.stack([qkv[:, i * head_dim:(i + 1) * head_dim]
                   for i in range(heads)], axis=0)
    k = jnp.stack([qkv[:, d + i * head_dim:d + (i + 1) * head_dim]
                   for i in range(heads)], axis=0)
    v = jnp.stack([qkv[:, 2 * d + i * head_dim:2 * d + (i + 1) * head_dim]
                   for i in range(heads)], axis=0)

    # scores: contract dh, batch over heads (no explicit transpose)
    s = jax.lax.dot_general(q, k, (((2,), (2,)), ((0,), (0,))),
                            preferred_element_type=jnp.float32) * scale   # (H,T,T)
    s = s + kb_ref[0]                                       # key bias (1, T), hoisted
    s = s - jnp.max(s, axis=-1, keepdims=True)
    p = jnp.exp(s)
    p = p * pl.reciprocal(jnp.sum(p, axis=-1, keepdims=True), approx=True)
    ctx = jax.lax.dot_general(p.astype(jnp.bfloat16), v,
                              (((2,), (1,)), ((0,), (0,))),
                              preferred_element_type=jnp.float32)         # (H,T,dh)
    # re-concatenate heads along lanes -> (T, D); single lane-dense out proj
    ctx = jnp.concatenate([ctx[i] for i in range(heads)], axis=-1)
    attn = jnp.dot(ctx.astype(jnp.bfloat16), wo_ref[...],
                   preferred_element_type=jnp.float32)
    x = x + attn + bo_ref[...].astype(jnp.float32)          # residual

    # --- feed-forward block (pre-LN, swish) ---
    h = _ln_f32(x, ln2g_ref[...].astype(jnp.float32),
                ln2b_ref[...].astype(jnp.float32), eps)
    h1 = jnp.dot(h.astype(jnp.bfloat16), w1_ref[...],
                 preferred_element_type=jnp.float32)
    h1 = h1 + b1_ref[...].astype(jnp.float32)
    h1 = h1 / (1.0 + jnp.exp(-h1))                          # exact SiLU (safe form)
    ffn = jnp.dot(h1.astype(jnp.bfloat16), w2_ref[...],
                  preferred_element_type=jnp.float32)
    x = x + ffn + b2_ref[...].astype(jnp.float32)           # residual

    o_ref[...] = x[None].astype(o_ref.dtype)


def _ln_vq_kernel(x_ref, cb_ref, c2_ref, idx_ref, *, eps):
    """LayerNorm (no affine) + euclidean nearest codebook entry, fused.

    Distances are computed transposed (K, tm): ||x||^2 is dropped (constant
    per row), ||c||^2 is precomputed in the wrapper, the argmin reduces over
    sublanes and the index output is written lane-dense as (1, tm).
    """
    x = x_ref[...].astype(jnp.float32)                      # (tm, D)
    mean = jnp.mean(x, axis=-1, keepdims=True)
    var = jnp.mean(jnp.square(x - mean), axis=-1, keepdims=True)
    xn = ((x - mean) * jax.lax.rsqrt(var + eps)).astype(jnp.bfloat16)
    # d[k, n] = ||c_k||^2 - 2 * c_k . x_n   (argmin unchanged by dropping ||x_n||^2)
    dt = c2_ref[...] - 2.0 * jax.lax.dot_general(
        cb_ref[...], xn, (((1,), (1,)), ((), ())),
        preferred_element_type=jnp.float32)                 # (K, tm)
    kk = dt.shape[0]
    sub_iota = jax.lax.broadcasted_iota(jnp.int32, dt.shape, 0)
    dmin = jnp.min(dt, axis=0, keepdims=True)               # (1, tm)
    cand = jnp.where(dt == dmin, sub_iota, kk)              # first-min tie break
    idx = jnp.min(cand.astype(jnp.float32), axis=0, keepdims=True)
    idx_ref[...] = idx.astype(jnp.int32)                    # (1, tm) lane-dense


# ----------------------------- Pallas wrappers --------------------------------
def pallas_processor(frames, fb, fbb):
    bsz, t, fr2 = frames.shape
    frame, nmp = fb.shape
    return pl.pallas_call(
        functools.partial(_processor_kernel, eps=1e-7, frame=frame),
        grid=(bsz,),
        in_specs=[pl.BlockSpec((1, t, fr2), lambda b: (b, 0, 0)),
                  pl.BlockSpec((frame, nmp), lambda b: (0, 0)),
                  pl.BlockSpec((1, nmp), lambda b: (0, 0))],
        out_specs=pl.BlockSpec((1, t, 2 * nmp), lambda b: (b, 0, 0)),
        out_shape=jax.ShapeDtypeStruct((bsz, t, 2 * nmp), jnp.bfloat16),
        compiler_params=pltpu.CompilerParams(dimension_semantics=("parallel",)),
    )(frames, fb, fbb)


def _row_tile(n, max_tm):
    """Largest multiple-of-16 row tile <= max_tm that divides n (else n)."""
    tm = min(max_tm, n)
    while tm > 16 and (n % tm or tm % 16):
        tm //= 2
    return tm if (n % tm == 0 and tm % 16 == 0) else n


def pallas_feature_projection(x, g, b, w, wb, n_valid):
    n, din = x.shape
    dout = w.shape[1]
    tm = _row_tile(n, 256)
    return pl.pallas_call(
        functools.partial(_featproj_kernel, eps=1e-5, n_valid=n_valid),
        grid=(n // tm,),
        in_specs=[pl.BlockSpec((tm, din), lambda i: (i, 0)),
                  pl.BlockSpec((1, din), lambda i: (0, 0)),
                  pl.BlockSpec((1, din), lambda i: (0, 0)),
                  pl.BlockSpec((din, dout), lambda i: (0, 0)),
                  pl.BlockSpec((1, dout), lambda i: (0, 0))],
        out_specs=pl.BlockSpec((tm, dout), lambda i: (i, 0)),
        out_shape=jax.ShapeDtypeStruct((n, dout), jnp.bfloat16),
        compiler_params=pltpu.CompilerParams(dimension_semantics=("parallel",)),
    )(x, g, b, w, wb)


def pallas_encoder_layer(x, key_bias, lp, heads, head_dim):
    bsz, t, d = x.shape
    ffn = lp["w1"].shape[1]
    scale = 1.0 / (head_dim ** 0.5)

    def const(*shape):  # VMEM-resident block: constant index_map across the grid
        return pl.BlockSpec(shape, lambda b: (0,) * len(shape))

    return pl.pallas_call(
        functools.partial(_encoder_layer_kernel, heads=heads,
                          head_dim=head_dim, eps=1e-5, scale=scale),
        grid=(bsz,),
        in_specs=[pl.BlockSpec((1, t, d), lambda b: (b, 0, 0)),      # x
                  pl.BlockSpec((1, 1, t), lambda b: (b, 0, 0)),      # key bias (f32)
                  const(1, d), const(1, d),                          # LN1 g, b
                  const(d, 3 * d), const(1, 3 * d),                  # fused QKV w, b
                  const(d, d), const(1, d),                          # wo, bo
                  const(1, d), const(1, d),                          # LN2 g, b
                  const(d, ffn), const(1, ffn),                      # w1, b1
                  const(ffn, d), const(1, d)],                       # w2, b2
        out_specs=pl.BlockSpec((1, t, d), lambda b: (b, 0, 0)),
        out_shape=jax.ShapeDtypeStruct((bsz, t, d), x.dtype),
        compiler_params=pltpu.CompilerParams(
            dimension_semantics=("parallel",),
            vmem_limit_bytes=32 * 1024 * 1024),
    )(x, key_bias,
      lp["attn_ln_g"], lp["attn_ln_b"],
      lp["w_qkv"], lp["b_qkv"], lp["wo"], lp["bo"],
      lp["ffn_ln_g"], lp["ffn_ln_b"],
      lp["w1"], lp["b1"], lp["w2"], lp["b2"])


def pallas_layernorm_vq(x, codebook_bf16, codebook_sq):
    n, d = x.shape
    k = codebook_bf16.shape[0]
    # lane-dense (1, tm) output blocks require tm % 128 == 0 or tm == n
    tm = 128 * (n // 128) if (n % 128 == 0 and n >= 256) else n
    tm = min(tm, 512) if tm != n else tm
    if tm != n and n % tm:
        tm = n
    return pl.pallas_call(
        functools.partial(_ln_vq_kernel, eps=1e-5),
        grid=(n // tm,),
        in_specs=[pl.BlockSpec((tm, d), lambda i: (i, 0)),
                  pl.BlockSpec((k, d), lambda i: (0, 0)),
                  pl.BlockSpec((k, 1), lambda i: (0, 0))],
        out_specs=pl.BlockSpec((1, tm), lambda i: (0, i)),
        out_shape=jax.ShapeDtypeStruct((1, n), jnp.int32),
        compiler_params=pltpu.CompilerParams(dimension_semantics=("parallel",)),
    )(x, codebook_bf16, codebook_sq)


# ----------------------------- parameters -------------------------------------
def init_params(key):
    keys = iter(jax.random.split(key, 64))

    def nrm(shape, scale=0.02, dtype=jnp.bfloat16):
        return (jax.random.normal(next(keys), shape, dtype=jnp.float32)
                * scale).astype(dtype)

    ones = lambda s: jnp.ones(s, jnp.bfloat16)
    zeros = lambda s: jnp.zeros(s, jnp.bfloat16)

    # filterbank padded 80 -> 128 mel bins; pad columns zero
    mel_valid = jnp.arange(N_MELS_PAD) < N_MELS
    fb = jnp.where(mel_valid[None, :], nrm((FRAME, N_MELS_PAD), scale=0.1),
                   jnp.zeros((FRAME, N_MELS_PAD), jnp.bfloat16))
    # feature-projection LN gain/bias and weight padded to the stacked 256 dim
    feat_valid = jnp.concatenate([mel_valid, mel_valid])          # (256,)
    fp_ln_g = feat_valid.astype(jnp.bfloat16)[None, :]
    fp_w = jnp.where(feat_valid[:, None], nrm((FEAT_DIM, HIDDEN)),
                     jnp.zeros((FEAT_DIM, HIDDEN), jnp.bfloat16))

    # VectorQuantize codebook: (K, D) bf16 for the MXU + precomputed ||c||^2 f32
    cb_f32 = jax.random.normal(next(keys), (CODEBOOK, HIDDEN), dtype=jnp.float32)
    cb_bf16 = cb_f32.astype(jnp.bfloat16)
    cb_sq = jnp.sum(jnp.square(cb_bf16.astype(jnp.float32)), axis=1, keepdims=True)

    params = {
        "filterbank": fb,
        "fb_b": zeros((1, N_MELS_PAD)),
        "fp_ln_g": fp_ln_g,
        "fp_ln_b": zeros((1, FEAT_DIM)),
        "fp_w": fp_w,
        "fp_b": zeros((1, HIDDEN)),
        "codebook_bf16": cb_bf16,
        "codebook_sq": cb_sq,
        "layers": [],
    }
    for _ in range(LAYERS):
        params["layers"].append({
            "attn_ln_g": ones((1, HIDDEN)), "attn_ln_b": zeros((1, HIDDEN)),
            # fused QKV projection: columns ordered [Q | K | V], head-major inside
            "w_qkv": nrm((HIDDEN, 3 * HIDDEN)), "b_qkv": zeros((1, 3 * HIDDEN)),
            "wo": nrm((HIDDEN, HIDDEN)), "bo": zeros((1, HIDDEN)),
            "ffn_ln_g": ones((1, HIDDEN)), "ffn_ln_b": zeros((1, HIDDEN)),
            "w1": nrm((HIDDEN, FFN)), "b1": zeros((1, FFN)),
            "w2": nrm((FFN, HIDDEN)), "b2": zeros((1, HIDDEN)),
        })
    return params


# ----------------------------- model forward ----------------------------------
def processor(params, audio, mask):
    """Wav2Vec2BertProcessor stand-in: framing + filterbank + CMVN + stride-2."""
    bsz, s = audio.shape
    t = s // (FRAME * STRIDE)
    # contiguous reshape only (no relayout): two stacked raw frames per step
    frames = audio.reshape(bsz, t, FRAME * STRIDE)
    feats = pallas_processor(frames, params["filterbank"], params["fb_b"])
    # OR the validity of the two stacked frames (stride-2)
    attn_mask = mask.reshape(bsz, t, FRAME * STRIDE).max(axis=-1)
    return feats, attn_mask.astype(jnp.int32)


def wav2vec_bert_encoder_forward(params, input_batch, mask, quantize=True):
    # mirrors Wav2VecBertEncoder.forward under autocast(bfloat16), no_grad
    feats, attn_mask = processor(params, input_batch, mask)
    bsz, t, fdim = feats.shape
    h = pallas_feature_projection(feats.reshape(bsz * t, fdim),
                                  params["fp_ln_g"], params["fp_ln_b"],
                                  params["fp_w"], params["fp_b"],
                                  n_valid=FEAT_VALID)
    h = h.reshape(bsz, t, HIDDEN)
    # mask -> additive key bias once, reused by every layer
    key_bias = jnp.where(attn_mask > 0, 0.0, -1e30).astype(jnp.float32)
    key_bias = key_bias.reshape(bsz, 1, t)

    hidden_states = [h]
    for lp in params["layers"]:
        h = pallas_encoder_layer(h, key_bias, lp, HEADS, HEAD_DIM)
        hidden_states.append(h)
    if not quantize:
        return tuple(hidden_states)                          # bf16 hidden states

    emb = hidden_states[OUTPUT_LAYER]
    bsz, t, d = emb.shape
    # LayerNorm(no affine) + VectorQuantize nearest-code lookup, fused
    idx = pallas_layernorm_vq(emb.reshape(bsz * t, d),
                              params["codebook_bf16"], params["codebook_sq"])
    clusters = idx.reshape(bsz, t).astype(jnp.int16)
    # torch: clusters.unsqueeze(-1).transpose(1, 2) -> (B, 1, T) int16
    return clusters[:, None, :]


# ----------------------------- main --------------------------------------------
if __name__ == "__main__":
    key = jax.random.PRNGKey(0)
    pkey, akey = jax.random.split(key)
    params = init_params(pkey)

    B, S = 2, 2048                        # -> T = S / (FRAME*STRIDE) = 16
    input_batch = jax.random.normal(akey, (B, S), dtype=jnp.float32)
    mask = jnp.ones((B, S), dtype=jnp.int32)

    fwd = jax.jit(functools.partial(wav2vec_bert_encoder_forward, quantize=True))
    clusters = fwd(params, input_batch, mask)
    jax.block_until_ready(clusters)

    assert clusters.shape == (B, 1, S // (FRAME * STRIDE)), clusters.shape
    assert clusters.dtype == jnp.int16, clusters.dtype
    print("KERNEL_OK")
</pallas_src>

<mosaic_0001>
module attributes {stable_mosaic.version = 11 : i64} {
  func.func @_processor_kernel(%arg0: i32, %arg1: memref<1x16x128xf32, #tpu.memory_space<vmem>>, %arg2: memref<64x128xbf16, #tpu.memory_space<vmem>>, %arg3: memref<1x128xbf16, #tpu.memory_space<vmem>>, %arg4: memref<1x16x256xbf16, #tpu.memory_space<vmem>>) attributes {dimension_semantics = [#tpu.dimension_semantics<parallel>], iteration_bounds = array<i64: 2>, scalar_prefetch = 0 : i64, scratch_operands = 0 : i64, tpu.core_type = #tpu.core_type<tc>, window_params = [{transform_indices = @transform_0, window_bounds = array<i64: 1, 16, 128>}, {pipeline_mode = #tpu.pipeline_mode<synchronous>, transform_indices = @transform_1, window_bounds = array<i64: 64, 128>}, {pipeline_mode = #tpu.pipeline_mode<synchronous>, transform_indices = @transform_2, window_bounds = array<i64: 1, 128>}, {transform_indices = @transform_3, window_bounds = array<i64: 1, 16, 256>}]} {
    %c0 = arith.constant 0 : index
    %c0_0 = arith.constant 0 : index
    %c0_1 = arith.constant 0 : index
    %0 = vector.load %arg1[%c0, %c0_0, %c0_1] : memref<1x16x128xf32, #tpu.memory_space<vmem>>, vector<1x16x128xf32>
    %1 = vector.shape_cast %0 : vector<1x16x128xf32> to vector<16x128xf32>
    %2 = arith.truncf %1 : vector<16x128xf32> to vector<16x128xbf16>
    %c0_2 = arith.constant 0 : index
    %c0_3 = arith.constant 0 : index
    %3 = vector.load %arg2[%c0_2, %c0_3] : memref<64x128xbf16, #tpu.memory_space<vmem>>, vector<64x128xbf16>
    %c0_4 = arith.constant 0 : index
    %c0_5 = arith.constant 0 : index
    %4 = vector.load %arg3[%c0_4, %c0_5] : memref<1x128xbf16, #tpu.memory_space<vmem>>, vector<1x128xbf16>
    %5 = arith.extf %4 : vector<1x128xbf16> to vector<1x128xf32>
    %6 = vector.extract_strided_slice %2 {offsets = [0, 0], sizes = [16, 64], strides = [1, 1]} : vector<16x128xbf16> to vector<16x64xbf16>
    %cst = arith.constant dense<0.000000e+00> : vector<16x128xf32>
    %7 = tpu.matmul %6, %3, %cst {dimension_numbers = #tpu.dot_dimension_numbers<[1], [0], [0], [1], [0, 0, 1, 1], [], []>} : vector<16x64xbf16>, vector<64x128xbf16>, vector<16x128xf32> -> vector<16x128xf32>
    %8 = vector.broadcast %5 : vector<1x128xf32> to vector<16x128xf32>
    %9 = arith.addf %7, %8 : vector<16x128xf32>
    %10 = vector.extract_strided_slice %2 {offsets = [0, 64], sizes = [16, 64], strides = [1, 1]} : vector<16x128xbf16> to vector<16x64xbf16>
    %cst_6 = arith.constant dense<0.000000e+00> : vector<16x128xf32>
    %11 = tpu.matmul %10, %3, %cst_6 {dimension_numbers = #tpu.dot_dimension_numbers<[1], [0], [0], [1], [0, 0, 1, 1], [], []>} : vector<16x64xbf16>, vector<64x128xbf16>, vector<16x128xf32> -> vector<16x128xf32>
    %12 = vector.broadcast %5 : vector<1x128xf32> to vector<16x128xf32>
    %13 = arith.addf %11, %12 : vector<16x128xf32>
    %14 = math.absf %9 : vector<16x128xf32>
    %cst_7 = arith.constant 9.99999997E-7 : f32
    %15 = vector.broadcast %cst_7 : f32 to vector<16x128xf32>
    %16 = arith.addf %14, %15 : vector<16x128xf32>
    %17 = math.log %16 : vector<16x128xf32>
    %18 = math.absf %13 : vector<16x128xf32>
    %cst_8 = arith.constant 9.99999997E-7 : f32
    %19 = vector.broadcast %cst_8 : f32 to vector<16x128xf32>
    %20 = arith.addf %18, %19 : vector<16x128xf32>
    %21 = math.log %20 : vector<16x128xf32>
    %cst_9 = arith.constant dense<0.000000e+00> : vector<128xf32>
    %22 = vector.multi_reduction <add>, %17, %cst_9 [0] : vector<16x128xf32> to vector<128xf32>
    %23 = vector.shape_cast %22 : vector<128xf32> to vector<1x128xf32>
    %cst_10 = arith.constant dense<0.000000e+00> : vector<128xf32>
    %24 = vector.multi_reduction <add>, %21, %cst_10 [0] : vector<16x128xf32> to vector<128xf32>
    %25 = vector.shape_cast %24 : vector<128xf32> to vector<1x128xf32>
    %26 = arith.addf %23, %25 : vector<1x128xf32>
    %cst_11 = arith.constant 3.200000e+01 : f32
    %27 = vector.broadcast %cst_11 : f32 to vector<1x128xf32>
    %28 = arith.divf %26, %27 : vector<1x128xf32>
    %29 = vector.broadcast %28 : vector<1x128xf32> to vector<16x128xf32>
    %30 = arith.subf %17, %29 : vector<16x128xf32>
    %31 = arith.mulf %30, %30 : vector<16x128xf32>
    %cst_12 = arith.constant dense<0.000000e+00> : vector<128xf32>
    %32 = vector.multi_reduction <add>, %31, %cst_12 [0] : vector<16x128xf32> to vector<128xf32>
    %33 = vector.shape_cast %32 : vector<128xf32> to vector<1x128xf32>
    %34 = vector.broadcast %28 : vector<1x128xf32> to vector<16x128xf32>
    %35 = arith.subf %21, %34 : vector<16x128xf32>
    %36 = arith.mulf %35, %35 : vector<16x128xf32>
    %cst_13 = arith.constant dense<0.000000e+00> : vector<128xf32>
    %37 = vector.multi_reduction <add>, %36, %cst_13 [0] : vector<16x128xf32> to vector<128xf32>
    %38 = vector.shape_cast %37 : vector<128xf32> to vector<1x128xf32>
    %39 = arith.addf %33, %38 : vector<1x128xf32>
    %cst_14 = arith.constant 3.200000e+01 : f32
    %40 = vector.broadcast %cst_14 : f32 to vector<1x128xf32>
    %41 = arith.divf %39, %40 : vector<1x128xf32>
    %cst_15 = arith.constant 1.000000e-07 : f32
    %42 = vector.broadcast %cst_15 : f32 to vector<1x128xf32>
    %43 = arith.addf %41, %42 : vector<1x128xf32>
    %44 = math.rsqrt %43 : vector<1x128xf32>
    %45 = vector.broadcast %28 : vector<1x128xf32> to vector<16x128xf32>
    %46 = arith.subf %17, %45 : vector<16x128xf32>
    %47 = vector.broadcast %44 : vector<1x128xf32> to vector<16x128xf32>
    %48 = arith.mulf %46, %47 : vector<16x128xf32>
    %49 = vector.broadcast %28 : vector<1x128xf32> to vector<16x128xf32>
    %50 = arith.subf %21, %49 : vector<16x128xf32>
    %51 = vector.broadcast %44 : vector<1x128xf32> to vector<16x128xf32>
    %52 = arith.mulf %50, %51 : vector<16x128xf32>
    %53 = tpu.concatenate %48, %52 in 1 : vector<16x128xf32>, vector<16x128xf32> -> vector<16x256xf32>
    %54 = vector.shape_cast %53 : vector<16x256xf32> to vector<1x16x256xf32>
    %55 = arith.truncf %54 : vector<1x16x256xf32> to vector<1x16x256xbf16>
    %c0_16 = arith.constant 0 : index
    %c0_17 = arith.constant 0 : index
    %c0_18 = arith.constant 0 : index
    %56 = vector.load %arg4[%c0_16, %c0_17, %c0_18] : memref<1x16x256xbf16, #tpu.memory_space<vmem>>, vector<1x16x256xbf16>
    tpu.vector_store %arg4[%c0_16, %c0_17, %c0_18], %55 {strides = array<i32>} : memref<1x16x256xbf16, #tpu.memory_space<vmem>>, vector<1x16x256xbf16>,
    return
  }
  func.func @transform_0(%arg0: i32) -> (i32, i32, i32) {
    %c0_i32 = arith.constant 0 : i32
    %c0_i32_0 = arith.constant 0 : i32
    %c0_i32_1 = arith.constant 0 : i32
    return %arg0, %c0_i32, %c0_i32_0 : i32, i32, i32
  }
  func.func @transform_1(%arg0: i32) -> (i32, i32) {
    %c0_i32 = arith.constant 0 : i32
    %c0_i32_0 = arith.constant 0 : i32
    %c0_i32_1 = arith.constant 0 : i32
    return %c0_i32, %c0_i32_0 : i32, i32
  }
  func.func @transform_2(%arg0: i32) -> (i32, i32) {
    %c0_i32 = arith.constant 0 : i32
    %c0_i32_0 = arith.constant 0 : i32
    %c0_i32_1 = arith.constant 0 : i32
    return %c0_i32, %c0_i32_0 : i32, i32
  }
  func.func @transform_3(%arg0: i32) -> (i32, i32, i32) {
    %c0_i32 = arith.constant 0 : i32
    %c0_i32_0 = arith.constant 0 : i32
    %c0_i32_1 = arith.constant 0 : i32
    return %arg0, %c0_i32, %c0_i32_0 : i32, i32, i32
  }
}

module attributes {stable_mosaic.version = 11 : i64} {
  func.func @_featproj_kernel(%arg0: i32, %arg1: memref<32x256xbf16, #tpu.memory_space<vmem>>, %arg2: memref<1x256xbf16, #tpu.memory_space<vmem>>, %arg3: memref<1x256xbf16, #tpu.memory_space<vmem>>, %arg4: memref<256x64xbf16, #tpu.memory_space<vmem>>, %arg5: memref<1x64xbf16, #tpu.memory_space<vmem>>, %arg6: memref<32x64xbf16, #tpu.memory_space<vmem>>) attributes {dimension_semantics = [#tpu.dimension_semantics<parallel>], iteration_bounds = array<i64: 1>, scalar_prefetch = 0 : i64, scratch_operands = 0 : i64, tpu.core_type = #tpu.core_type<tc>, window_params = [{transform_indices = @transform_0, window_bounds = array<i64: 32, 256>}, {pipeline_mode = #tpu.pipeline_mode<synchronous>, transform_indices = @transform_1, window_bounds = array<i64: 1, 256>}, {pipeline_mode = #tpu.pipeline_mode<synchronous>, transform_indices = @transform_2, window_bounds = array<i64: 1, 256>}, {pipeline_mode = #tpu.pipeline_mode<synchronous>, transform_indices = @transform_3, window_bounds = array<i64: 256, 64>}, {pipeline_mode = #tpu.pipeline_mode<synchronous>, transform_indices = @transform_4, window_bounds = array<i64: 1, 64>}, {transform_indices = @transform_5, window_bounds = array<i64: 32, 64>}]} {
    %c0 = arith.constant 0 : index
    %c0_0 = arith.constant 0 : index
    %0 = vector.load %arg1[%c0, %c0_0] : memref<32x256xbf16, #tpu.memory_space<vmem>>, vector<32x256xbf16>
    %1 = arith.extf %0 : vector<32x256xbf16> to vector<32x256xf32>
    %cst = arith.constant dense<0.000000e+00> : vector<32xf32>
    %2 = vector.multi_reduction <add>, %1, %cst [1] : vector<32x256xf32> to vector<32xf32>
    %3 = vector.shape_cast %2 : vector<32xf32> to vector<32x1xf32>
    %cst_1 = arith.constant 1.600000e+02 : f32
    %4 = vector.broadcast %cst_1 : f32 to vector<32x1xf32>
    %5 = arith.divf %3, %4 : vector<32x1xf32>
    %6 = vector.broadcast %5 : vector<32x1xf32> to vector<32x256xf32>
    %7 = arith.subf %1, %6 : vector<32x256xf32>
    %8 = arith.mulf %7, %7 : vector<32x256xf32>
    %cst_2 = arith.constant dense<0.000000e+00> : vector<32xf32>
    %9 = vector.multi_reduction <add>, %8, %cst_2 [1] : vector<32x256xf32> to vector<32xf32>
    %10 = vector.shape_cast %9 : vector<32xf32> to vector<32x1xf32>
    %cst_3 = arith.constant 9.600000e+01 : f32
    %11 = vector.broadcast %cst_3 : f32 to vector<32x1xf32>
    %12 = arith.mulf %11, %5 : vector<32x1xf32>
    %13 = arith.mulf %12, %5 : vector<32x1xf32>
    %14 = arith.subf %10, %13 : vector<32x1xf32>
    %cst_4 = arith.constant 1.600000e+02 : f32
    %15 = vector.broadcast %cst_4 : f32 to vector<32x1xf32>
    %16 = arith.divf %14, %15 : vector<32x1xf32>
    %cst_5 = arith.constant 9.99999974E-6 : f32
    %17 = vector.broadcast %cst_5 : f32 to vector<32x1xf32>
    %18 = arith.addf %16, %17 : vector<32x1xf32>
    %19 = math.rsqrt %18 : vector<32x1xf32>
    %20 = vector.broadcast %19 : vector<32x1xf32> to vector<32x256xf32>
    %21 = arith.mulf %7, %20 : vector<32x256xf32>
    %c0_6 = arith.constant 0 : index
    %c0_7 = arith.constant 0 : index
    %22 = vector.load %arg2[%c0_6, %c0_7] : memref<1x256xbf16, #tpu.memory_space<vmem>>, vector<1x256xbf16>
    %23 = arith.extf %22 : vector<1x256xbf16> to vector<1x256xf32>
    %24 = vector.broadcast %23 : vector<1x256xf32> to vector<32x256xf32>
    %25 = arith.mulf %21, %24 : vector<32x256xf32>
    %c0_8 = arith.constant 0 : index
    %c0_9 = arith.constant 0 : index
    %26 = vector.load %arg3[%c0_8, %c0_9] : memref<1x256xbf16, #tpu.memory_space<vmem>>, vector<1x256xbf16>
    %27 = arith.extf %26 : vector<1x256xbf16> to vector<1x256xf32>
    %28 = vector.broadcast %27 : vector<1x256xf32> to vector<32x256xf32>
    %29 = arith.addf %25, %28 : vector<32x256xf32>
    %30 = arith.truncf %29 : vector<32x256xf32> to vector<32x256xbf16>
    %c0_10 = arith.constant 0 : index
    %c0_11 = arith.constant 0 : index
    %31 = vector.load %arg4[%c0_10, %c0_11] : memref<256x64xbf16, #tpu.memory_space<vmem>>, vector<256x64xbf16>
    %cst_12 = arith.constant dense<0.000000e+00> : vector<32x64xf32>
    %32 = tpu.matmul %30, %31, %cst_12 {dimension_numbers = #tpu.dot_dimension_numbers<[1], [0], [0], [1], [0, 0, 1, 1], [], []>} : vector<32x256xbf16>, vector<256x64xbf16>, vector<32x64xf32> -> vector<32x64xf32>
    %c0_13 = arith.constant 0 : index
    %c0_14 = arith.constant 0 : index
    %33 = vector.load %arg5[%c0_13, %c0_14] : memref<1x64xbf16, #tpu.memory_space<vmem>>, vector<1x64xbf16>
    %34 = arith.extf %33 : vector<1x64xbf16> to vector<1x64xf32>
    %35 = vector.broadcast %34 : vector<1x64xf32> to vector<32x64xf32>
    %36 = arith.addf %32, %35 : vector<32x64xf32>
    %37 = arith.truncf %36 : vector<32x64xf32> to vector<32x64xbf16>
    %c0_15 = arith.constant 0 : index
    %c0_16 = arith.constant 0 : index
    %38 = vector.load %arg6[%c0_15, %c0_16] : memref<32x64xbf16, #tpu.memory_space<vmem>>, vector<32x64xbf16>
    tpu.vector_store %arg6[%c0_15, %c0_16], %37 {strides = array<i32>} : memref<32x64xbf16, #tpu.memory_space<vmem>>, vector<32x64xbf16>,
    return
  }
  func.func @transform_0(%arg0: i32) -> (i32, i32) {
    %c0_i32 = arith.constant 0 : i32
    %c0_i32_0 = arith.constant 0 : i32
    return %arg0, %c0_i32 : i32, i32
  }
  func.func @transform_1(%arg0: i32) -> (i32, i32) {
    %c0_i32 = arith.constant 0 : i32
    %c0_i32_0 = arith.constant 0 : i32
    %c0_i32_1 = arith.constant 0 : i32
    return %c0_i32, %c0_i32_0 : i32, i32
  }
  func.func @transform_2(%arg0: i32) -> (i32, i32) {
    %c0_i32 = arith.constant 0 : i32
    %c0_i32_0 = arith.constant 0 : i32
    %c0_i32_1 = arith.constant 0 : i32
    return %c0_i32, %c0_i32_0 : i32, i32
  }
  func.func @transform_3(%arg0: i32) -> (i32, i32) {
    %c0_i32 = arith.constant 0 : i32
    %c0_i32_0 = arith.constant 0 : i32
    %c0_i32_1 = arith.constant 0 : i32
    return %c0_i32, %c0_i32_0 : i32, i32
  }
  func.func @transform_4(%arg0: i32) -> (i32, i32) {
    %c0_i32 = arith.constant 0 : i32
    %c0_i32_0 = arith.constant 0 : i32
    %c0_i32_1 = arith.constant 0 : i32
    return %c0_i32, %c0_i32_0 : i32, i32
  }
  func.func @transform_5(%arg0: i32) -> (i32, i32) {
    %c0_i32 = arith.constant 0 : i32
    %c0_i32_0 = arith.constant 0 : i32
    return %arg0, %c0_i32 : i32, i32
  }
}

module attributes {stable_mosaic.version = 11 : i64} {
  func.func @_encoder_layer_kernel(%arg0: i32, %arg1: memref<1x16x64xbf16, #tpu.memory_space<vmem>>, %arg2: memref<1x1x16xf32, #tpu.memory_space<vmem>>, %arg3: memref<1x64xbf16, #tpu.memory_space<vmem>>, %arg4: memref<1x64xbf16, #tpu.memory_space<vmem>>, %arg5: memref<64x192xbf16, #tpu.memory_space<vmem>>, %arg6: memref<1x192xbf16, #tpu.memory_space<vmem>>, %arg7: memref<64x64xbf16, #tpu.memory_space<vmem>>, %arg8: memref<1x64xbf16, #tpu.memory_space<vmem>>, %arg9: memref<1x64xbf16, #tpu.memory_space<vmem>>, %arg10: memref<1x64xbf16, #tpu.memory_space<vmem>>, %arg11: memref<64x256xbf16, #tpu.memory_space<vmem>>, %arg12: memref<1x256xbf16, #tpu.memory_space<vmem>>, %arg13: memref<256x64xbf16, #tpu.memory_space<vmem>>, %arg14: memref<1x64xbf16, #tpu.memory_space<vmem>>, %arg15: memref<1x16x64xbf16, #tpu.memory_space<vmem>>) attributes {dimension_semantics = [#tpu.dimension_semantics<parallel>], iteration_bounds = array<i64: 2>, scalar_prefetch = 0 : i64, scratch_operands = 0 : i64, tpu.core_type = #tpu.core_type<tc>, window_params = [{transform_indices = @transform_0, window_bounds = array<i64: 1, 16, 64>}, {transform_indices = @transform_1, window_bounds = array<i64: 1, 1, 16>}, {pipeline_mode = #tpu.pipeline_mode<synchronous>, transform_indices = @transform_2, window_bounds = array<i64: 1, 64>}, {pipeline_mode = #tpu.pipeline_mode<synchronous>, transform_indices = @transform_3, window_bounds = array<i64: 1, 64>}, {pipeline_mode = #tpu.pipeline_mode<synchronous>, transform_indices = @transform_4, window_bounds = array<i64: 64, 192>}, {pipeline_mode = #tpu.pipeline_mode<synchronous>, transform_indices = @transform_5, window_bounds = array<i64: 1, 192>}, {pipeline_mode = #tpu.pipeline_mode<synchronous>, transform_indices = @transform_6, window_bounds = array<i64: 64, 64>}, {pipeline_mode = #tpu.pipeline_mode<synchronous>, transform_indices = @transform_7, window_bounds = array<i64: 1, 64>}, {pipeline_mode = #tpu.pipeline_mode<synchronous>, transform_indices = @transform_8, window_bounds = array<i64: 1, 64>}, {pipeline_mode = #tpu.pipeline_mode<synchronous>, transform_indices = @transform_9, window_bounds = array<i64: 1, 64>}, {pipeline_mode = #tpu.pipeline_mode<synchronous>, transform_indices = @transform_10, window_bounds = array<i64: 64, 256>}, {pipeline_mode = #tpu.pipeline_mode<synchronous>, transform_indices = @transform_11, window_bounds = array<i64: 1, 256>}, {pipeline_mode = #tpu.pipeline_mode<synchronous>, transform_indices = @transform_12, window_bounds = array<i64: 256, 64>}, {pipeline_mode = #tpu.pipeline_mode<synchronous>, transform_indices = @transform_13, window_bounds = array<i64: 1, 64>}, {transform_indices = @transform_14, window_bounds = array<i64: 1, 16, 64>}]} {
    %c0 = arith.constant 0 : index
    %c0_0 = arith.constant 0 : index
    %c0_1 = arith.constant 0 : index
    %0 = vector.load %arg1[%c0, %c0_0, %c0_1] : memref<1x16x64xbf16, #tpu.memory_space<vmem>>, vector<1x16x64xbf16>
    %1 = vector.shape_cast %0 : vector<1x16x64xbf16> to vector<16x64xbf16>
    %2 = arith.extf %1 : vector<16x64xbf16> to vector<16x64xf32>
    %c0_2 = arith.constant 0 : index
    %c0_3 = arith.constant 0 : index
    %3 = vector.load %arg3[%c0_2, %c0_3] : memref<1x64xbf16, #tpu.memory_space<vmem>>, vector<1x64xbf16>
    %4 = arith.extf %3 : vector<1x64xbf16> to vector<1x64xf32>
    %c0_4 = arith.constant 0 : index
    %c0_5 = arith.constant 0 : index
    %5 = vector.load %arg4[%c0_4, %c0_5] : memref<1x64xbf16, #tpu.memory_space<vmem>>, vector<1x64xbf16>
    %6 = arith.extf %5 : vector<1x64xbf16> to vector<1x64xf32>
    %cst = arith.constant dense<0.000000e+00> : vector<16xf32>
    %7 = vector.multi_reduction <add>, %2, %cst [1] : vector<16x64xf32> to vector<16xf32>
    %8 = vector.shape_cast %7 : vector<16xf32> to vector<16x1xf32>
    %cst_6 = arith.constant 6.400000e+01 : f32
    %9 = vector.broadcast %cst_6 : f32 to vector<16x1xf32>
    %10 = arith.divf %8, %9 : vector<16x1xf32>
    %11 = vector.broadcast %10 : vector<16x1xf32> to vector<16x64xf32>
    %12 = arith.subf %2, %11 : vector<16x64xf32>
    %13 = arith.mulf %12, %12 : vector<16x64xf32>
    %cst_7 = arith.constant dense<0.000000e+00> : vector<16xf32>
    %14 = vector.multi_reduction <add>, %13, %cst_7 [1] : vector<16x64xf32> to vector<16xf32>
    %15 = vector.shape_cast %14 : vector<16xf32> to vector<16x1xf32>
    %cst_8 = arith.constant 6.400000e+01 : f32
    %16 = vector.broadcast %cst_8 : f32 to vector<16x1xf32>
    %17 = arith.divf %15, %16 : vector<16x1xf32>
    %18 = vector.broadcast %10 : vector<16x1xf32> to vector<16x64xf32>
    %19 = arith.subf %2, %18 : vector<16x64xf32>
    %cst_9 = arith.constant 9.99999974E-6 : f32
    %20 = vector.broadcast %cst_9 : f32 to vector<16x1xf32>
    %21 = arith.addf %17, %20 : vector<16x1xf32>
    %22 = math.rsqrt %21 : vector<16x1xf32>
    %23 = vector.broadcast %22 : vector<16x1xf32> to vector<16x64xf32>
    %24 = arith.mulf %19, %23 : vector<16x64xf32>
    %25 = vector.broadcast %4 : vector<1x64xf32> to vector<16x64xf32>
    %26 = arith.mulf %24, %25 : vector<16x64xf32>
    %27 = vector.broadcast %6 : vector<1x64xf32> to vector<16x64xf32>
    %28 = arith.addf %26, %27 : vector<16x64xf32>
    %29 = arith.truncf %28 : vector<16x64xf32> to vector<16x64xbf16>
    %c0_10 = arith.constant 0 : index
    %c0_11 = arith.constant 0 : index
    %30 = vector.load %arg5[%c0_10, %c0_11] : memref<64x192xbf16, #tpu.memory_space<vmem>>, vector<64x192xbf16>
    %cst_12 = arith.constant dense<0.000000e+00> : vector<16x192xf32>
    %31 = tpu.matmul %29, %30, %cst_12 {dimension_numbers = #tpu.dot_dimension_numbers<[1], [0], [0], [1], [0, 0, 1, 1], [], []>} : vector<16x64xbf16>, vector<64x192xbf16>, vector<16x192xf32> -> vector<16x192xf32>
    %c0_13 = arith.constant 0 : index
    %c0_14 = arith.constant 0 : index
    %32 = vector.load %arg6[%c0_13, %c0_14] : memref<1x192xbf16, #tpu.memory_space<vmem>>, vector<1x192xbf16>
    %33 = arith.extf %32 : vector<1x192xbf16> to vector<1x192xf32>
    %34 = vector.broadcast %33 : vector<1x192xf32> to vector<16x192xf32>
    %35 = arith.addf %31, %34 : vector<16x192xf32>
    %36 = arith.truncf %35 : vector<16x192xf32> to vector<16x192xbf16>
    %37 = vector.extract_strided_slice %36 {offsets = [0, 0], sizes = [16, 16], strides = [1, 1]} : vector<16x192xbf16> to vector<16x16xbf16>
    %38 = vector.extract_strided_slice %36 {offsets = [0, 16], sizes = [16, 16], strides = [1, 1]} : vector<16x192xbf16> to vector<16x16xbf16>
    %39 = vector.extract_strided_slice %36 {offsets = [0, 32], sizes = [16, 16], strides = [1, 1]} : vector<16x192xbf16> to vector<16x16xbf16>
    %40 = vector.extract_strided_slice %36 {offsets = [0, 48], sizes = [16, 16], strides = [1, 1]} : vector<16x192xbf16> to vector<16x16xbf16>
    %41 = vector.shape_cast %37 : vector<16x16xbf16> to vector<1x16x16xbf16>
    %42 = vector.shape_cast %38 : vector<16x16xbf16> to vector<1x16x16xbf16>
    %43 = vector.shape_cast %39 : vector<16x16xbf16> to vector<1x16x16xbf16>
    %44 = vector.shape_cast %40 : vector<16x16xbf16> to vector<1x16x16xbf16>
    %45 = tpu.concatenate %41, %42, %43, %44 in 0 : vector<1x16x16xbf16>, vector<1x16x16xbf16>, vector<1x16x16xbf16>, vector<1x16x16xbf16> -> vector<4x16x16xbf16>
    %46 = vector.extract_strided_slice %36 {offsets = [0, 64], sizes = [16, 16], strides = [1, 1]} : vector<16x192xbf16> to vector<16x16xbf16>
    %47 = vector.extract_strided_slice %36 {offsets = [0, 80], sizes = [16, 16], strides = [1, 1]} : vector<16x192xbf16> to vector<16x16xbf16>
    %48 = vector.extract_strided_slice %36 {offsets = [0, 96], sizes = [16, 16], strides = [1, 1]} : vector<16x192xbf16> to vector<16x16xbf16>
    %49 = vector.extract_strided_slice %36 {offsets = [0, 112], sizes = [16, 16], strides = [1, 1]} : vector<16x192xbf16> to vector<16x16xbf16>
    %50 = vector.shape_cast %46 : vector<16x16xbf16> to vector<1x16x16xbf16>
    %51 = vector.shape_cast %47 : vector<16x16xbf16> to vector<1x16x16xbf16>
    %52 = vector.shape_cast %48 : vector<16x16xbf16> to vector<1x16x16xbf16>
    %53 = vector.shape_cast %49 : vector<16x16xbf16> to vector<1x16x16xbf16>
    %54 = tpu.concatenate %50, %51, %52, %53 in 0 : vector<1x16x16xbf16>, vector<1x16x16xbf16>, vector<1x16x16xbf16>, vector<1x16x16xbf16> -> vector<4x16x16xbf16>
    %55 = vector.extract_strided_slice %36 {offsets = [0, 128], sizes = [16, 16], strides = [1, 1]} : vector<16x192xbf16> to vector<16x16xbf16>
    %56 = vector.extract_strided_slice %36 {offsets = [0, 144], sizes = [16, 16], strides = [1, 1]} : vector<16x192xbf16> to vector<16x16xbf16>
    %57 = vector.extract_strided_slice %36 {offsets = [0, 160], sizes = [16, 16], strides = [1, 1]} : vector<16x192xbf16> to vector<16x16xbf16>
    %58 = vector.extract_strided_slice %36 {offsets = [0, 176], sizes = [16, 16], strides = [1, 1]} : vector<16x192xbf16> to vector<16x16xbf16>
    %59 = vector.shape_cast %55 : vector<16x16xbf16> to vector<1x16x16xbf16>
    %60 = vector.shape_cast %56 : vector<16x16xbf16> to vector<1x16x16xbf16>
    %61 = vector.shape_cast %57 : vector<16x16xbf16> to vector<1x16x16xbf16>
    %62 = vector.shape_cast %58 : vector<16x16xbf16> to vector<1x16x16xbf16>
    %63 = tpu.concatenate %59, %60, %61, %62 in 0 : vector<1x16x16xbf16>, vector<1x16x16xbf16>, vector<1x16x16xbf16>, vector<1x16x16xbf16> -> vector<4x16x16xbf16>
    %cst_15 = arith.constant dense<0.000000e+00> : vector<4x16x16xf32>
    %64 = tpu.matmul %45, %54, %cst_15 {dimension_numbers = #tpu.dot_dimension_numbers<[2], [2], [1], [1], [0, 0, 0, 1, 1, 1], [0], [0]>} : vector<4x16x16xbf16>, vector<4x16x16xbf16>, vector<4x16x16xf32> -> vector<4x16x16xf32>
    %cst_16 = arith.constant 2.500000e-01 : f32
    %65 = vector.broadcast %cst_16 : f32 to vector<4x16x16xf32>
    %66 = arith.mulf %64, %65 : vector<4x16x16xf32>
    %c0_17 = arith.constant 0 : index
    %c0_18 = arith.constant 0 : index
    %c0_19 = arith.constant 0 : index
    %67 = vector.load %arg2[%c0_17, %c0_18, %c0_19] : memref<1x1x16xf32, #tpu.memory_space<vmem>>, vector<1x1x16xf32>
    %68 = vector.shape_cast %67 : vector<1x1x16xf32> to vector<1x16xf32>
    %69 = vector.shape_cast %68 : vector<1x16xf32> to vector<1x1x16xf32>
    %70 = vector.broadcast %69 : vector<1x1x16xf32> to vector<4x16x16xf32>
    %71 = arith.addf %66, %70 : vector<4x16x16xf32>
    %cst_20 = arith.constant dense<0xFF800000> : vector<4x16xf32>
    %72 = vector.multi_reduction <maximumf>, %71, %cst_20 [2] : vector<4x16x16xf32> to vector<4x16xf32>
    %73 = vector.shape_cast %72 : vector<4x16xf32> to vector<4x16x1xf32>
    %74 = vector.broadcast %73 : vector<4x16x1xf32> to vector<4x16x16xf32>
    %75 = arith.subf %71, %74 : vector<4x16x16xf32>
    %76 = math.exp %75 : vector<4x16x16xf32>
    %cst_21 = arith.constant dense<0.000000e+00> : vector<4x16xf32>
    %77 = vector.multi_reduction <add>, %76, %cst_21 [2] : vector<4x16x16xf32> to vector<4x16xf32>
    %78 = vector.shape_cast %77 : vector<4x16xf32> to vector<4x16x1xf32>
    %79 = tpu.reciprocal %78 {approx = true} : vector<4x16x1xf32> -> vector<4x16x1xf32>
    %80 = vector.broadcast %79 : vector<4x16x1xf32> to vector<4x16x16xf32>
    %81 = arith.mulf %76, %80 : vector<4x16x16xf32>
    %82 = arith.truncf %81 : vector<4x16x16xf32> to vector<4x16x16xbf16>
    %cst_22 = arith.constant dense<0.000000e+00> : vector<4x16x16xf32>
    %83 = tpu.matmul %82, %63, %cst_22 {dimension_numbers = #tpu.dot_dimension_numbers<[2], [1], [1], [2], [0, 0, 0, 1, 1, 2], [0], [0]>} : vector<4x16x16xbf16>, vector<4x16x16xbf16>, vector<4x16x16xf32> -> vector<4x16x16xf32>
    %84 = vector.extract_strided_slice %83 {offsets = [0, 0, 0], sizes = [1, 16, 16], strides = [1, 1, 1]} : vector<4x16x16xf32> to vector<1x16x16xf32>
    %85 = vector.shape_cast %84 : vector<1x16x16xf32> to vector<16x16xf32>
    %86 = vector.extract_strided_slice %83 {offsets = [1, 0, 0], sizes = [1, 16, 16], strides = [1, 1, 1]} : vector<4x16x16xf32> to vector<1x16x16xf32>
    %87 = vector.shape_cast %86 : vector<1x16x16xf32> to vector<16x16xf32>
    %88 = vector.extract_strided_slice %83 {offsets = [2, 0, 0], sizes = [1, 16, 16], strides = [1, 1, 1]} : vector<4x16x16xf32> to vector<1x16x16xf32>
    %89 = vector.shape_cast %88 : vector<1x16x16xf32> to vector<16x16xf32>
    %90 = vector.extract_strided_slice %83 {offsets = [3, 0, 0], sizes = [1, 16, 16], strides = [1, 1, 1]} : vector<4x16x16xf32> to vector<1x16x16xf32>
    %91 = vector.shape_cast %90 : vector<1x16x16xf32> to vector<16x16xf32>
    %92 = tpu.concatenate %85, %87, %89, %91 in 1 : vector<16x16xf32>, vector<16x16xf32>, vector<16x16xf32>, vector<16x16xf32> -> vector<16x64xf32>
    %93 = arith.truncf %92 : vector<16x64xf32> to vector<16x64xbf16>
    %c0_23 = arith.constant 0 : index
    %c0_24 = arith.constant 0 : index
    %94 = vector.load %arg7[%c0_23, %c0_24] : memref<64x64xbf16, #tpu.memory_space<vmem>>, vector<64x64xbf16>
    %cst_25 = arith.constant dense<0.000000e+00> : vector<16x64xf32>
    %95 = tpu.matmul %93, %94, %cst_25 {dimension_numbers = #tpu.dot_dimension_numbers<[1], [0], [0], [1], [0, 0, 1, 1], [], []>} : vector<16x64xbf16>, vector<64x64xbf16>, vector<16x64xf32> -> vector<16x64xf32>
    %96 = arith.addf %2, %95 : vector<16x64xf32>
    %c0_26 = arith.constant 0 : index
    %c0_27 = arith.constant 0 : index
    %97 = vector.load %arg8[%c0_26, %c0_27] : memref<1x64xbf16, #tpu.memory_space<vmem>>, vector<1x64xbf16>
    %98 = arith.extf %97 : vector<1x64xbf16> to vector<1x64xf32>
    %99 = vector.broadcast %98 : vector<1x64xf32> to vector<16x64xf32>
    %100 = arith.addf %96, %99 : vector<16x64xf32>
    %c0_28 = arith.constant 0 : index
    %c0_29 = arith.constant 0 : index
    %101 = vector.load %arg9[%c0_28, %c0_29] : memref<1x64xbf16, #tpu.memory_space<vmem>>, vector<1x64xbf16>
    %102 = arith.extf %101 : vector<1x64xbf16> to vector<1x64xf32>
    %c0_30 = arith.constant 0 : index
    %c0_31 = arith.constant 0 : index
    %103 = vector.load %arg10[%c0_30, %c0_31] : memref<1x64xbf16, #tpu.memory_space<vmem>>, vector<1x64xbf16>
    %104 = arith.extf %103 : vector<1x64xbf16> to vector<1x64xf32>
    %cst_32 = arith.constant dense<0.000000e+00> : vector<16xf32>
    %105 = vector.multi_reduction <add>, %100, %cst_32 [1] : vector<16x64xf32> to vector<16xf32>
    %106 = vector.shape_cast %105 : vector<16xf32> to vector<16x1xf32>
    %cst_33 = arith.constant 6.400000e+01 : f32
    %107 = vector.broadcast %cst_33 : f32 to vector<16x1xf32>
    %108 = arith.divf %106, %107 : vector<16x1xf32>
    %109 = vector.broadcast %108 : vector<16x1xf32> to vector<16x64xf32>
    %110 = arith.subf %100, %109 : vector<16x64xf32>
    %111 = arith.mulf %110, %110 : vector<16x64xf32>
    %cst_34 = arith.constant dense<0.000000e+00> : vector<16xf32>
    %112 = vector.multi_reduction <add>, %111, %cst_34 [1] : vector<16x64xf32> to vector<16xf32>
    %113 = vector.shape_cast %112 : vector<16xf32> to vector<16x1xf32>
    %cst_35 = arith.constant 6.400000e+01 : f32
    %114 = vector.broadcast %cst_35 : f32 to vector<16x1xf32>
    %115 = arith.divf %113, %114 : vector<16x1xf32>
    %116 = vector.broadcast %108 : vector<16x1xf32> to vector<16x64xf32>
    %117 = arith.subf %100, %116 : vector<16x64xf32>
    %cst_36 = arith.constant 9.99999974E-6 : f32
    %118 = vector.broadcast %cst_36 : f32 to vector<16x1xf32>
    %119 = arith.addf %115, %118 : vector<16x1xf32>
    %120 = math.rsqrt %119 : vector<16x1xf32>
    %121 = vector.broadcast %120 : vector<16x1xf32> to vector<16x64xf32>
    %122 = arith.mulf %117, %121 : vector<16x64xf32>
    %123 = vector.broadcast %102 : vector<1x64xf32> to vector<16x64xf32>
    %124 = arith.mulf %122, %123 : vector<16x64xf32>
    %125 = vector.broadcast %104 : vector<1x64xf32> to vector<16x64xf32>
    %126 = arith.addf %124, %125 : vector<16x64xf32>
    %127 = arith.truncf %126 : vector<16x64xf32> to vector<16x64xbf16>
    %c0_37 = arith.constant 0 : index
    %c0_38 = arith.constant 0 : index
    %128 = vector.load %arg11[%c0_37, %c0_38] : memref<64x256xbf16, #tpu.memory_space<vmem>>, vector<64x256xbf16>
    %cst_39 = arith.constant dense<0.000000e+00> : vector<16x256xf32>
    %129 = tpu.matmul %127, %128, %cst_39 {dimension_numbers = #tpu.dot_dimension_numbers<[1], [0], [0], [1], [0, 0, 1, 1], [], []>} : vector<16x64xbf16>, vector<64x256xbf16>, vector<16x256xf32> -> vector<16x256xf32>
    %c0_40 = arith.constant 0 : index
    %c0_41 = arith.constant 0 : index
    %130 = vector.load %arg12[%c0_40, %c0_41] : memref<1x256xbf16, #tpu.memory_space<vmem>>, vector<1x256xbf16>
    %131 = arith.extf %130 : vector<1x256xbf16> to vector<1x256xf32>
    %132 = vector.broadcast %131 : vector<1x256xf32> to vector<16x256xf32>
    %133 = arith.addf %129, %132 : vector<16x256xf32>
    %cst_42 = arith.constant 0.000000e+00 : f32
    %134 = vector.broadcast %cst_42 : f32 to vector<16x256xf32>
    %135 = arith.subf %134, %133 : vector<16x256xf32>
    %136 = math.exp %135 : vector<16x256xf32>
    %cst_43 = arith.constant 1.000000e+00 : f32
    %137 = vector.broadcast %cst_43 : f32 to vector<16x256xf32>
    %138 = arith.addf %137, %136 : vector<16x256xf32>
    %139 = arith.divf %133, %138 : vector<16x256xf32>
    %140 = arith.truncf %139 : vector<16x256xf32> to vector<16x256xbf16>
    %c0_44 = arith.constant 0 : index
    %c0_45 = arith.constant 0 : index
    %141 = vector.load %arg13[%c0_44, %c0_45] : memref<256x64xbf16, #tpu.memory_space<vmem>>, vector<256x64xbf16>
    %cst_46 = arith.constant dense<0.000000e+00> : vector<16x64xf32>
    %142 = tpu.matmul %140, %141, %cst_46 {dimension_numbers = #tpu.dot_dimension_numbers<[1], [0], [0], [1], [0, 0, 1, 1], [], []>} : vector<16x256xbf16>, vector<256x64xbf16>, vector<16x64xf32> -> vector<16x64xf32>
    %143 = arith.addf %100, %142 : vector<16x64xf32>
    %c0_47 = arith.constant 0 : index
    %c0_48 = arith.constant 0 : index
    %144 = vector.load %arg14[%c0_47, %c0_48] : memref<1x64xbf16, #tpu.memory_space<vmem>>, vector<1x64xbf16>
    %145 = arith.extf %144 : vector<1x64xbf16> to vector<1x64xf32>
    %146 = vector.broadcast %145 : vector<1x64xf32> to vector<16x64xf32>
    %147 = arith.addf %143, %146 : vector<16x64xf32>
    %148 = vector.shape_cast %147 : vector<16x64xf32> to vector<1x16x64xf32>
    %149 = arith.truncf %148 : vector<1x16x64xf32> to vector<1x16x64xbf16>
    %c0_49 = arith.constant 0 : index
    %c0_50 = arith.constant 0 : index
    %c0_51 = arith.constant 0 : index
    %150 = vector.load %arg15[%c0_49, %c0_50, %c0_51] : memref<1x16x64xbf16, #tpu.memory_space<vmem>>, vector<1x16x64xbf16>
    tpu.vector_store %arg15[%c0_49, %c0_50, %c0_51], %149 {strides = array<i32>} : memref<1x16x64xbf16, #tpu.memory_space<vmem>>, vector<1x16x64xbf16>,
    return
  }
  func.func @transform_0(%arg0: i32) -> (i32, i32, i32) {
    %c0_i32 = arith.constant 0 : i32
    %c0_i32_0 = arith.constant 0 : i32
    %c0_i32_1 = arith.constant 0 : i32
    return %arg0, %c0_i32, %c0_i32_0 : i32, i32, i32
  }
  func.func @transform_1(%arg0: i32) -> (i32, i32, i32) {
    %c0_i32 = arith.constant 0 : i32
    %c0_i32_0 = arith.constant 0 : i32
    %c0_i32_1 = arith.constant 0 : i32
    return %arg0, %c0_i32, %c0_i32_0 : i32, i32, i32
  }
  func.func @transform_2(%arg0: i32) -> (i32, i32) {
    %c0_i32 = arith.constant 0 : i32
    %c0_i32_0 = arith.constant 0 : i32
    %c0_i32_1 = arith.constant 0 : i32
    return %c0_i32, %c0_i32_0 : i32, i32
  }
  func.func @transform_3(%arg0: i32) -> (i32, i32) {
    %c0_i32 = arith.constant 0 : i32
    %c0_i32_0 = arith.constant 0 : i32
    %c0_i32_1 = arith.constant 0 : i32
    return %c0_i32, %c0_i32_0 : i32, i32
  }
  func.func @transform_4(%arg0: i32) -> (i32, i32) {
    %c0_i32 = arith.constant 0 : i32
    %c0_i32_0 = arith.constant 0 : i32
    %c0_i32_1 = arith.constant 0 : i32
    return %c0_i32, %c0_i32_0 : i32, i32
  }
  func.func @transform_5(%arg0: i32) -> (i32, i32) {
    %c0_i32 = arith.constant 0 : i32
    %c0_i32_0 = arith.constant 0 : i32
    %c0_i32_1 = arith.constant 0 : i32
    return %c0_i32, %c0_i32_0 : i32, i32
  }
  func.func @transform_6(%arg0: i32) -> (i32, i32) {
    %c0_i32 = arith.constant 0 : i32
    %c0_i32_0 = arith.constant 0 : i32
    %c0_i32_1 = arith.constant 0 : i32
    return %c0_i32, %c0_i32_0 : i32, i32
  }
  func.func @transform_7(%arg0: i32) -> (i32, i32) {
    %c0_i32 = arith.constant 0 : i32
    %c0_i32_0 = arith.constant 0 : i32
    %c0_i32_1 = arith.constant 0 : i32
    return %c0_i32, %c0_i32_0 : i32, i32
  }
  func.func @transform_8(%arg0: i32) -> (i32, i32) {
    %c0_i32 = arith.constant 0 : i32
    %c0_i32_0 = arith.constant 0 : i32
    %c0_i32_1 = arith.constant 0 : i32
    return %c0_i32, %c0_i32_0 : i32, i32
  }
  func.func @transform_9(%arg0: i32) -> (i32, i32) {
    %c0_i32 = arith.constant 0 : i32
    %c0_i32_0 = arith.constant 0 : i32
    %c0_i32_1 = arith.constant 0 : i32
    return %c0_i32, %c0_i32_0 : i32, i32
  }
  func.func @transform_10(%arg0: i32) -> (i32, i32) {
    %c0_i32 = arith.constant 0 : i32
    %c0_i32_0 = arith.constant 0 : i32
    %c0_i32_1 = arith.constant 0 : i32
    return %c0_i32, %c0_i32_0 : i32, i32
  }
  func.func @transform_11(%arg0: i32) -> (i32, i32) {
    %c0_i32 = arith.constant 0 : i32
    %c0_i32_0 = arith.constant 0 : i32
    %c0_i32_1 = arith.constant 0 : i32
    return %c0_i32, %c0_i32_0 : i32, i32
  }
  func.func @transform_12(%arg0: i32) -> (i32, i32) {
    %c0_i32 = arith.constant 0 : i32
    %c0_i32_0 = arith.constant 0 : i32
    %c0_i32_1 = arith.constant 0 : i32
    return %c0_i32, %c0_i32_0 : i32, i32
  }
  func.func @transform_13(%arg0: i32) -> (i32, i32) {
    %c0_i32 = arith.constant 0 : i32
    %c0_i32_0 = arith.constant 0 : i32
    %c0_i32_1 = arith.constant 0 : i32
    return %c0_i32, %c0_i32_0 : i32, i32
  }
  func.func @transform_14(%arg0: i32) -> (i32, i32, i32) {
    %c0_i32 = arith.constant 0 : i32
    %c0_i32_0 = arith.constant 0 : i32
    %c0_i32_1 = arith.constant 0 : i32
    return %arg0, %c0_i32, %c0_i32_0 : i32, i32, i32
  }
}

module attributes {stable_mosaic.version = 11 : i64} {
  func.func @_ln_vq_kernel(%arg0: i32, %arg1: memref<32x64xbf16, #tpu.memory_space<vmem>>, %arg2: memref<256x64xbf16, #tpu.memory_space<vmem>>, %arg3: memref<256x1xf32, #tpu.memory_space<vmem>>, %arg4: memref<1x32xi32, #tpu.memory_space<vmem>>) attributes {dimension_semantics = [#tpu.dimension_semantics<parallel>], iteration_bounds = array<i64: 1>, scalar_prefetch = 0 : i64, scratch_operands = 0 : i64, tpu.core_type = #tpu.core_type<tc>, window_params = [{transform_indices = @transform_0, window_bounds = array<i64: 32, 64>}, {pipeline_mode = #tpu.pipeline_mode<synchronous>, transform_indices = @transform_1, window_bounds = array<i64: 256, 64>}, {pipeline_mode = #tpu.pipeline_mode<synchronous>, transform_indices = @transform_2, window_bounds = array<i64: 256, 1>}, {transform_indices = @transform_3, window_bounds = array<i64: 1, 32>}]} {
    %c0 = arith.constant 0 : index
    %c0_0 = arith.constant 0 : index
    %0 = vector.load %arg1[%c0, %c0_0] : memref<32x64xbf16, #tpu.memory_space<vmem>>, vector<32x64xbf16>
    %1 = arith.extf %0 : vector<32x64xbf16> to vector<32x64xf32>
    %cst = arith.constant dense<0.000000e+00> : vector<32xf32>
    %2 = vector.multi_reduction <add>, %1, %cst [1] : vector<32x64xf32> to vector<32xf32>
    %3 = vector.shape_cast %2 : vector<32xf32> to vector<32x1xf32>
    %cst_1 = arith.constant 6.400000e+01 : f32
    %4 = vector.broadcast %cst_1 : f32 to vector<32x1xf32>
    %5 = arith.divf %3, %4 : vector<32x1xf32>
    %6 = vector.broadcast %5 : vector<32x1xf32> to vector<32x64xf32>
    %7 = arith.subf %1, %6 : vector<32x64xf32>
    %8 = arith.mulf %7, %7 : vector<32x64xf32>
    %cst_2 = arith.constant dense<0.000000e+00> : vector<32xf32>
    %9 = vector.multi_reduction <add>, %8, %cst_2 [1] : vector<32x64xf32> to vector<32xf32>
    %10 = vector.shape_cast %9 : vector<32xf32> to vector<32x1xf32>
    %cst_3 = arith.constant 6.400000e+01 : f32
    %11 = vector.broadcast %cst_3 : f32 to vector<32x1xf32>
    %12 = arith.divf %10, %11 : vector<32x1xf32>
    %13 = vector.broadcast %5 : vector<32x1xf32> to vector<32x64xf32>
    %14 = arith.subf %1, %13 : vector<32x64xf32>
    %cst_4 = arith.constant 9.99999974E-6 : f32
    %15 = vector.broadcast %cst_4 : f32 to vector<32x1xf32>
    %16 = arith.addf %12, %15 : vector<32x1xf32>
    %17 = math.rsqrt %16 : vector<32x1xf32>
    %18 = vector.broadcast %17 : vector<32x1xf32> to vector<32x64xf32>
    %19 = arith.mulf %14, %18 : vector<32x64xf32>
    %20 = arith.truncf %19 : vector<32x64xf32> to vector<32x64xbf16>
    %c0_5 = arith.constant 0 : index
    %c0_6 = arith.constant 0 : index
    %21 = vector.load %arg3[%c0_5, %c0_6] : memref<256x1xf32, #tpu.memory_space<vmem>>, vector<256x1xf32>
    %c0_7 = arith.constant 0 : index
    %c0_8 = arith.constant 0 : index
    %22 = vector.load %arg2[%c0_7, %c0_8] : memref<256x64xbf16, #tpu.memory_space<vmem>>, vector<256x64xbf16>
    %cst_9 = arith.constant dense<0.000000e+00> : vector<256x32xf32>
    %23 = tpu.matmul %22, %20, %cst_9 {dimension_numbers = #tpu.dot_dimension_numbers<[1], [1], [0], [0], [0, 0, 1, 0], [], []>} : vector<256x64xbf16>, vector<32x64xbf16>, vector<256x32xf32> -> vector<256x32xf32>
    %cst_10 = arith.constant 2.000000e+00 : f32
    %24 = vector.broadcast %cst_10 : f32 to vector<256x32xf32>
    %25 = arith.mulf %24, %23 : vector<256x32xf32>
    %26 = vector.broadcast %21 : vector<256x1xf32> to vector<256x32xf32>
    %27 = arith.subf %26, %25 : vector<256x32xf32>
    %28 = tpu.iota {dimensions = array<i32: 0>} : vector<256x32xi32>
    %cst_11 = arith.constant dense<0x7F800000> : vector<32xf32>
    %29 = vector.multi_reduction <minimumf>, %27, %cst_11 [0] : vector<256x32xf32> to vector<32xf32>
    %30 = vector.shape_cast %29 : vector<32xf32> to vector<1x32xf32>
    %31 = vector.broadcast %30 : vector<1x32xf32> to vector<256x32xf32>
    %32 = arith.cmpf oeq, %27, %31 : vector<256x32xf32>
    %c256_i32 = arith.constant 256 : i32
    %33 = vector.broadcast %c256_i32 : i32 to vector<256x32xi32>
    %34 = arith.select %32, %28, %33 : vector<256x32xi1>, vector<256x32xi32>
    %35 = arith.sitofp %34 : vector<256x32xi32> to vector<256x32xf32>
    %cst_12 = arith.constant dense<0x7F800000> : vector<32xf32>
    %36 = vector.multi_reduction <minimumf>, %35, %cst_12 [0] : vector<256x32xf32> to vector<32xf32>
    %37 = vector.shape_cast %36 : vector<32xf32> to vector<1x32xf32>
    %38 = arith.fptosi %37 : vector<1x32xf32> to vector<1x32xi32>
    %c0_13 = arith.constant 0 : index
    %c0_14 = arith.constant 0 : index
    %39 = vector.load %arg4[%c0_13, %c0_14] : memref<1x32xi32, #tpu.memory_space<vmem>>, vector<1x32xi32>
    tpu.vector_store %arg4[%c0_13, %c0_14], %38 {strides = array<i32>} : memref<1x32xi32, #tpu.memory_space<vmem>>, vector<1x32xi32>,
    return
  }
  func.func @transform_0(%arg0: i32) -> (i32, i32) {
    %c0_i32 = arith.constant 0 : i32
    %c0_i32_0 = arith.constant 0 : i32
    return %arg0, %c0_i32 : i32, i32
  }
  func.func @transform_1(%arg0: i32) -> (i32, i32) {
    %c0_i32 = arith.constant 0 : i32
    %c0_i32_0 = arith.constant 0 : i32
    %c0_i32_1 = arith.constant 0 : i32
    return %c0_i32, %c0_i32_0 : i32, i32
  }
  func.func @transform_2(%arg0: i32) -> (i32, i32) {
    %c0_i32 = arith.constant 0 : i32
    %c0_i32_0 = arith.constant 0 : i32
    %c0_i32_1 = arith.constant 0 : i32
    return %c0_i32, %c0_i32_0 : i32, i32
  }
  func.func @transform_3(%arg0: i32) -> (i32, i32) {
    %c0_i32 = arith.constant 0 : i32
    %c0_i32_0 = arith.constant 0 : i32
    return %c0_i32, %arg0 : i32, i32
  }
}

</mosaic_0001>

<bundles_post_ra>
// kernel: wav2vec_bert_encoder_forward.5
= control target key start
LH: loop header
LB: loop body
LE: loop exit
PB: predicated region body
PF: predicated region fallthrough
CT: control target
= control target key end

     0   :  { %s550_s12 = smov 0   ;;  %s589_s0 = inlined_call_operand.vmem [shape: f32[2,16,128], index: 0, kind: input, shape index: {}]   ;;  %s590_s1 = inlined_call_operand.vmem [shape: bf16[64,128], index: 1, kind: input, shape index: {}]   ;;  %s591_s2 = inlined_call_operand.vmem [shape: bf16[1,128], index: 2, kind: input, shape index: {}]   ;;  %s592_s3 = inlined_call_operand.vmem [shape: bf16[2,16,256], index: 3, kind: output, shape index: {}]  }
   0x1 LB: > { %s437_s13 = sadd.s32 4294967295, %s525_s12   ;;  %p441_p0 = scmp.ge.s32.totalorder %s525_s12, 1  ;;  %s525_s12 = sphi %s550_s12, %s13_s12  }
   0x2   : > { %p137_p1 = scmp.lt.s32.totalorder %s525_s12, 3 }
   0x4   : > { %p138_p2 = pnand %p441_p0, %p137_p1 }
   0x5   : > { %p161_p3 = scmp.lt.s32.totalorder (!%p138_p2), %s437_s13, 1  ;;  %v505_v0 = vld [vmem:[%s590_s1] sm:$0xff] (!%p138_p2)   ;;  %v527_v1 = vmov (!%p138_p2), 0.0   ;;  %v506_v2 = vld [vmem:[%s590_s1 + $0x8] sm:$0xff] (!%p138_p2)   ;;  %vm528_vm0 = vmmov (!%p138_p2), 0   ;;  %v507_v5 = vld [vmem:[%s590_s1 + $0x10] sm:$0xff] (!%p138_p2)   ;;  %v185_v9 = vlaneseq (!%p138_p2) }
   0x6   : > { %141 = sbr.rel (%p138_p2) target bundleno = 425 (0x1a9), region = 32  ;;  %470 = vmatprep.subr.bf16.mxu0 (!%p138_p2), %v527_v1  ;;  %482 = vmatprep.subr.bf16.mxu1 (!%p138_p2), %v527_v1  ;;  %s529_s24 = smov (!%p138_p2), 64   ;;  %v508_v7 = vld [vmem:[%s590_s1 + $0x18] sm:$0xff] (!%p138_p2)   ;;  %vm213_vm1 = vcmask (!%p138_p2), 523264   ;;  %v183_v11 = vld [vmem:[%s591_s2] sm:$0x1] (!%p138_p2) }
   0x7   : > { %471 = vmatpush3.bf16.msra.mxu0 (!%p138_p2), %v505_v0  ;;  %483 = vmatpush3.bf16.msra.mxu1 (!%p138_p2), %v505_v0  ;;  %v186_v10 = vshrl.u32 (!%p138_p2), %v185_v9, 7  ;;  %v184_v12 = vunpack.c.l.bf16 (!%p138_p2), %v183_v11 }
   0x8   : > { %472 = vmatprep.subr.bf16.mxu0 (!%p138_p2), %v527_v1  ;;  %484 = vmatprep.subr.bf16.mxu1 (!%p138_p2), %v527_v1 }
   0x9   : > { %478 = vmatprep.mubr.msk.bf16.mxu0 (!%p138_p2), %vm528_vm0, %v527_v1  ;;  %490 = vmatprep.mubr.msk.bf16.mxu1 (!%p138_p2), %vm528_vm0, %v527_v1  ;;  %v187_v13 = vsub.s32 (!%p138_p2), 0, %v186_v10 }
   0xb   : > { %473 = vmatpush3.bf16.msra.mxu0 (!%p138_p2), %v506_v2  ;;  %485 = vmatpush3.bf16.msra.mxu1 (!%p138_p2), %v506_v2  ;;  %v188_v14 = vrot.slane (!%p138_p2), %v184_v12, %v187_v13 }
   0xc   : > { %474 = vmatprep.subr.bf16.mxu0 (!%p138_p2), %v527_v1  ;;  %486 = vmatprep.subr.bf16.mxu1 (!%p138_p2), %v527_v1 }
   0xd   : > { %s594_s13 = smov (!%p161_p3, %s437_s13), 1 }
   0xe   : > { %s456_s18 = sshll.u32 %s594_s13, 4 }
   0xf   : > { %s165_s21 = scalar_lea.vmem %s589_s0, %s456_s18  ;;  %475 = vmatpush3.bf16.msra.mxu0 %v507_v5  ;;  %487 = vmatpush3.bf16.msra.mxu1 %v507_v5  ;;  %s170_s4 = scalar_lea.vmem %s592_s3, %s456_s18 }
  0x10   : > { %v172_v3 = vld [vmem:[%s165_s21] sm:$0xff]  ;;  %v173_v4 = vld [vmem:[%s165_s21 + $0x8] sm:$0xff]  ;;  %476 = vmatprep.subr.bf16.mxu0 %v527_v1  ;;  %488 = vmatprep.subr.bf16.mxu1 %v527_v1 }
  0x11   : > { %v174_v6 = vpack.c.bf16 %v173_v4, %v172_v3 }
  0x13   : > { %259 = vrot.lane.b32.xlu0 %v174_v6, %s529_s24  ;;  %477 = vmatpush3.bf16.msra.mxu0 %v508_v7 }
  0x14   : > { %489 = vmatpush3.bf16.msra.mxu1 %v508_v7 }
  0x16   : > { %479 = vmatmul.mubr.msk.bf16.vlgmr.msra.gmra.mrb[0].mxu0 %vm213_vm1, %v174_v6 }
  0x85   : > { %v260_v8 = vpop.permute.xlu0 %259 }
  0x86   : > { %491 = vmatmul.mubr.msk.bf16.vlgmr.msra.gmra.mrb[0].mxu1 %vm213_vm1, %v260_v8 }
  0xe9   : > { %v251_v15 = vpop.f32.mrb[0].mxu0 }
  0xea   : > { %v252_v16 = vadd.f32 %v251_v15, %v188_v14  ;;  %v480_v17 = vpop.f32.mrb[1].mxu0 }
  0xeb   : > { %v254_v18 = vpop.f32.mrb[2].mxu0 }
  0xec   : > { %v305_v19 = vand.u32 2147483647, %v252_v16  ;;  %v255_v20 = vadd.f32 %v254_v18, %v188_v14  ;;  %v481_v21 = vpop.f32.mrb[3].mxu0 }
  0xee   : > { %v307_v22 = vadd.f32 1e-06, %v305_v19  ;;  %v306_v23 = vand.u32 2147483647, %v255_v20 }
  0xf0   : > { %509 = vlog2.f32 %v307_v22  ;;  %v308_v24 = vadd.f32 1e-06, %v306_v23 }
  0xf2   : > { %511 = vlog2.f32 %v308_v24 }
  0xfa   : > { %v510_v25 = vpop.eup %509 }
  0xfb   : > { %v310_v26 = vmul.f32 0.6931472, %v510_v25 }
  0xfc   : > { %v512_v27 = vpop.eup %511 }
  0xfd   : > { %v312_v28 = vmul.f32 0.6931472, %v512_v27 }
  0xff   : > { %v321_v29 = vadd.f32 %v312_v28, %v310_v26 }
 0x101   : > { %v322_v40 = vrot.slane %v321_v29, 4 }
 0x103   : > { %v323_v42 = vadd.f32 %v322_v40, %v321_v29 }
 0x105   : > { %v324_v46 = vrot.slane %v323_v42, 2 }
 0x107   : > { %v325_v49 = vadd.f32 %v324_v46, %v323_v42 }
 0x109   : > { %v326_v52 = vrot.slane %v325_v49, 1 }
 0x10b   : > { %v327_v55 = vadd.f32 %v326_v52, %v325_v49 }
 0x159   : > { %v298_v30 = vpop.f32.mrb[0].mxu1 }
 0x15a   : > { %v299_v31 = vadd.f32 %v298_v30, %v188_v14  ;;  %v492_v32 = vpop.f32.mrb[1].mxu1 }
 0x15b   : > { %v301_v33 = vpop.f32.mrb[2].mxu1 }
 0x15c   : > { %v313_v34 = vand.u32 2147483647, %v299_v31  ;;  %v302_v35 = vadd.f32 %v301_v33, %v188_v14  ;;  %v493_v36 = vpop.f32.mrb[3].mxu1 }
 0x15e   : > { %v315_v37 = vadd.f32 1e-06, %v313_v34  ;;  %v314_v38 = vand.u32 2147483647, %v302_v35 }
 0x160   : > { %513 = vlog2.f32 %v315_v37  ;;  %v316_v39 = vadd.f32 1e-06, %v314_v38 }
 0x162   : > { %515 = vlog2.f32 %v316_v39 }
 0x16a   : > { %v514_v41 = vpop.eup %513 }
 0x16b   : > { %v318_v44 = vmul.f32 0.6931472, %v514_v41 }
 0x16c   : > { %v516_v43 = vpop.eup %515 }
 0x16d   : > { %v320_v45 = vmul.f32 0.6931472, %v516_v43 }
 0x16f   : > { %v328_v47 = vadd.f32 %v320_v45, %v318_v44 }
 0x171   : > { %v329_v48 = vrot.slane %v328_v47, 4 }
 0x173   : > { %v330_v50 = vadd.f32 %v329_v48, %v328_v47 }
 0x175   : > { %v331_v51 = vrot.slane %v330_v50, 2 }
 0x177   : > { %v332_v53 = vadd.f32 %v331_v51, %v330_v50 }
 0x179   : > { %v333_v54 = vrot.slane %v332_v53, 1 }
 0x17b   : > { %v334_v56 = vadd.f32 %v333_v54, %v332_v53 }
 0x17d   : > { %v335_v57 = vadd.f32 %v334_v56, %v327_v55 }
 0x17f   : > { %v337_v58 = vmul.f32 0.03125, %v335_v57 }
 0x181   : > { %v338_v59 = vsub.f32 %v310_v26, %v337_v58  ;;  %v339_v60 = vsub.f32 %v312_v28, %v337_v58  ;;  %v349_v61 = vsub.f32 %v318_v44, %v337_v58  ;;  %v350_v62 = vsub.f32 %v320_v45, %v337_v58 }
 0x183   : > { %v340_v63 = vmul.f32 %v338_v59, %v338_v59  ;;  %v341_v0 = vmul.f32 %v339_v60, %v339_v60  ;;  %v351_v1 = vmul.f32 %v349_v61, %v349_v61  ;;  %v352_v2 = vmul.f32 %v350_v62, %v350_v62 }
 0x185   : > { %v342_v3 = vadd.f32 %v341_v0, %v340_v63  ;;  %v353_v4 = vadd.f32 %v352_v2, %v351_v1 }
 0x187   : > { %v343_v5 = vrot.slane %v342_v3, 4  ;;  %v354_v6 = vrot.slane %v353_v4, 4 }
 0x189   : > { %v344_v7 = vadd.f32 %v343_v5, %v342_v3  ;;  %v355_v8 = vadd.f32 %v354_v6, %v353_v4 }
 0x18b   : > { %v345_v9 = vrot.slane %v344_v7, 2  ;;  %v356_v10 = vrot.slane %v355_v8, 2 }
 0x18d   : > { %v346_v11 = vadd.f32 %v345_v9, %v344_v7  ;;  %v357_v12 = vadd.f32 %v356_v10, %v355_v8 }
 0x18f   : > { %v347_v13 = vrot.slane %v346_v11, 1  ;;  %v358_v14 = vrot.slane %v357_v12, 1 }
 0x191   : > { %v348_v15 = vadd.f32 %v347_v13, %v346_v11  ;;  %v359_v16 = vadd.f32 %v358_v14, %v357_v12 }
 0x193   : > { %v360_v17 = vadd.f32 %v359_v16, %v348_v15 }
 0x195   : > { %v361_v18 = vmul.f32 0.03125, %v360_v17 }
 0x197   : > { %v362_v19 = vadd.f32 1e-07, %v361_v18 }
 0x199   : > { %517 = vrsqrt.f32 %v362_v19 }
 0x1a3   : > { %v518_v20 = vpop.eup %517 }
 0x1a4   : > { %v364_v21 = vmul.f32 %v518_v20, %v338_v59  ;;  %v365_v22 = vmul.f32 %v518_v20, %v339_v60  ;;  %v366_v23 = vmul.f32 %v518_v20, %v349_v61  ;;  %v367_v24 = vmul.f32 %v518_v20, %v350_v62 }
 0x1a6   : > { %v458_v25 = vpack.c.bf16 %v366_v23, %v364_v21  ;;  %v459_v26 = vpack.c.bf16 %v367_v24, %v365_v22 }
 0x1a8   : > { %380 = vst [vmem:[%s170_s4] sm:$0xff] %v458_v25  ;;  %381 = vst [vmem:[%s170_s4 + $0x8] sm:$0xff] %v459_v26 }
 0x1a9 PF: > { %s13_s12 = sadd.s32 1, %s525_s12  }
 0x1aa   : > { %p10_p4 = scmp.ge.s32.totalorder %s13_s12, 4  }
 0x1ac   :  { %12 = sbr.rel (!%p10_p4) target bundleno = 1 (0x1), region = 62 }

// kernel: wav2vec_bert_encoder_forward.6
= control target key start
LH: loop header
LB: loop body
LE: loop exit
PB: predicated region body
PF: predicated region fallthrough
CT: control target
= control target key end

     0   :  { %vm371_vm0 = vcmask 519168   ;;  %s651_s0 = inlined_call_operand.vmem [shape: bf16[32,256], index: 0, kind: input, shape index: {}]   ;;  %s652_s3 = inlined_call_operand.vmem [shape: bf16[256,64], index: 3, kind: input, shape index: {}]   ;;  %s653_s1 = inlined_call_operand.vmem [shape: bf16[1,256], index: 1, kind: input, shape index: {}]   ;;  %s654_s2 = inlined_call_operand.vmem [shape: bf16[1,256], index: 2, kind: input, shape index: {}]   ;;  %s655_s4 = inlined_call_operand.vmem [shape: bf16[1,64], index: 4, kind: input, shape index: {}]   ;;  %s656_s5 = inlined_call_operand.vmem [shape: bf16[32,64], index: 5, kind: output, shape index: {}]  }
   0x1   :  { %v21_v0 = vld [vmem:[%s651_s0] sm:$0xff]  ;;  %v23_v1 = vld [vmem:[%s651_s0 + $0x10] sm:$0xff]  ;;  %v22_v2 = vld [vmem:[%s651_s0 + $0x8] sm:$0xff] }
   0x2   :  { %v25_v3 = vunpack.c.l.bf16 %v21_v0  ;;  %v26_v4 = vunpack.c.h.bf16 %v21_v0  ;;  %v29_v5 = vunpack.c.l.bf16 %v23_v1  ;;  %v30_v6 = vunpack.c.h.bf16 %v23_v1  ;;  %v24_v7 = vld [vmem:[%s651_s0 + $0x18] sm:$0xff]  ;;  %v448_v16 = vld [vmem:[%s652_s3 + $0x40] sm:$0xff]   ;;  %v450_v46 = vld [vmem:[%s652_s3 + $0x48] sm:$0xff]  }
   0x3   :  { %v27_v8 = vunpack.c.l.bf16 %v22_v2  ;;  %v28_v9 = vunpack.c.h.bf16 %v22_v2  ;;  %v31_v10 = vunpack.c.l.bf16 %v24_v7  ;;  %v32_v11 = vunpack.c.h.bf16 %v24_v7  ;;  %v449_v17 = vld [vmem:[%s652_s3] sm:$0xff]   ;;  %404 = vmatprep.subr.bf16.mxu0 %v448_v16  ;;  %432 = vmatprep.subr.bf16.mxu1 %v448_v16  ;;  %v451_v47 = vld [vmem:[%s652_s3 + $0x8] sm:$0xff]   ;;  %v452_v48 = vld [vmem:[%s652_s3 + $0x50] sm:$0xff]  }
   0x4   :  { %v33_v12 = vadd.f32 %v26_v4, %v25_v3  ;;  %v39_v13 = vadd.f32 %v30_v6, %v29_v5  ;;  %405 = vmatpush3.bf16.msra.mxu0 %v449_v17  ;;  %440 = vmatpush3.bf16.msra.mxu1 %v449_v17  ;;  %v453_v49 = vld [vmem:[%s652_s3 + $0x10] sm:$0xff]   ;;  %v454_v50 = vld [vmem:[%s652_s3 + $0x58] sm:$0xff]   ;;  %v456_v52 = vld [vmem:[%s652_s3 + $0x60] sm:$0xff]   ;;  %v113_v1 = vlaneseq }
   0x5   :  { %v36_v14 = vadd.f32 %v28_v9, %v27_v8  ;;  %v42_v15 = vadd.f32 %v32_v11, %v31_v10  ;;  %406 = vmatprep.subr.bf16.mxu0 %v450_v46  ;;  %433 = vmatprep.subr.bf16.mxu1 %v450_v46  ;;  %v455_v51 = vld [vmem:[%s652_s3 + $0x18] sm:$0xff]   ;;  %v457_v53 = vld [vmem:[%s652_s3 + $0x20] sm:$0xff]   ;;  %v458_v54 = vld [vmem:[%s652_s3 + $0x68] sm:$0xff]  }
   0x6   :  { %34 = vadd.xlane.f32.xlu0 %v33_v12  ;;  %40 = vadd.xlane.f32.xlu1 %v39_v13  ;;  %v459_v55 = vld [vmem:[%s652_s3 + $0x28] sm:$0xff]   ;;  %v460_v56 = vld [vmem:[%s652_s3 + $0x70] sm:$0xff]   ;;  %v462_v58 = vld [vmem:[%s652_s3 + $0x78] sm:$0xff]  }
   0x7   :  { %v461_v57 = vld [vmem:[%s652_s3 + $0x30] sm:$0xff]   ;;  %v463_v59 = vld [vmem:[%s652_s3 + $0x38] sm:$0xff]   ;;  %v110_v13 = vld [vmem:[%s653_s1] sm:$0x3] }
   0x8   :  { %407 = vmatpush3.bf16.msra.mxu0 %v451_v47  ;;  %441 = vmatpush3.bf16.msra.mxu1 %v451_v47 }
   0x9   :  { %408 = vmatprep.subr.bf16.mxu0 %v452_v48  ;;  %434 = vmatprep.subr.bf16.mxu1 %v452_v48 }
   0xa   :  { %37 = vadd.xlane.f32.xlu0 %v36_v14  ;;  %43 = vadd.xlane.f32.xlu1 %v42_v15 }
   0xc   :  { %409 = vmatpush3.bf16.msra.mxu0 %v453_v49  ;;  %442 = vmatpush3.bf16.msra.mxu1 %v453_v49 }
   0xd   :  { %410 = vmatprep.subr.bf16.mxu0 %v454_v50  ;;  %435 = vmatprep.subr.bf16.mxu1 %v454_v50 }
  0x10   :  { %411 = vmatpush3.bf16.msra.mxu0 %v455_v51  ;;  %443 = vmatpush3.bf16.msra.mxu1 %v455_v51 }
  0x11   :  { %412 = vmatprep.subr.bf16.mxu0 %v456_v52  ;;  %436 = vmatprep.subr.bf16.mxu1 %v456_v52 }
  0x14   :  { %413 = vmatpush3.bf16.msra.mxu0 %v457_v53  ;;  %444 = vmatpush3.bf16.msra.mxu1 %v457_v53 }
  0x15   :  { %414 = vmatprep.subr.bf16.mxu0 %v458_v54  ;;  %437 = vmatprep.subr.bf16.mxu1 %v458_v54 }
  0x18   :  { %415 = vmatpush3.bf16.msra.mxu0 %v459_v55  ;;  %445 = vmatpush3.bf16.msra.mxu1 %v459_v55 }
  0x19   :  { %416 = vmatprep.subr.bf16.mxu0 %v460_v56  ;;  %438 = vmatprep.subr.bf16.mxu1 %v460_v56 }
  0x1c   :  { %417 = vmatpush3.bf16.msra.mxu0 %v461_v57  ;;  %446 = vmatpush3.bf16.msra.mxu1 %v461_v57 }
  0x1d   :  { %418 = vmatprep.subr.bf16.mxu0 %v462_v58  ;;  %439 = vmatprep.subr.bf16.mxu1 %v462_v58 }
  0x20   :  { %419 = vmatpush3.bf16.msra.mxu0 %v463_v59  ;;  %447 = vmatpush3.bf16.msra.mxu1 %v463_v59 }
  0x93   :  { %v35_v18 = vpop.xlane.xlu0 %34  ;;  %v41_v19 = vpop.xlane.xlu1 %40 }
  0x94   :  { %v520_v20 = vmul.f32 0.00625, %v35_v18  ;;  %v522_v21 = vmul.f32 0.00625, %v41_v19  ;;  %v111_v18 = vunpack.c.l.bf16 %v110_v13 }
  0x96   :  { %v525_v22 = vsub.f32 %v25_v3, %v520_v20  ;;  %v528_v23 = vsub.f32 %v26_v4, %v520_v20  ;;  %v531_v24 = vsub.f32 %v29_v5, %v522_v21  ;;  %v534_v25 = vsub.f32 %v30_v6, %v522_v21 }
  0x97   :  { %v38_v26 = vpop.xlane.xlu0 %37  ;;  %v44_v27 = vpop.xlane.xlu1 %43  ;;  %v78_v60 = vmul.f32 96.0, %v520_v20  ;;  %v80_v63 = vmul.f32 96.0, %v522_v21 }
  0x98   :  { %v536_v28 = vmul.f32 0.00625, %v38_v26  ;;  %v538_v29 = vmul.f32 0.00625, %v44_v27  ;;  %v58_v30 = vmul.f32 %v525_v22, %v525_v22  ;;  %v59_v31 = vmul.f32 %v528_v23, %v528_v23 }
  0x99   :  { %v62_v32 = vmul.f32 %v531_v24, %v531_v24  ;;  %v63_v33 = vmul.f32 %v534_v25, %v534_v25  ;;  %v82_v61 = vmul.f32 %v78_v60, %v520_v20  ;;  %v84_v5 = vmul.f32 %v80_v63, %v522_v21 }
  0x9a   :  { %v66_v34 = vadd.f32 %v59_v31, %v58_v30  ;;  %v549_v35 = vsub.f32 %v27_v8, %v536_v28  ;;  %v552_v36 = vsub.f32 %v28_v9, %v536_v28  ;;  %v555_v37 = vsub.f32 %v31_v10, %v538_v29 }
  0x9b   :  { %v558_v38 = vsub.f32 %v32_v11, %v538_v29  ;;  %v72_v39 = vadd.f32 %v63_v33, %v62_v32  ;;  %v79_v62 = vmul.f32 96.0, %v536_v28  ;;  %v81_v6 = vmul.f32 96.0, %v538_v29 }
  0x9c   :  { %67 = vadd.xlane.f32.xlu0 %v66_v34  ;;  %v60_v40 = vmul.f32 %v549_v35, %v549_v35  ;;  %v61_v41 = vmul.f32 %v552_v36, %v552_v36  ;;  %v64_v42 = vmul.f32 %v555_v37, %v555_v37  ;;  %v114_v9 = vshrl.u32 %v113_v1, 7 }
  0x9d   :  { %v65_v43 = vmul.f32 %v558_v38, %v558_v38  ;;  %v83_v4 = vmul.f32 %v79_v62, %v536_v28  ;;  %v85_v16 = vmul.f32 %v81_v6, %v538_v29  ;;  %v139_v28 = vld [vmem:[%s654_s2] sm:$0x3] }
  0x9e   :  { %v69_v44 = vadd.f32 %v61_v41, %v60_v40  ;;  %v115_v19 = vsub.s32 0, %v114_v9  ;;  %v119_v27 = vsub.s32 2, %v114_v9  ;;  %v140_v33 = vunpack.c.l.bf16 %v139_v28 }
  0x9f   :  { %v75_v45 = vadd.f32 %v65_v43, %v64_v42 }
  0xa0   :  { %73 = vadd.xlane.f32.xlu0 %v72_v39  ;;  %70 = vadd.xlane.f32.xlu1 %v69_v44  ;;  %v120_v32 = vrot.slane %v111_v18, %v119_v27  ;;  %v116_v34 = vrot.slane %v111_v18, %v115_v19  ;;  %v149_v40 = vrot.slane %v140_v33, %v119_v27 }
  0xa1   :  { %v145_v42 = vrot.slane %v140_v33, %v115_v19 }
  0xa2   :  { %v130_v39 = vrot.slane %v120_v32, %v115_v19  ;;  %v126_v41 = vrot.slane %v116_v34, %v115_v19  ;;  %v159_v47 = vrot.slane %v149_v40, %v115_v19 }
  0xa3   :  { %v155_v49 = vrot.slane %v145_v42, %v115_v19 }
  0xa4   :  { %76 = vadd.xlane.f32.xlu1 %v75_v45 }
 0x129   :  { %v68_v0 = vpop.xlane.xlu0 %67 }
 0x12a   :  { %v86_v2 = vsub.f32 %v68_v0, %v82_v61 }
 0x12c   :  { %v90_v3 = vmul.f32 0.00625, %v86_v2 }
 0x12d   :  { %v71_v7 = vpop.xlane.xlu1 %70  ;;  %v74_v8 = vpop.xlane.xlu0 %73 }
 0x12e   :  { %v94_v10 = vadd.f32 1e-05, %v90_v3  ;;  %v87_v11 = vsub.f32 %v71_v7, %v83_v4  ;;  %v88_v12 = vsub.f32 %v74_v8, %v84_v5 }
 0x130   :  { %464 = vrsqrt.f32 %v94_v10  ;;  %v91_v14 = vmul.f32 0.00625, %v87_v11  ;;  %v92_v15 = vmul.f32 0.00625, %v88_v12 }
 0x131   :  { %v77_v17 = vpop.xlane.xlu1 %76 }
 0x132   :  { %v95_v20 = vadd.f32 1e-05, %v91_v14  ;;  %v96_v21 = vadd.f32 1e-05, %v92_v15  ;;  %v89_v26 = vsub.f32 %v77_v17, %v85_v16 }
 0x134   :  { %466 = vrsqrt.f32 %v95_v20  ;;  %v93_v30 = vmul.f32 0.00625, %v89_v26 }
 0x135   :  { %468 = vrsqrt.f32 %v96_v21 }
 0x136   :  { %v97_v31 = vadd.f32 1e-05, %v93_v30 }
 0x138   :  { %470 = vrsqrt.f32 %v97_v31 }
 0x13a   :  { %v465_v29 = vpop.eup %464 }
 0x13b   :  { %v103_v43 = vmul.f32 %v465_v29, %v528_v23  ;;  %v102_v44 = vmul.f32 %v465_v29, %v525_v22 }
 0x13d   :  { %v132_v46 = vmul.f32 %v130_v39, %v103_v43  ;;  %v131_v48 = vmul.f32 %v126_v41, %v102_v44 }
 0x13e   :  { %v467_v45 = vpop.eup %466 }
 0x13f   :  { %v469_v50 = vpop.eup %468  ;;  %v105_v51 = vmul.f32 %v467_v45, %v552_v36  ;;  %v104_v52 = vmul.f32 %v467_v45, %v549_v35  ;;  %v161_v23 = vadd.f32 %v159_v47, %v132_v46  ;;  %v160_v58 = vadd.f32 %v155_v49, %v131_v48 }
 0x140   :  { %v107_v53 = vmul.f32 %v469_v50, %v534_v25  ;;  %v106_v54 = vmul.f32 %v469_v50, %v531_v24 }
 0x141   :  { %v134_v55 = vmul.f32 %v130_v39, %v105_v51  ;;  %v133_v56 = vmul.f32 %v126_v41, %v104_v52 }
 0x142   :  { %v471_v57 = vpop.eup %470  ;;  %v136_v22 = vmul.f32 %v130_v39, %v107_v53  ;;  %v135_v59 = vmul.f32 %v126_v41, %v106_v54 }
 0x143   :  { %v163_v60 = vadd.f32 %v159_v47, %v134_v55  ;;  %v162_v61 = vadd.f32 %v155_v49, %v133_v56  ;;  %v109_v62 = vmul.f32 %v471_v57, %v558_v38  ;;  %v108_v63 = vmul.f32 %v471_v57, %v555_v37  ;;  %v204_v38 = vld [vmem:[%s655_s4] sm:$0x1] }
 0x144   :  { %v165_v25 = vadd.f32 %v159_v47, %v136_v22  ;;  %v164_v2 = vadd.f32 %v155_v49, %v135_v59  ;;  %v205_v6 = vunpack.c.l.bf16 %v204_v38 }
 0x145   :  { %v169_v36 = vpack.c.bf16 %v163_v60, %v161_v23  ;;  %v168_v0 = vpack.c.bf16 %v162_v61, %v160_v58  ;;  %v138_v35 = vmul.f32 %v130_v39, %v109_v62  ;;  %v137_v1 = vmul.f32 %v126_v41, %v108_v63 }
 0x146   :  { %v209_v7 = vrot.slane %v205_v6, %v115_v19 }
 0x147   :  { %338 = vmatprep.mubr.bf16.mxu0 %v169_v36  ;;  %v167_v24 = vadd.f32 %v159_v47, %v138_v35  ;;  %v166_v3 = vadd.f32 %v155_v49, %v137_v1 }
 0x148   :  { %339 = vmatmul.mubr.bf16.vlgmr.msra.gmra.mrb[0].mxu0 %v168_v0 }
 0x149   :  { %v171_v4 = vpack.c.bf16 %v167_v24, %v165_v25  ;;  %v170_v5 = vpack.c.bf16 %v166_v3, %v164_v2 }
 0x14b   :  { %346 = vmatprep.mubr.bf16.mxu1 %v171_v4 }
 0x14c   :  { %347 = vmatmul.mubr.bf16.vlgmr.msra.gmra.mrb[0].mxu1 %v170_v5 }
 0x21b   :  { %v420_v37 = vpop.f32.mrb[0].mxu0 }
 0x21c   :  { %v421_v8 = vpop.f32.mrb[1].mxu0 }
 0x21d   :  { %v422_v9 = vadd.f32 %v421_v8, %v420_v37  ;;  %v423_v10 = vpop.f32.mrb[2].mxu0 }
 0x21e   :  { %v424_v11 = vpop.f32.mrb[3].mxu0 }
 0x21f   :  { %v341_v12 = vadd.f32 %v422_v9, %v209_v7  ;;  %v425_v13 = vadd.f32 %v424_v11, %v423_v10  ;;  %v426_v14 = vpop.f32.mrb[0].mxu1 }
 0x220   :  { %v427_v15 = vpop.f32.mrb[1].mxu1 }
 0x221   :  { %v400_v16 = vpack.c.bf16 %v341_v12, %v341_v12  ;;  %v344_v17 = vadd.f32 %v425_v13, %v209_v7  ;;  %v428_v18 = vadd.f32 %v427_v15, %v426_v14  ;;  %v429_v20 = vpop.f32.mrb[2].mxu1 }
 0x222   :  { %v430_v21 = vpop.f32.mrb[3].mxu1 }
 0x223   :  { %372 = vst.msk [vmem:[%s656_s5] sm:$0xf] %vm371_vm0, %v400_v16  ;;  %v401_v19 = vpack.c.bf16 %v344_v17, %v344_v17  ;;  %v349_v26 = vadd.f32 %v428_v18, %v209_v7  ;;  %v431_v27 = vadd.f32 %v430_v21, %v429_v20 }
 0x225   :  { %373 = vst.msk [vmem:[%s656_s5 + $0x4] sm:$0xf] %vm371_vm0, %v401_v19  ;;  %v402_v28 = vpack.c.bf16 %v349_v26, %v349_v26  ;;  %v352_v30 = vadd.f32 %v431_v27, %v209_v7 }
 0x227   :  { %374 = vst.msk [vmem:[%s656_s5 + $0x8] sm:$0xf] %vm371_vm0, %v402_v28  ;;  %v403_v31 = vpack.c.bf16 %v352_v30, %v352_v30 }
 0x229   :  { %375 = vst.msk [vmem:[%s656_s5 + $0xc] sm:$0xf] %vm371_vm0, %v403_v31 }

// kernel: wav2vec_bert_encoder_forward.7
= control target key start
LH: loop header
LB: loop body
LE: loop exit
PB: predicated region body
PF: predicated region fallthrough
CT: control target
= control target key end

     0   :  { %s2109_s29 = smov 0   ;;  %s2396_s0 = inlined_call_operand.vmem [shape: bf16[2,16,64], index: 0, kind: input, shape index: {}]   ;;  %s2397_s1 = inlined_call_operand.vmem [shape: f32[2,1,16], index: 1, kind: input, shape index: {}]   ;;  %s2398_s2 = inlined_call_operand.vmem [shape: bf16[1,64], index: 2, kind: input, shape index: {}]   ;;  %s2399_s3 = inlined_call_operand.vmem [shape: bf16[1,64], index: 3, kind: input, shape index: {}]   ;;  %s2400_s4 = inlined_call_operand.vmem [shape: bf16[64,192], index: 4, kind: input, shape index: {}]   ;;  %s2401_s5 = inlined_call_operand.vmem [shape: bf16[1,192], index: 5, kind: input, shape index: {}]   ;;  %s2402_s6 = inlined_call_operand.vmem [shape: bf16[64,64], index: 6, kind: input, shape index: {}]   ;;  %s2403_s7 = inlined_call_operand.vmem [shape: bf16[1,64], index: 7, kind: input, shape index: {}]   ;;  %s2404_s8 = inlined_call_operand.vmem [shape: bf16[1,64], index: 8, kind: input, shape index: {}]   ;;  %s2405_s9 = inlined_call_operand.vmem [shape: bf16[1,64], index: 9, kind: input, shape index: {}]   ;;  %s2406_s10 = inlined_call_operand.vmem [shape: bf16[64,256], index: 10, kind: input, shape index: {}]   ;;  %s2407_s11 = inlined_call_operand.vmem [shape: bf16[1,256], index: 11, kind: input, shape index: {}]   ;;  %s2408_s12 = inlined_call_operand.vmem [shape: bf16[256,64], index: 12, kind: input, shape index: {}]   ;;  %s2409_s13 = inlined_call_operand.vmem [shape: bf16[1,64], index: 13, kind: input, shape index: {}]   ;;  %s2410_s14 = inlined_call_operand.vmem [shape: bf16[2,16,64], index: 14, kind: output, shape index: {}]  }
   0x1 LB: > { %s1711_s30 = sadd.s32 4294967295, %s2022_s29   ;;  %p1715_p0 = scmp.ge.s32.totalorder %s2022_s29, 1  ;;  %s2022_s29 = sphi %s2109_s29, %s24_s29  }
   0x2   : > { %p420_p1 = scmp.lt.s32.totalorder %s2022_s29, 3 }
   0x4   : > { %p421_p2 = pnand %p1715_p0, %p420_p1 }
   0x5   : > { %p469_p3 = scmp.lt.s32.totalorder (!%p421_p2), %s1711_s30, 1  ;;  %vm491_vm0 = vcmask (!%p421_p2), 523264   ;;  %v1916_v15 = vld [vmem:[%s2400_s4 + $0x4] ss:$8 sps:$4 sm:$0xff] (!%p421_p2)   ;;  %v1918_v16 = vld [vmem:[%s2400_s4] ss:$8 sps:$4 sm:$0xff] (!%p421_p2)   ;;  %v519_v28 = vlaneseq (!%p421_p2) }
   0x6   : > { %424 = sbr.rel (%p421_p2) target bundleno = 2684 (0xa7c), region = 76  ;;  %604 = vmatprep.subr.bf16.mxu1 (!%p421_p2), %v1916_v15  ;;  %v1919_v17 = vld [vmem:[%s2400_s4 + $0x14] ss:$8 sps:$4 sm:$0xff] (!%p421_p2)   ;;  %v1921_v18 = vld [vmem:[%s2400_s4 + $0x10] ss:$8 sps:$4 sm:$0xff] (!%p421_p2)   ;;  %v2024_v23 = vmov (!%p421_p2), 0  }
   0x7   : > { %605 = vmatpush1.bf16.msra.mxu1 (!%p421_p2), %v1918_v16  ;;  %v1922_v19 = vld [vmem:[%s2400_s4 + $0x24] ss:$8 sps:$4 sm:$0xff] (!%p421_p2)   ;;  %v1924_v20 = vld [vmem:[%s2400_s4 + $0x20] ss:$8 sps:$4 sm:$0xff] (!%p421_p2)   ;;  %v1925_v21 = vld [vmem:[%s2400_s4 + $0x34] ss:$8 sps:$4 sm:$0xff] (!%p421_p2)   ;;  %636 = vmatprep.mubr.bf16.mxu1 (!%p421_p2), %v2024_v23 }
   0x8   : > { %606 = vmatprep.subr.bf16.mxu1 (!%p421_p2), %v1919_v17  ;;  %v1927_v22 = vld [vmem:[%s2400_s4 + $0x30] ss:$8 sps:$4 sm:$0xff] (!%p421_p2)   ;;  %v2162_v31 = vshrl.u32 (!%p421_p2), %v519_v28, 7  ;;  %v487_v32 = vld [vmem:[%s2398_s2] sm:$0x1] (!%p421_p2)  ;;  %v2025_v58 = vmov (!%p421_p2), 0.0  }
   0x9   : > { %v488_v33 = vunpack.c.l.bf16 (!%p421_p2), %v487_v32  ;;  %v489_v35 = vld [vmem:[%s2399_s3] sm:$0x1] (!%p421_p2)  ;;  %1835 = vmatprep.subr.bf16.mxu0 (!%p421_p2), %v2025_v58  ;;  %vm2026_vm1 = vmmov (!%p421_p2), 0   ;;  %s2027_s28 = smov (!%p421_p2), 96   ;;  %s2028_s16 = smov (!%p421_p2), 112   ;;  %vm668_vm2 = vcmask (!%p421_p2), 130048  }
   0xa   : > { %v2168_v34 = vsub.s32 (!%p421_p2), 0, %v2162_v31  ;;  %v490_v38 = vunpack.c.l.bf16 (!%p421_p2), %v489_v35  ;;  %v540_v48 = vld [vmem:[%s2401_s5] sm:$0x3] (!%p421_p2)  ;;  %v549_v50 = vsub.s32 (!%p421_p2), 2, %v2162_v31  ;;  %1837 = vmatprep.mubr.msk.bf16.mxu0 (!%p421_p2), %vm2026_vm1, %v2025_v58  ;;  %s2029_s17 = smov (!%p421_p2), 80   ;;  %s2033_s19 = smov (!%p421_p2), 48  }
   0xb   : > { %607 = vmatpush1.bf16.msra.mxu1 (!%p421_p2), %v1921_v18  ;;  %v541_v49 = vunpack.c.l.bf16 (!%p421_p2), %v540_v48  ;;  %vm1180_vm3 = vcmask (!%p421_p2), 261120   ;;  %vm1183_vm4 = vcmask (!%p421_p2), 392192   ;;  %vm1644_vm5 = vcmask (!%p421_p2), 519168  }
   0xc   : > { %608 = vmatprep.subr.bf16.mxu1 (!%p421_p2), %v1922_v19  ;;  %v522_v39 = vrot.slane (!%p421_p2), %v488_v33, %v2168_v34  ;;  %v528_v43 = vrot.slane (!%p421_p2), %v490_v38, %v2168_v34 }
   0xd   : > { %s2412_s30 = smov (!%p469_p3, %s1711_s30), 1  ;;  %v546_v51 = vrot.slane %v541_v49, %v2168_v34  ;;  %v550_v52 = vrot.slane %v541_v49, %v549_v50 }
   0xe   : > { %s1772_s15 = sshll.u32 %s2412_s30, 3  ;;  %s476_s21 = scalar_lea.vmem %s2397_s1, %s2412_s30 }
   0xf   : > { %s473_s18 = scalar_lea.vmem %s2396_s0, %s1772_s15  ;;  %609 = vmatpush1.bf16.msra.mxu1 %v1924_v20  ;;  %v556_v53 = vrot.slane %v546_v51, %v2168_v34  ;;  %v560_v55 = vrot.slane %v550_v52, %v2168_v34  ;;  %v1733_v15 = vld [vmem:[%s476_s21] ss:$0 sm:$0xff] }
  0x10   : > { %v1777_v0 = vld [vmem:[%s473_s18] sm:$0xff]   ;;  %610 = vmatprep.subr.bf16.mxu1 %v1925_v21  ;;  %s2030_s18 = smov 64  }
  0x11   : > { %v2125_v1 = vunpack.c.l.bf16 %v1777_v0  ;;  %v2127_v2 = vunpack.c.h.bf16 %v1777_v0 }
  0x13   : > { %v492_v3 = vsel %vm491_vm0, %v2125_v1, 0.0  ;;  %v495_v4 = vsel %vm491_vm0, %v2127_v2, 0.0  ;;  %611 = vmatpush1.bf16.msra.mxu1 %v1927_v22 }
  0x14   : > { %493 = vadd.xlane.f32.xlu0 %v492_v3  ;;  %1823 = vmatprep.subr.bf16.mxu1 %v2025_v58 }
  0x18   : > { %496 = vadd.xlane.f32.xlu0 %v495_v4 }
  0xa1   : > { %v494_v5 = vpop.xlane.xlu0 %493 }
  0xa2   : > { %v499_v6 = vmul.f32 0.015625, %v494_v5 }
  0xa4   : > { %v501_v7 = vsub.f32 %v2125_v1, %v499_v6 }
  0xa5   : > { %v497_v8 = vpop.xlane.xlu0 %496 }
  0xa6   : > { %v500_v9 = vmul.f32 0.015625, %v497_v8  ;;  %v503_v10 = vmul.f32 %v501_v7, %v501_v7 }
  0xa8   : > { %v502_v11 = vsub.f32 %v2127_v2, %v500_v9  ;;  %v505_v12 = vsel %vm491_vm0, %v503_v10, 0.0 }
  0xa9   : > { %506 = vadd.xlane.f32.xlu1 %v505_v12 }
  0xaa   : > { %v504_v13 = vmul.f32 %v502_v11, %v502_v11 }
  0xac   : > { %v508_v14 = vsel %vm491_vm0, %v504_v13, 0.0 }
  0xad   : > { %509 = vadd.xlane.f32.xlu1 %v508_v14 }
 0x136   : > { %v507_v24 = vpop.xlane.xlu1 %506 }
 0x137   : > { %v511_v25 = vmul.f32 0.015625, %v507_v24 }
 0x139   : > { %v513_v26 = vadd.f32 1e-05, %v511_v25 }
 0x13a   : > { %v510_v27 = vpop.xlane.xlu1 %509 }
 0x13b   : > { %1960 = vrsqrt.f32 %v513_v26  ;;  %v512_v29 = vmul.f32 0.015625, %v510_v27 }
 0x13d   : > { %v514_v30 = vadd.f32 1e-05, %v512_v29 }
 0x13f   : > { %1962 = vrsqrt.f32 %v514_v30 }
 0x145   : > { %v1961_v36 = vpop.eup %1960 }
 0x146   : > { %v517_v37 = vmul.f32 %v1961_v36, %v501_v7 }
 0x148   : > { %v523_v42 = vmul.f32 %v522_v39, %v517_v37 }
 0x149   : > { %v1963_v40 = vpop.eup %1962 }
 0x14a   : > { %v518_v41 = vmul.f32 %v1963_v40, %v502_v11  ;;  %v529_v45 = vadd.f32 %v528_v43, %v523_v42 }
 0x14c   : > { %v524_v44 = vmul.f32 %v522_v39, %v518_v41 }
 0x14e   : > { %v530_v46 = vadd.f32 %v528_v43, %v524_v44 }
 0x150   : > { %v531_v47 = vpack.c.bf16 %v530_v46, %v529_v45 }
 0x152   : > { %1728 = vmatmul.mubr.msk.bf16.vlgmr.msra.gmra.mrb[0].mxu1 %vm491_vm0, %v531_v47 }
 0x153   : > { %1825 = vmatprep.mubr.msk.bf16.mxu1 %vm2026_vm1, %v2025_v58 }
 0x225   : > { %v638_v54 = vpop.f32.mrb[0].mxu1 }
 0x226   : > { %v640_v56 = vpop.f32.mrb[1].mxu1  ;;  %v639_v59 = vadd.f32 %v638_v54, %v556_v53 }
 0x227   : > { %v642_v57 = vpop.f32.mrb[2].mxu1  ;;  %v641_v62 = vadd.f32 %v640_v56, %v560_v55 }
 0x228   : > { %v643_v60 = vadd.f32 %v642_v57, %v556_v53  ;;  %v644_v61 = vpop.f32.mrb[3].mxu1 }
 0x229   : > { %v645_v63 = vadd.f32 %v644_v61, %v560_v55 }
 0x22a   : > { %v647_v0 = vpack.c.bf16 %v643_v60, %v639_v59 }
 0x22b   : > { %v2191_v3 = vpack.c.bf16 %v645_v63, %v641_v62 }
 0x22c   : > { %652 = vrot.lane.b32.xlu1 %v647_v0, %s2027_s28  ;;  %650 = vrot.lane.b32.xlu0 %v647_v0, %s2028_s16 }
 0x230   : > { %654 = vrot.lane.b32.xlu1 %v647_v0, %s2029_s17 }
 0x234   : > { %666 = vrot.lane.b32.xlu1 %v647_v0, %s2030_s18 }
 0x29e   : > { %v653_v4 = vpop.permute.xlu1 %652  ;;  %v651_v5 = vpop.permute.xlu0 %650 }
 0x29f   : > { %765 = vrot.lane.b32.xlu1 %v653_v4, %s2030_s18  ;;  %716 = vrot.lane.b32.xlu0 %v651_v5, %s2030_s18 }
 0x2a2   : > { %v655_v6 = vpop.permute.xlu1 %654 }
 0x2a3   : > { %814 = vrot.lane.b32.xlu0 %v655_v6, %s2030_s18  ;;  %s2032_s18 = smov 32  }
 0x2a6   : > { %v667_v7 = vpop.permute.xlu1 %666 }
 0x2a7   : > { %v673_v8 = vsel %vm668_vm2, %v667_v7, 0 }
 0x2a8   : > { %1824 = vmatpush3.bf16.xpose.msra.mxu1 %v673_v8 }
 0x2a9   : > { %1829 = vmatprep.subr.bf16.mxu1 %v2025_v58 }
 0x2af   : > { %1826 = vmatmul.mubr.msk.bf16.vlgmr.msra.gmra.mrb[4].mxu1 %vm668_vm2, %v647_v0 }
 0x2b0   : > { %1831 = vmatprep.mubr.msk.bf16.mxu1 %vm2026_vm1, %v2025_v58 }
 0x311   : > { %v766_v9 = vpop.permute.xlu1 %765  ;;  %v717_v10 = vpop.permute.xlu0 %716 }
 0x312   : > { %v722_v11 = vsel %vm668_vm2, %v717_v10, 0  ;;  %v771_v12 = vsel %vm668_vm2, %v766_v9, 0 }
 0x313   : > { %1830 = vmatpush3.bf16.xpose.msra.mxu1 %v722_v11  ;;  %1836 = vmatpush3.bf16.xpose.msra.mxu0 %v771_v12 }
 0x314   : > { %1841 = vmatprep.subr.bf16.mxu1 %v2025_v58  ;;  %1847 = vmatprep.subr.bf16.mxu0 %v2025_v58 }
 0x315   : > { %v815_v13 = vpop.permute.xlu0 %814 }
 0x316   : > { %v820_v14 = vsel %vm668_vm2, %v815_v13, 0 }
 0x31a   : > { %1832 = vmatmul.mubr.msk.bf16.vlgmr.msra.gmra.mrb[8].mxu1 %vm668_vm2, %v651_v5  ;;  %1838 = vmatmul.mubr.msk.bf16.vlgmr.msra.gmra.mrb[0].mxu0 %vm668_vm2, %v653_v4 }
 0x31b   : > { %1842 = vmatpush3.bf16.xpose.msra.mxu1 %v820_v14  ;;  %1848 = vmatpush3.bf16.msra.mxu0 %v2191_v3 }
 0x31c   : > { %1843 = vmatprep.mubr.msk.bf16.mxu1 %vm2026_vm1, %v2025_v58  ;;  %1853 = vmatprep.subr.bf16.mxu1 %v2025_v58 }
 0x31d   : > { %1849 = vmatprep.mubr.msk.bf16.mxu0 %vm2026_vm1, %v2025_v58  ;;  %1859 = vmatprep.subr.bf16.mxu0 %v2025_v58 }
 0x322   : > { %1844 = vmatmul.mubr.msk.bf16.vlgmr.msra.gmra.mrb[12].mxu1 %vm668_vm2, %v655_v6 }
 0x323   : > { %1855 = vmatprep.mubr.msk.bf16.mxu1 %vm2026_vm1, %v2025_v58 }
 0x382   : > { %v709_v16 = vpop.f32.mrb[4].mxu1 }
 0x383   : > { %v863_v17 = vmul.f32 0.25, %v709_v16  ;;  %v1827_v18 = vpop.f32.mrb[5].mxu1 }
 0x384   : > { %v712_v19 = vpop.f32.mrb[6].mxu1 }
 0x385   : > { %v864_v20 = vmul.f32 0.25, %v712_v19  ;;  %v1828_v21 = vpop.f32.mrb[7].mxu1  ;;  %v878_v22 = vadd.f32 %v1733_v15, %v863_v17 }
 0x387   : > { %v886_v24 = vsel %vm668_vm2, %v878_v22, -inf  ;;  %v879_v25 = vadd.f32 %v1733_v15, %v864_v20 }
 0x388   : > { %887 = vmax.xlane.f32.xlu1 %v886_v24 }
 0x389   : > { %v889_v26 = vsel %vm668_vm2, %v879_v25, -inf }
 0x38a   : > { %890 = vmax.xlane.f32.xlu0 %v889_v26 }
 0x3ed   : > { %v758_v27 = vpop.f32.mrb[8].mxu1  ;;  %v807_v28 = vpop.f32.mrb[0].mxu0 }
 0x3ee   : > { %v865_v29 = vmul.f32 0.25, %v758_v27  ;;  %v867_v30 = vmul.f32 0.25, %v807_v28  ;;  %v1833_v32 = vpop.f32.mrb[9].mxu1  ;;  %v1839_v33 = vpop.f32.mrb[1].mxu0 }
 0x3ef   : > { %v761_v35 = vpop.f32.mrb[10].mxu1  ;;  %v810_v36 = vpop.f32.mrb[2].mxu0 }
 0x3f0   : > { %v866_v37 = vmul.f32 0.25, %v761_v35  ;;  %v1834_v38 = vpop.f32.mrb[11].mxu1  ;;  %v1840_v39 = vpop.f32.mrb[3].mxu0  ;;  %v882_v40 = vadd.f32 %v1733_v15, %v867_v30  ;;  %v880_v41 = vadd.f32 %v1733_v15, %v865_v29  ;;  %v868_v42 = vmul.f32 0.25, %v810_v36 }
 0x3f2   : > { %v898_v43 = vsel %vm668_vm2, %v882_v40, -inf  ;;  %v892_v44 = vsel %vm668_vm2, %v880_v41, -inf  ;;  %v881_v45 = vadd.f32 %v1733_v15, %v866_v37  ;;  %v883_v51 = vadd.f32 %v1733_v15, %v868_v42 }
 0x3f3   : > { %899 = vmax.xlane.f32.xlu1 %v898_v43  ;;  %893 = vmax.xlane.f32.xlu0 %v892_v44 }
 0x3f4   : > { %v895_v49 = vsel %vm668_vm2, %v881_v45, -inf  ;;  %v901_v56 = vsel %vm668_vm2, %v883_v51, -inf }
 0x3f5   : > { %v856_v46 = vpop.f32.mrb[12].mxu1 }
 0x3f6   : > { %v869_v47 = vmul.f32 0.25, %v856_v46  ;;  %v1845_v48 = vpop.f32.mrb[13].mxu1 }
 0x3f7   : > { %896 = vmax.xlane.f32.xlu0 %v895_v49  ;;  %v859_v52 = vpop.f32.mrb[14].mxu1 }
 0x3f8   : > { %v870_v53 = vmul.f32 0.25, %v859_v52  ;;  %v1846_v54 = vpop.f32.mrb[15].mxu1  ;;  %v884_v55 = vadd.f32 %v1733_v15, %v869_v47 }
 0x3fa   : > { %v904_v57 = vsel %vm668_vm2, %v884_v55, -inf  ;;  %v885_v59 = vadd.f32 %v1733_v15, %v870_v53 }
 0x3fb   : > { %902 = vmax.xlane.f32.xlu0 %v901_v56  ;;  %905 = vmax.xlane.f32.xlu1 %v904_v57 }
 0x3fc   : > { %v907_v60 = vsel %vm668_vm2, %v885_v59, -inf }
 0x3ff   : > { %908 = vmax.xlane.f32.xlu0 %v907_v60 }
 0x40c   : > { %657 = vrot.lane.b32.xlu1 %v2191_v3, %s2028_s16 }
 0x415   : > { %v888_v61 = vpop.xlane.xlu1 %887 }
 0x416   : > { %v910_v0 = vsub.f32 %v878_v22, %v888_v61 }
 0x417   : > { %v891_v62 = vpop.xlane.xlu0 %890 }
 0x418   : > { %v911_v63 = vsub.f32 %v879_v25, %v891_v62  ;;  %v918_v5 = vmul.f32 1.442695, %v910_v0 }
 0x41a   : > { %v920_v4 = vmul.f32 1.442695, %v911_v63 }
 0x41c   : > { %1964 = vpow2.f32 %v920_v4 }
 0x41d   : > { %1966 = vpow2.f32 %v918_v5 }
 0x426   : > { %v1965_v6 = vpop.eup %1964 }
 0x427   : > { %v937_v7 = vsel %vm668_vm2, %v1965_v6, 0.0  ;;  %v1967_v8 = vpop.eup %1966 }
 0x428   : > { %938 = vadd.xlane.f32.xlu0 %v937_v7  ;;  %v934_v9 = vsel %vm668_vm2, %v1967_v8, 0.0 }
 0x430   : > { %935 = vadd.xlane.f32.xlu1 %v934_v9 }
 0x480   : > { %v900_v10 = vpop.xlane.xlu1 %899  ;;  %v894_v11 = vpop.xlane.xlu0 %893 }
 0x481   : > { %v914_v12 = vsub.f32 %v882_v40, %v900_v10  ;;  %v912_v13 = vsub.f32 %v880_v41, %v894_v11 }
 0x483   : > { %v922_v14 = vmul.f32 1.442695, %v912_v13  ;;  %v926_v15 = vmul.f32 1.442695, %v914_v12 }
 0x484   : > { %v897_v16 = vpop.xlane.xlu0 %896 }
 0x485   : > { %v913_v17 = vsub.f32 %v881_v45, %v897_v16  ;;  %1968 = vpow2.f32 %v922_v14  ;;  %v1928_v14 = vld [vmem:[%s2402_s6] sm:$0xff]  }
 0x486   : > { %1970 = vpow2.f32 %v926_v15 }
 0x487   : > { %v924_v18 = vmul.f32 1.442695, %v913_v17 }
 0x488   : > { %v906_v19 = vpop.xlane.xlu1 %905  ;;  %v903_v20 = vpop.xlane.xlu0 %902 }
 0x489   : > { %1972 = vpow2.f32 %v924_v18  ;;  %v916_v21 = vsub.f32 %v884_v55, %v906_v19  ;;  %v915_v22 = vsub.f32 %v883_v51, %v903_v20  ;;  %v1929_v19 = vld [vmem:[%s2402_s6 + $0x8] sm:$0xff]  }
 0x48b   : > { %v930_v24 = vmul.f32 1.442695, %v916_v21  ;;  %v928_v25 = vmul.f32 1.442695, %v915_v22 }
 0x48c   : > { %v658_v26 = vpop.permute.xlu1 %657  ;;  %v909_v27 = vpop.xlane.xlu0 %908 }
 0x48d   : > { %1974 = vpow2.f32 %v930_v24  ;;  %v917_v28 = vsub.f32 %v885_v59, %v909_v27  ;;  %1854 = vmatpush3.bf16.msra.mxu1 %v658_v26  ;;  %v1931_v24 = vld [vmem:[%s2402_s6 + $0x18] sm:$0xff]  }
 0x48e   : > { %1976 = vpow2.f32 %v928_v25  ;;  %1865 = vmatprep.subr.bf16.mxu1 %v2025_v58 }
 0x48f   : > { %v932_v29 = vmul.f32 1.442695, %v917_v28  ;;  %v1969_v30 = vpop.eup %1968 }
 0x490   : > { %v940_v32 = vsel %vm668_vm2, %v1969_v30, 0.0  ;;  %v1971_v33 = vpop.eup %1970 }
 0x491   : > { %1978 = vpow2.f32 %v932_v29  ;;  %941 = vadd.xlane.f32.xlu1 %v940_v32  ;;  %v946_v37 = vsel %vm668_vm2, %v1971_v33, 0.0 }
 0x493   : > { %v1973_v35 = vpop.eup %1972 }
 0x494   : > { %v943_v36 = vsel %vm668_vm2, %v1973_v35, 0.0 }
 0x495   : > { %944 = vadd.xlane.f32.xlu0 %v943_v36  ;;  %947 = vadd.xlane.f32.xlu1 %v946_v37 }
 0x497   : > { %v1975_v38 = vpop.eup %1974 }
 0x498   : > { %v1977_v39 = vpop.eup %1976  ;;  %v952_v40 = vsel %vm668_vm2, %v1975_v38, 0.0 }
 0x499   : > { %v949_v41 = vsel %vm668_vm2, %v1977_v39, 0.0  ;;  %953 = vadd.xlane.f32.xlu1 %v952_v40 }
 0x49a   : > { %950 = vadd.xlane.f32.xlu0 %v949_v41 }
 0x49b   : > { %v1979_v42 = vpop.eup %1978 }
 0x49c   : > { %v955_v43 = vsel %vm668_vm2, %v1979_v42, 0.0 }
 0x49e   : > { %956 = vadd.xlane.f32.xlu0 %v955_v43 }
 0x4aa   : > { %663 = vrot.lane.b32.xlu1 %v2191_v3, %s2029_s17  ;;  %s2031_s17 = smov 16  }
 0x4b4   : > { %660 = vrot.lane.b32.xlu0 %v2191_v3, %s2027_s28  ;;  %s481_s28 = scalar_lea.vmem %s2410_s14, %s1772_s15 }
 0x4b5   : > { %v939_v44 = vpop.xlane.xlu0 %938 }
 0x4b6   : > { %1980 = vrcp.f32 %v939_v44 }
 0x4bd   : > { %v936_v45 = vpop.xlane.xlu1 %935 }
 0x4be   : > { %1982 = vrcp.f32 %v936_v45 }
 0x4c0   : > { %v1981_v46 = vpop.eup %1980 }
 0x4c1   : > { %v967_v48 = vmul.f32 %v1981_v46, %v1965_v6 }
 0x4c8   : > { %v1983_v47 = vpop.eup %1982 }
 0x4c9   : > { %v966_v49 = vmul.f32 %v1983_v47, %v1967_v8 }
 0x4cb   : > { %v974_v51 = vpack.c.bf16 %v967_v48, %v966_v49 }
 0x4cd   : > { %1850 = vmatmul.mubr.msk.bf16.vlgmr.msra.gmra.mrb[4].mxu0 %vm668_vm2, %v974_v51 }
 0x4ce   : > { %1861 = vmatprep.mubr.msk.bf16.mxu0 %vm2026_vm1, %v2025_v58 }
 0x51e   : > { %v942_v52 = vpop.xlane.xlu1 %941 }
 0x51f   : > { %1984 = vrcp.f32 %v942_v52 }
 0x522   : > { %v945_v53 = vpop.xlane.xlu0 %944  ;;  %v948_v54 = vpop.xlane.xlu1 %947 }
 0x523   : > { %1986 = vrcp.f32 %v945_v53 }
 0x524   : > { %1988 = vrcp.f32 %v948_v54 }
 0x526   : > { %v954_v3 = vpop.xlane.xlu1 %953 }
 0x527   : > { %v951_v55 = vpop.xlane.xlu0 %950 }
 0x528   : > { %1990 = vrcp.f32 %v951_v55 }
 0x529   : > { %1992 = vrcp.f32 %v954_v3  ;;  %v1985_v56 = vpop.eup %1984  ;;  %v1265_v3 = vld [vmem:[%s2403_s7] sm:$0x1] }
 0x52a   : > { %v968_v60 = vmul.f32 %v1985_v56, %v1969_v30  ;;  %v664_v4 = vpop.permute.xlu1 %663  ;;  %v1266_v55 = vunpack.c.l.bf16 %v1265_v3  ;;  %v1953_v3 = vld [vmem:[%s2408_s12 + $0x20] sm:$0xff]  }
 0x52b   : > { %v957_v57 = vpop.xlane.xlu0 %956 }
 0x52c   : > { %1994 = vrcp.f32 %v957_v57  ;;  %v1270_v56 = vrot.slane %v1266_v55, %v2168_v34  ;;  %v1954_v55 = vld [vmem:[%s2408_s12 + $0x68] sm:$0xff]  }
 0x52d   : > { %v1987_v59 = vpop.eup %1986 }
 0x52e   : > { %v969_v61 = vmul.f32 %v1987_v59, %v1973_v35  ;;  %v1989_v0 = vpop.eup %1988 }
 0x52f   : > { %v661_v62 = vpop.permute.xlu0 %660  ;;  %v970_v7 = vmul.f32 %v1989_v0, %v1971_v33 }
 0x530   : > { %1860 = vmatpush3.bf16.msra.mxu0 %v661_v62  ;;  %v975_v63 = vpack.c.bf16 %v969_v61, %v968_v60 }
 0x531   : > { %1871 = vmatprep.subr.bf16.mxu0 %v2025_v58 }
 0x532   : > { %1856 = vmatmul.mubr.msk.bf16.vlgmr.msra.gmra.mrb[16].mxu1 %vm668_vm2, %v975_v63  ;;  %v1991_v5 = vpop.eup %1990 }
 0x533   : > { %1866 = vmatpush3.bf16.msra.mxu1 %v664_v4  ;;  %1867 = vmatprep.mubr.msk.bf16.mxu1 %vm2026_vm1, %v2025_v58  ;;  %v1993_v6 = vpop.eup %1992  ;;  %v971_v8 = vmul.f32 %v1991_v5, %v1977_v39 }
 0x534   : > { %v972_v11 = vmul.f32 %v1993_v6, %v1975_v38 }
 0x535   : > { %v976_v10 = vpack.c.bf16 %v971_v8, %v970_v7 }
 0x536   : > { %v1995_v9 = vpop.eup %1994 }
 0x537   : > { %v973_v12 = vmul.f32 %v1995_v9, %v1979_v42  ;;  %1862 = vmatmul.mubr.msk.bf16.vlgmr.msra.gmra.mrb[8].mxu0 %vm668_vm2, %v976_v10 }
 0x538   : > { %1879 = vmatprep.mubr.msk.bf16.mxu0 %vm2026_vm1, %v2025_v58  ;;  %1872 = vmatpush3.bf16.msra.mxu0 %v1928_v14 }
 0x539   : > { %v977_v13 = vpack.c.bf16 %v973_v12, %v972_v11  ;;  %1873 = vmatprep.subr.bf16.mxu0 %v2025_v58 }
 0x53b   : > { %1868 = vmatmul.mubr.msk.bf16.vlgmr.msra.gmra.mrb[20].mxu1 %vm668_vm2, %v977_v13 }
 0x53c   : > { %1420 = vmatprep.mubr.bf16.mxu1 %v2024_v23  ;;  %1874 = vmatpush3.bf16.msra.mxu0 %v1929_v19  ;;  %v1930_v23 = vld [vmem:[%s2402_s6 + $0x10] sm:$0xff]   ;;  %v1940_v19 = vld [vmem:[%s2406_s10 + $0x24] ss:$8 sps:$4 sm:$0xff]  }
 0x53d   : > { %1875 = vmatprep.subr.bf16.mxu0 %v2025_v58 }
 0x540   : > { %1876 = vmatpush3.bf16.msra.mxu0 %v1930_v23  ;;  %v1938_v23 = vld [vmem:[%s2406_s10 + $0x20] ss:$8 sps:$4 sm:$0xff]  }
 0x541   : > { %1877 = vmatprep.subr.bf16.mxu0 %v2025_v58 }
 0x544   : > { %1878 = vmatpush3.bf16.msra.mxu0 %v1931_v24 }
 0x5a0   : > { %v1015_v15 = vpop.f32.mrb[4].mxu0 }
 0x5a1   : > { %v1851_v16 = vpop.f32.mrb[5].mxu0 }
 0x5a2   : > { %v1018_v17 = vpop.f32.mrb[6].mxu0  ;;  %v1932_v16 = vld [vmem:[%s2406_s10] ss:$8 sps:$4 sm:$0xff]  }
 0x5a3   : > { %v1852_v18 = vpop.f32.mrb[7].mxu0 }
 0x5a4   : > { %v1935_v18 = vld [vmem:[%s2406_s10 + $0x10] ss:$8 sps:$4 sm:$0xff]  }
 0x605   : > { %v1059_v20 = vpop.f32.mrb[16].mxu1 }
 0x606   : > { %v1857_v21 = vpop.f32.mrb[17].mxu1 }
 0x607   : > { %v1062_v22 = vpop.f32.mrb[18].mxu1  ;;  %v1943_v21 = vld [vmem:[%s2406_s10 + $0x34] ss:$8 sps:$4 sm:$0xff]  }
 0x608   : > { %v1901_v25 = vpack.i.bf16 %v1062_v22, %v1059_v20  ;;  %v1858_v26 = vpop.f32.mrb[19].mxu1  ;;  %v1941_v20 = vld [vmem:[%s2406_s10 + $0x30] ss:$8 sps:$4 sm:$0xff]  }
 0x60a   : > { %1902 = vrot.lane.b32.xlu1 %v1901_v25, %s2031_s17  ;;  %v1103_v27 = vpop.f32.mrb[8].mxu0 }
 0x60b   : > { %v1863_v28 = vpop.f32.mrb[9].mxu0 }
 0x60c   : > { %v1106_v29 = vpop.f32.mrb[10].mxu0 }
 0x60d   : > { %v1906_v30 = vpack.i.bf16 %v1106_v29, %v1103_v27  ;;  %v1864_v32 = vpop.f32.mrb[11].mxu0  ;;  %v1273_v29 = vld [vmem:[%s2404_s8] sm:$0x1] }
 0x60e   : > { %v1147_v33 = vpop.f32.mrb[20].mxu1  ;;  %v1275_v32 = vld [vmem:[%s2405_s9] sm:$0x1] }
 0x60f   : > { %v1869_v35 = vpop.f32.mrb[21].mxu1  ;;  %1907 = vrot.lane.b32.xlu1 %v1906_v30, %s2032_s18  ;;  %v1274_v30 = vunpack.c.l.bf16 %v1273_v29 }
 0x610   : > { %v1150_v58 = vpop.f32.mrb[22].mxu1 }
 0x611   : > { %v1911_v36 = vpack.i.bf16 %v1150_v58, %v1147_v33  ;;  %v1870_v37 = vpop.f32.mrb[23].mxu1  ;;  %v1306_v35 = vrot.slane %v1274_v30, %v2168_v34 }
 0x613   : > { %1912 = vrot.lane.b32.xlu0 %v1911_v36, %s2033_s19  ;;  %v1276_v36 = vunpack.c.l.bf16 %v1275_v32 }
 0x67c   : > { %v1903_v38 = vpop.permute.xlu1 %1902 }
 0x67d   : > { %v1905_v39 = vunpack.i.h.bf16 %v1903_v38  ;;  %v1904_v40 = vunpack.i.l.bf16 %v1903_v38 }
 0x67f   : > { %v1179_v45 = vsel %vm668_vm2, %v1018_v17, %v1905_v39  ;;  %v1178_v46 = vsel %vm668_vm2, %v1015_v15, %v1904_v40  ;;  %v1934_v15 = vld [vmem:[%s2406_s10 + $0x4] ss:$8 sps:$4 sm:$0xff]   ;;  %v1937_v17 = vld [vmem:[%s2406_s10 + $0x14] ss:$8 sps:$4 sm:$0xff]   ;;  %v1312_v40 = vrot.slane %v1276_v36, %v2168_v34 }
 0x680   : > { %1388 = vmatprep.subr.bf16.mxu1 %v1934_v15 }
 0x681   : > { %v1908_v41 = vpop.permute.xlu1 %1907  ;;  %1389 = vmatpush1.bf16.msra.mxu1 %v1932_v16 }
 0x682   : > { %v1910_v42 = vunpack.i.h.bf16 %v1908_v41  ;;  %v1909_v43 = vunpack.i.l.bf16 %v1908_v41  ;;  %1390 = vmatprep.subr.bf16.mxu1 %v1937_v17 }
 0x684   : > { %v1182_v49 = vsel %vm1180_vm3, %v1179_v45, %v1910_v42  ;;  %v1181_v51 = vsel %vm1180_vm3, %v1178_v46, %v1909_v43  ;;  %v1944_v45 = vld [vmem:[%s2408_s12 + $0x40] sm:$0xff]  }
 0x685   : > { %v1913_v44 = vpop.permute.xlu0 %1912  ;;  %1391 = vmatpush1.bf16.msra.mxu1 %v1935_v18  ;;  %v1945_v46 = vld [vmem:[%s2408_s12] sm:$0xff]   ;;  %1801 = vmatprep.subr.bf16.mxu0 %v1944_v45 }
 0x686   : > { %v1915_v47 = vunpack.i.h.bf16 %v1913_v44  ;;  %v1914_v48 = vunpack.i.l.bf16 %v1913_v44  ;;  %1392 = vmatprep.subr.bf16.mxu1 %v1940_v19 }
 0x688   : > { %v1185_v52 = vsel %vm1183_vm4, %v1182_v49, %v1915_v47  ;;  %v1184_v53 = vsel %vm1183_vm4, %v1181_v51, %v1914_v48  ;;  %v1946_v47 = vld [vmem:[%s2408_s12 + $0x48] sm:$0xff]   ;;  %v1948_v49 = vld [vmem:[%s2408_s12 + $0x50] sm:$0xff]  }
 0x689   : > { %v1186_v54 = vpack.c.bf16 %v1185_v52, %v1184_v53  ;;  %1393 = vmatpush1.bf16.msra.mxu1 %v1938_v23  ;;  %v1947_v48 = vld [vmem:[%s2408_s12 + $0x8] sm:$0xff]   ;;  %v1949_v51 = vld [vmem:[%s2408_s12 + $0x10] sm:$0xff]   ;;  %v1950_v52 = vld [vmem:[%s2408_s12 + $0x58] sm:$0xff]  }
 0x68a   : > { %1394 = vmatprep.subr.bf16.mxu1 %v1943_v21  ;;  %v1951_v53 = vld [vmem:[%s2408_s12 + $0x18] sm:$0xff]  }
 0x68b   : > { %1880 = vmatmul.mubr.msk.bf16.vlgmr.msra.gmra.mrb[12].mxu0 %vm491_vm0, %v1186_v54  ;;  %v1952_v54 = vld [vmem:[%s2408_s12 + $0x60] sm:$0xff]  }
 0x68c   : > { %1802 = vmatpush3.bf16.msra.mxu0 %v1945_v46 }
 0x68d   : > { %1395 = vmatpush1.bf16.msra.mxu1 %v1941_v20  ;;  %1803 = vmatprep.subr.bf16.mxu0 %v1946_v47 }
 0x690   : > { %1804 = vmatpush3.bf16.msra.mxu0 %v1947_v48 }
 0x691   : > { %1805 = vmatprep.subr.bf16.mxu0 %v1948_v49 }
 0x694   : > { %1806 = vmatpush3.bf16.msra.mxu0 %v1949_v51 }
 0x695   : > { %1807 = vmatprep.subr.bf16.mxu0 %v1950_v52 }
 0x698   : > { %1808 = vmatpush3.bf16.msra.mxu0 %v1951_v53 }
 0x699   : > { %1809 = vmatprep.subr.bf16.mxu0 %v1952_v54 }
 0x69c   : > { %1810 = vmatpush3.bf16.msra.mxu0 %v1953_v3 }
 0x69d   : > { %1811 = vmatprep.subr.bf16.mxu0 %v1954_v55 }
 0x75e   : > { %v1256_v57 = vpop.f32.mrb[12].mxu0 }
 0x75f   : > { %v1263_v59 = vadd.f32 %v2125_v1, %v1256_v57  ;;  %v1881_v60 = vpop.f32.mrb[13].mxu0  ;;  %v1956_v57 = vld [vmem:[%s2408_s12 + $0x70] sm:$0xff]  }
 0x760   : > { %v1259_v61 = vpop.f32.mrb[14].mxu0  ;;  %v1958_v60 = vld [vmem:[%s2408_s12 + $0x78] sm:$0xff]  }
 0x761   : > { %v2280_v62 = vadd.f32 %v1270_v56, %v1263_v59  ;;  %v1264_v63 = vadd.f32 %v2127_v2, %v1259_v61  ;;  %v1882_v0 = vpop.f32.mrb[15].mxu0  ;;  %v1957_v59 = vld [vmem:[%s2408_s12 + $0x30] sm:$0xff]   ;;  %v1959_v61 = vld [vmem:[%s2408_s12 + $0x38] sm:$0xff]  }
 0x763   : > { %v2283_v4 = vadd.f32 %v1270_v56, %v1264_v63  ;;  %v1277_v5 = vsel %vm491_vm0, %v2280_v62, 0.0  ;;  %v1955_v56 = vld [vmem:[%s2408_s12 + $0x28] sm:$0xff]   ;;  %v1324_v63 = vld [vmem:[%s2407_s11] sm:$0x3] }
 0x764   : > { %1278 = vadd.xlane.f32.xlu1 %v1277_v5  ;;  %1812 = vmatpush3.bf16.msra.mxu0 %v1955_v56  ;;  %v1325_v0 = vunpack.c.l.bf16 %v1324_v63 }
 0x765   : > { %v1280_v6 = vsel %vm491_vm0, %v2283_v4, 0.0  ;;  %1813 = vmatprep.subr.bf16.mxu0 %v1956_v57 }
 0x766   : > { %1281 = vadd.xlane.f32.xlu0 %v1280_v6  ;;  %v1330_v5 = vrot.slane %v1325_v0, %v2168_v34  ;;  %v1334_v6 = vrot.slane %v1325_v0, %v549_v50 }
 0x768   : > { %1814 = vmatpush3.bf16.msra.mxu0 %v1957_v59 }
 0x769   : > { %1815 = vmatprep.subr.bf16.mxu0 %v1958_v60 }
 0x76c   : > { %1816 = vmatpush3.bf16.msra.mxu0 %v1959_v61 }
 0x7f1   : > { %v1279_v7 = vpop.xlane.xlu1 %1278 }
 0x7f2   : > { %v1283_v8 = vmul.f32 0.015625, %v1279_v7  ;;  %v1340_v7 = vrot.slane %v1330_v5, %v2168_v34 }
 0x7f3   : > { %v1282_v1 = vpop.xlane.xlu0 %1281 }
 0x7f4   : > { %v1285_v9 = vsub.f32 %v2280_v62, %v1283_v8  ;;  %v1284_v10 = vmul.f32 0.015625, %v1282_v1  ;;  %v1344_v8 = vrot.slane %v1334_v6, %v2168_v34 }
 0x7f6   : > { %v1286_v11 = vsub.f32 %v2283_v4, %v1284_v10  ;;  %v1287_v2 = vmul.f32 %v1285_v9, %v1285_v9 }
 0x7f8   : > { %v1289_v12 = vsel %vm491_vm0, %v1287_v2, 0.0  ;;  %v1288_v13 = vmul.f32 %v1286_v11, %v1286_v11 }
 0x7f9   : > { %1290 = vadd.xlane.f32.xlu0 %v1289_v12 }
 0x7fa   : > { %v1292_v14 = vsel %vm491_vm0, %v1288_v13, 0.0 }
 0x7fd   : > { %1293 = vadd.xlane.f32.xlu0 %v1292_v14 }
 0x886   : > { %v1291_v22 = vpop.xlane.xlu0 %1290 }
 0x887   : > { %v1295_v24 = vmul.f32 0.015625, %v1291_v22 }
 0x889   : > { %v1297_v25 = vadd.f32 1e-05, %v1295_v24 }
 0x88a   : > { %v1294_v26 = vpop.xlane.xlu0 %1293 }
 0x88b   : > { %1996 = vrsqrt.f32 %v1297_v25  ;;  %v1296_v27 = vmul.f32 0.015625, %v1294_v26 }
 0x88d   : > { %v1298_v28 = vadd.f32 1e-05, %v1296_v27 }
 0x88f   : > { %1998 = vrsqrt.f32 %v1298_v28 }
 0x895   : > { %v1997_v33 = vpop.eup %1996 }
 0x896   : > { %v1301_v58 = vmul.f32 %v1997_v33, %v1285_v9 }
 0x898   : > { %v1307_v38 = vmul.f32 %v1306_v35, %v1301_v58 }
 0x899   : > { %v1999_v37 = vpop.eup %1998 }
 0x89a   : > { %v1302_v39 = vmul.f32 %v1999_v37, %v1286_v11  ;;  %v1313_v42 = vadd.f32 %v1312_v40, %v1307_v38 }
 0x89c   : > { %v1308_v41 = vmul.f32 %v1306_v35, %v1302_v39 }
 0x89e   : > { %v1314_v43 = vadd.f32 %v1312_v40, %v1308_v41  ;;  %v1628_v40 = vld [vmem:[%s2409_s13] sm:$0x1] }
 0x89f   : > { %v1629_v41 = vunpack.c.l.bf16 %v1628_v40 }
 0x8a0   : > { %v1315_v44 = vpack.c.bf16 %v1314_v43, %v1313_v42 }
 0x8a1   : > { %v1633_v45 = vrot.slane %v1629_v41, %v2168_v34 }
 0x8a2   : > { %1751 = vmatmul.mubr.msk.bf16.vlgmr.msra.gmra.mrb[24].mxu1 %vm491_vm0, %v1315_v44 }
 0x975   : > { %v1422_v1 = vpop.f32.mrb[24].mxu1 }
 0x976   : > { %v1423_v9 = vadd.f32 %v1422_v1, %v1340_v7  ;;  %v1424_v10 = vpop.f32.mrb[25].mxu1 }
 0x977   : > { %v1425_v11 = vadd.f32 %v1424_v10, %v1344_v8  ;;  %v1426_v2 = vpop.f32.mrb[26].mxu1 }
 0x978   : > { %v1431_v12 = vsub.f32 0.0, %v1423_v9  ;;  %v1427_v13 = vadd.f32 %v1426_v2, %v1340_v7  ;;  %v1428_v14 = vpop.f32.mrb[27].mxu1 }
 0x979   : > { %v1432_v15 = vsub.f32 0.0, %v1425_v11  ;;  %v1429_v16 = vadd.f32 %v1428_v14, %v1344_v8 }
 0x97a   : > { %v1435_v17 = vmul.f32 1.442695, %v1431_v12  ;;  %v1433_v18 = vsub.f32 0.0, %v1427_v13 }
 0x97b   : > { %v1437_v19 = vmul.f32 1.442695, %v1432_v15  ;;  %v1434_v23 = vsub.f32 0.0, %v1429_v16 }
 0x97c   : > { %2000 = vpow2.f32 %v1435_v17  ;;  %v1439_v31 = vmul.f32 1.442695, %v1433_v18 }
 0x97d   : > { %2002 = vpow2.f32 %v1437_v19  ;;  %v1441_v50 = vmul.f32 1.442695, %v1434_v23 }
 0x97e   : > { %2004 = vpow2.f32 %v1439_v31 }
 0x97f   : > { %2006 = vpow2.f32 %v1441_v50 }
 0x986   : > { %v2001_v20 = vpop.eup %2000 }
 0x987   : > { %v2003_v21 = vpop.eup %2002  ;;  %v1443_v22 = vadd.f32 1.0, %v2001_v20 }
 0x988   : > { %v2005_v24 = vpop.eup %2004  ;;  %v1444_v25 = vadd.f32 1.0, %v2003_v21 }
 0x989   : > { %v2007_v26 = vpop.eup %2006  ;;  %2008 = vrcp.f32 %v1443_v22  ;;  %v1445_v27 = vadd.f32 1.0, %v2005_v24 }
 0x98a   : > { %2010 = vrcp.f32 %v1444_v25  ;;  %v1446_v28 = vadd.f32 1.0, %v2007_v26 }
 0x98b   : > { %2012 = vrcp.f32 %v1445_v27 }
 0x98c   : > { %2014 = vrcp.f32 %v1446_v28 }
 0x993   : > { %v2009_v29 = vpop.eup %2008 }
 0x994   : > { %v2011_v30 = vpop.eup %2010  ;;  %v1448_v35 = vmul.f32 %v2009_v29, %v1423_v9 }
 0x995   : > { %v2013_v32 = vpop.eup %2012  ;;  %v1450_v36 = vmul.f32 %v2011_v30, %v1425_v11 }
 0x996   : > { %v2015_v33 = vpop.eup %2014  ;;  %v1452_v58 = vmul.f32 %v2013_v32, %v1427_v13 }
 0x997   : > { %v1454_v37 = vmul.f32 %v2015_v33, %v1429_v16 }
 0x998   : > { %v1455_v38 = vpack.c.bf16 %v1452_v58, %v1448_v35 }
 0x999   : > { %v1456_v39 = vpack.c.bf16 %v1454_v37, %v1450_v36 }
 0x99b   : > { %1617 = vmatprep.mubr.bf16.mxu0 %v1456_v39 }
 0x99c   : > { %1618 = vmatmul.mubr.bf16.vlgmr.msra.gmra.mrb[16].mxu0 %v1455_v38 }
 0xa6f   : > { %v1817_v42 = vpop.f32.mrb[16].mxu0 }
 0xa70   : > { %v1818_v43 = vpop.f32.mrb[17].mxu0 }
 0xa71   : > { %v1819_v44 = vadd.f32 %v1818_v43, %v1817_v42  ;;  %v1820_v46 = vpop.f32.mrb[18].mxu0 }
 0xa72   : > { %v1821_v47 = vpop.f32.mrb[19].mxu0 }
 0xa73   : > { %v1626_v48 = vadd.f32 %v1819_v44, %v2280_v62  ;;  %v1822_v49 = vadd.f32 %v1821_v47, %v1820_v46 }
 0xa75   : > { %v1634_v51 = vadd.f32 %v1633_v45, %v1626_v48  ;;  %v1627_v52 = vadd.f32 %v1822_v49, %v2283_v4 }
 0xa77   : > { %v1774_v53 = vpack.c.bf16 %v1634_v51, %v1634_v51  ;;  %v1635_v54 = vadd.f32 %v1633_v45, %v1627_v52 }
 0xa79   : > { %1645 = vst.msk [vmem:[%s481_s28] sm:$0xf] %vm1644_vm5, %v1774_v53  ;;  %v1775_v3 = vpack.c.bf16 %v1635_v54, %v1635_v54 }
 0xa7b   : > { %1646 = vst.msk [vmem:[%s481_s28 + $0x4] sm:$0xf] %vm1644_vm5, %v1775_v3 }
 0xa7c PF: > { %s24_s29 = sadd.s32 1, %s2022_s29  }
 0xa7d   : > { %p21_p4 = scmp.ge.s32.totalorder %s24_s29, 4  }
 0xa7f   :  { %23 = sbr.rel (!%p21_p4) target bundleno = 1 (0x1), region = 109 }

// kernel: wav2vec_bert_encoder_forward.9
= control target key start
LH: loop header
LB: loop body
LE: loop exit
PB: predicated region body
PF: predicated region fallthrough
CT: control target
= control target key end

     0   :  { %vm23_vm0 = vcmask 523264   ;;  %v1069_v30 = vmov 0   ;;  %vm1893_vm1 = vcmask 261120   ;;  %s1889_s0 = inlined_call_operand.vmem [shape: bf16[32,64], index: 0, kind: input, shape index: {}]   ;;  %s1890_s2 = inlined_call_operand.vmem [shape: f32[256,1], index: 2, kind: input, shape index: {}]   ;;  %s1891_s1 = inlined_call_operand.vmem [shape: bf16[256,64], index: 1, kind: input, shape index: {}]   ;;  %s1892_s3 = inlined_call_operand.vmem [shape: s32[1,32], index: 3, kind: output, shape index: {}]  }
   0x1   :  { %v970_v0 = vld [vmem:[%s1889_s0] sm:$0xff]   ;;  %v977_v1 = vld [vmem:[%s1889_s0 + $0x8] sm:$0xff]   ;;  %1044 = vset.pattern.permute.xlu1 %v1069_v30  ;;  %1043 = vset.pattern.permute.xlu0 %v1069_v30  ;;  %v81_v32 = vld [vmem:[%s1890_s2 + $0x10] sm:$0xff] }
   0x2   :  { %v971_v2 = vunpack.c.l.bf16 %v970_v0  ;;  %v975_v3 = vunpack.c.l.bf16 %v977_v1  ;;  %v972_v4 = vunpack.c.h.bf16 %v970_v0  ;;  %v976_v5 = vunpack.c.h.bf16 %v977_v1  ;;  %v80_v31 = vld [vmem:[%s1890_s2 + $0x8] sm:$0xff]  ;;  %v82_v33 = vld [vmem:[%s1890_s2 + $0x18] sm:$0xff]  ;;  %v83_v34 = vld [vmem:[%s1890_s2 + $0x20] sm:$0xff] }
   0x3   :  { %v84_v35 = vld [vmem:[%s1890_s2 + $0x28] sm:$0xff]  ;;  %v85_v36 = vld [vmem:[%s1890_s2 + $0x30] sm:$0xff]  ;;  %v86_v37 = vld [vmem:[%s1890_s2 + $0x38] sm:$0xff] }
   0x4   :  { %v24_v6 = vsel %vm23_vm0, %v971_v2, 0.0  ;;  %v30_v7 = vsel %vm23_vm0, %v975_v3, 0.0  ;;  %v27_v8 = vsel %vm23_vm0, %v972_v4, 0.0  ;;  %v33_v9 = vsel %vm23_vm0, %v976_v5, 0.0  ;;  %v1045_v38 = vld [vmem:[%s1891_s1] sm:$0xff]   ;;  %v89_v41 = vld [vmem:[%s1890_s2 + $0x50] sm:$0xff] }
   0x5   :  { %25 = vadd.xlane.f32.xlu0 %v24_v6  ;;  %31 = vadd.xlane.f32.xlu1 %v30_v7  ;;  %v1046_v39 = vld [vmem:[%s1891_s1 + $0x40] sm:$0xff]   ;;  %v93_v43 = vld [vmem:[%s1890_s2 + $0x70] sm:$0xff]  ;;  %v88_v48 = vld [vmem:[%s1890_s2 + $0x48] sm:$0xff] }
   0x6   :  { %1000 = vmatprep.mubr.msk.bf16.mxu0 %vm23_vm0, %v1045_v38  ;;  %1016 = vmatprep.mubr.msk.bf16.mxu1 %vm23_vm0, %v1046_v39  ;;  %v87_v40 = vld [vmem:[%s1890_s2 + $0x40] sm:$0xff]  ;;  %v97_v45 = vld [vmem:[%s1890_s2 + $0x90] sm:$0xff]  ;;  %v90_v50 = vld [vmem:[%s1890_s2 + $0x58] sm:$0xff] }
   0x7   :  { %v91_v42 = vld [vmem:[%s1890_s2 + $0x60] sm:$0xff]  ;;  %v101_v49 = vld [vmem:[%s1890_s2 + $0xb0] sm:$0xff]  ;;  %v92_v52 = vld [vmem:[%s1890_s2 + $0x68] sm:$0xff] }
   0x8   :  { %v95_v44 = vld [vmem:[%s1890_s2 + $0x80] sm:$0xff]  ;;  %v105_v53 = vld [vmem:[%s1890_s2 + $0xd0] sm:$0xff]  ;;  %v94_v54 = vld [vmem:[%s1890_s2 + $0x78] sm:$0xff] }
   0x9   :  { %28 = vadd.xlane.f32.xlu0 %v27_v8  ;;  %34 = vadd.xlane.f32.xlu1 %v33_v9  ;;  %v79_v46 = vld [vmem:[%s1890_s2] sm:$0xff]  ;;  %v96_v56 = vld [vmem:[%s1890_s2 + $0x88] sm:$0xff]  ;;  %v109_v57 = vld [vmem:[%s1890_s2 + $0xf0] sm:$0xff] }
   0xa   :  { %v99_v47 = vld [vmem:[%s1890_s2 + $0xa0] sm:$0xff]  ;;  %v98_v58 = vld [vmem:[%s1890_s2 + $0x98] sm:$0xff]  ;;  %v100_v59 = vld [vmem:[%s1890_s2 + $0xa8] sm:$0xff] }
   0xb   :  { %v103_v51 = vld [vmem:[%s1890_s2 + $0xc0] sm:$0xff]  ;;  %v102_v60 = vld [vmem:[%s1890_s2 + $0xb8] sm:$0xff]  ;;  %v104_v61 = vld [vmem:[%s1890_s2 + $0xc8] sm:$0xff] }
   0xc   :  { %v107_v55 = vld [vmem:[%s1890_s2 + $0xe0] sm:$0xff]  ;;  %v106_v62 = vld [vmem:[%s1890_s2 + $0xd8] sm:$0xff]  ;;  %v108_v63 = vld [vmem:[%s1890_s2 + $0xe8] sm:$0xff] }
   0xd   :  { %v110_v0 = vld [vmem:[%s1890_s2 + $0xf8] sm:$0xff] }
   0xe   :  { %v1052_v30 = vld [vmem:[%s1891_s1 + $0x58] sm:$0xff]  }
   0xf   :  { %v1060_v38 = vld [vmem:[%s1891_s1 + $0x78] sm:$0xff]  }
  0x92   :  { %v26_v10 = vpop.xlane.xlu0 %25  ;;  %v32_v11 = vpop.xlane.xlu1 %31 }
  0x93   :  { %v37_v12 = vmul.f32 0.015625, %v26_v10  ;;  %v39_v13 = vmul.f32 0.015625, %v32_v11 }
  0x95   :  { %v1100_v14 = vsub.f32 %v971_v2, %v37_v12  ;;  %v1102_v15 = vsub.f32 %v975_v3, %v39_v13 }
  0x96   :  { %v29_v16 = vpop.xlane.xlu0 %28  ;;  %v35_v17 = vpop.xlane.xlu1 %34 }
  0x97   :  { %v38_v18 = vmul.f32 0.015625, %v29_v16  ;;  %v40_v19 = vmul.f32 0.015625, %v35_v17  ;;  %v45_v20 = vmul.f32 %v1100_v14, %v1100_v14  ;;  %v47_v21 = vmul.f32 %v1102_v15, %v1102_v15 }
  0x99   :  { %v1108_v22 = vsub.f32 %v972_v4, %v38_v18  ;;  %v1110_v23 = vsub.f32 %v976_v5, %v40_v19  ;;  %v49_v24 = vsel %vm23_vm0, %v45_v20, 0.0  ;;  %v55_v25 = vsel %vm23_vm0, %v47_v21, 0.0 }
  0x9a   :  { %50 = vadd.xlane.f32.xlu0 %v49_v24 }
  0x9b   :  { %v46_v26 = vmul.f32 %v1108_v22, %v1108_v22  ;;  %v48_v27 = vmul.f32 %v1110_v23, %v1110_v23 }
  0x9d   :  { %v52_v28 = vsel %vm23_vm0, %v46_v26, 0.0  ;;  %v58_v29 = vsel %vm23_vm0, %v48_v27, 0.0 }
  0x9e   :  { %56 = vadd.xlane.f32.xlu0 %v55_v25  ;;  %53 = vadd.xlane.f32.xlu1 %v52_v28  ;;  %v1050_v28 = vld [vmem:[%s1891_s1 + $0x50] sm:$0xff]  }
  0xa2   :  { %59 = vadd.xlane.f32.xlu1 %v58_v29  ;;  %v1051_v29 = vld [vmem:[%s1891_s1 + $0x18] sm:$0xff]  }
  0xb3   :  { %477 = vperm.xlu1 %1044, %v80_v31   ;;  %v1053_v31 = vld [vmem:[%s1891_s1 + $0x20] sm:$0xff]  }
  0xb4   :  { %472 = vperm.xlu0 %1043, %v79_v46  }
  0xb7   :  { %482 = vperm.xlu1 %1044, %v81_v32   ;;  %v1054_v32 = vld [vmem:[%s1891_s1 + $0x60] sm:$0xff]  }
  0xb8   :  { %517 = vperm.xlu0 %1043, %v88_v48  }
  0xbb   :  { %487 = vperm.xlu1 %1044, %v82_v33   ;;  %v1055_v33 = vld [vmem:[%s1891_s1 + $0x28] sm:$0xff]  }
  0xbc   :  { %527 = vperm.xlu0 %1043, %v90_v50  }
  0xbf   :  { %492 = vperm.xlu1 %1044, %v83_v34   ;;  %v1056_v34 = vld [vmem:[%s1891_s1 + $0x68] sm:$0xff]  }
  0xc0   :  { %537 = vperm.xlu0 %1043, %v92_v52  }
  0xc3   :  { %497 = vperm.xlu1 %1044, %v84_v35   ;;  %v1057_v35 = vld [vmem:[%s1891_s1 + $0x30] sm:$0xff]  }
  0xc4   :  { %547 = vperm.xlu0 %1043, %v94_v54  }
  0xc7   :  { %502 = vperm.xlu1 %1044, %v85_v36   ;;  %v1058_v36 = vld [vmem:[%s1891_s1 + $0x70] sm:$0xff]  }
  0xc8   :  { %557 = vperm.xlu0 %1043, %v96_v56  }
  0xcb   :  { %507 = vperm.xlu1 %1044, %v86_v37   ;;  %v1059_v37 = vld [vmem:[%s1891_s1 + $0x38] sm:$0xff]  }
  0xcc   :  { %567 = vperm.xlu0 %1043, %v98_v58  }
  0xcf   :  { %512 = vperm.xlu1 %1044, %v87_v40  }
  0xd0   :  { %577 = vperm.xlu0 %1043, %v100_v59  }
  0xd3   :  { %522 = vperm.xlu1 %1044, %v89_v41  }
  0xd4   :  { %587 = vperm.xlu0 %1043, %v102_v60  }
  0xd7   :  { %532 = vperm.xlu1 %1044, %v91_v42  }
  0xd8   :  { %597 = vperm.xlu0 %1043, %v104_v61  }
  0xdb   :  { %542 = vperm.xlu1 %1044, %v93_v43  }
  0xdc   :  { %607 = vperm.xlu0 %1043, %v106_v62  }
  0xdf   :  { %552 = vperm.xlu1 %1044, %v95_v44  }
  0xe0   :  { %617 = vperm.xlu0 %1043, %v108_v63  }
  0xe3   :  { %562 = vperm.xlu1 %1044, %v97_v45  }
  0xe4   :  { %627 = vperm.xlu0 %1043, %v110_v0  }
  0xe7   :  { %572 = vperm.xlu1 %1044, %v99_v47  }
  0xeb   :  { %582 = vperm.xlu1 %1044, %v101_v49  }
  0xef   :  { %592 = vperm.xlu1 %1044, %v103_v51  }
  0xf3   :  { %602 = vperm.xlu1 %1044, %v105_v53  }
  0xf7   :  { %612 = vperm.xlu1 %1044, %v107_v55  }
  0xfb   :  { %622 = vperm.xlu1 %1044, %v109_v57  }
 0x127   :  { %v51_v1 = vpop.xlane.xlu0 %50 }
 0x128   :  { %v61_v2 = vmul.f32 0.015625, %v51_v1 }
 0x12a   :  { %v65_v3 = vadd.f32 1e-05, %v61_v2 }
 0x12b   :  { %v54_v4 = vpop.xlane.xlu1 %53  ;;  %v57_v5 = vpop.xlane.xlu0 %56 }
 0x12c   :  { %v62_v6 = vmul.f32 0.015625, %v54_v4  ;;  %v63_v7 = vmul.f32 0.015625, %v57_v5  ;;  %1061 = vrsqrt.f32 %v65_v3 }
 0x12e   :  { %v66_v8 = vadd.f32 1e-05, %v62_v6  ;;  %v67_v9 = vadd.f32 1e-05, %v63_v7 }
 0x12f   :  { %v60_v10 = vpop.xlane.xlu1 %59 }
 0x130   :  { %1063 = vrsqrt.f32 %v66_v8  ;;  %v64_v11 = vmul.f32 0.015625, %v60_v10 }
 0x131   :  { %1065 = vrsqrt.f32 %v67_v9 }
 0x132   :  { %v68_v12 = vadd.f32 1e-05, %v64_v11 }
 0x133   :  { %v478_v39 = vpop.permute.xlu1 %477  ;;  %v473_v47 = vpop.permute.xlu0 %472 }
 0x134   :  { %1067 = vrsqrt.f32 %v68_v12 }
 0x136   :  { %v1062_v13 = vpop.eup %1061 }
 0x137   :  { %v73_v17 = vmul.f32 %v1062_v13, %v1100_v14  ;;  %v483_v40 = vpop.permute.xlu1 %482  ;;  %v1302_v49 = vpop.permute.xlu0 %517 }
 0x13a   :  { %v1064_v16 = vpop.eup %1063 }
 0x13b   :  { %v74_v18 = vmul.f32 %v1064_v16, %v1108_v22  ;;  %v1066_v19 = vpop.eup %1065  ;;  %v1047_v22 = vld [vmem:[%s1891_s1 + $0x8] sm:$0xff]   ;;  %v488_v41 = vpop.permute.xlu1 %487 }
 0x13c   :  { %v75_v25 = vmul.f32 %v1066_v19, %v1102_v15  ;;  %v1048_v15 = vld [vmem:[%s1891_s1 + $0x48] sm:$0xff]   ;;  %v1306_v51 = vpop.permute.xlu0 %527 }
 0x13d   :  { %v77_v20 = vpack.c.bf16 %v74_v18, %v73_v17 }
 0x13e   :  { %v1068_v21 = vpop.eup %1067 }
 0x13f   :  { %1036 = vmatprep.subr.msk.bf16.mxu0 %vm23_vm0, %v77_v20  ;;  %1037 = vmatprep.subr.msk.bf16.mxu1 %vm23_vm0, %v77_v20  ;;  %v272_v24 = vsel %vm23_vm0, %v77_v20, 0  ;;  %v76_v26 = vmul.f32 %v1068_v21, %v1110_v23  ;;  %v1049_v23 = vld [vmem:[%s1891_s1 + $0x10] sm:$0xff]   ;;  %v1290_v42 = vpop.permute.xlu1 %492 }
 0x140   :  { %997 = vmatpush3.bf16.xpose.msra.mxu0 %v272_v24  ;;  %1034 = vmatpush3.bf16.xpose.msra.mxu1 %v272_v24  ;;  %v1310_v53 = vpop.permute.xlu0 %537 }
 0x141   :  { %v78_v27 = vpack.c.bf16 %v76_v26, %v75_v25 }
 0x143   :  { %1038 = vmatprep.subr.msk.bf16.mxu0 %vm23_vm0, %v78_v27  ;;  %1039 = vmatprep.subr.msk.bf16.mxu1 %vm23_vm0, %v78_v27  ;;  %v275_v14 = vsel %vm23_vm0, %v78_v27, 0  ;;  %v1292_v43 = vpop.permute.xlu1 %497 }
 0x144   :  { %v1312_v55 = vpop.permute.xlu0 %547 }
 0x147   :  { %v1294_v44 = vpop.permute.xlu1 %502 }
 0x148   :  { %999 = vmatpush3.bf16.xpose.msra.mxu0 %v275_v14  ;;  %1035 = vmatpush3.bf16.xpose.msra.mxu1 %v275_v14  ;;  %v558_v57 = vpop.permute.xlu0 %557 }
 0x14b   :  { %v1296_v45 = vpop.permute.xlu1 %507 }
 0x14c   :  { %v568_v59 = vpop.permute.xlu0 %567 }
 0x14f   :  { %1001 = vmatmul.mubr.msk.bf16.vlgmr.msra.gmra.mrb[0].mxu0 %vm23_vm0, %v1047_v22  ;;  %1017 = vmatmul.mubr.msk.bf16.vlgmr.msra.gmra.mrb[0].mxu1 %vm23_vm0, %v1048_v15  ;;  %v1298_v46 = vpop.permute.xlu1 %512 }
 0x150   :  { %1004 = vmatprep.mubr.msk.bf16.mxu0 %vm23_vm0, %v1049_v23  ;;  %1020 = vmatprep.mubr.msk.bf16.mxu1 %vm23_vm0, %v1050_v28  ;;  %v1314_v61 = vpop.permute.xlu0 %577 }
 0x153   :  { %v1300_v48 = vpop.permute.xlu1 %522 }
 0x154   :  { %v588_v14 = vpop.permute.xlu0 %587 }
 0x157   :  { %1005 = vmatmul.mubr.msk.bf16.gmra.mrb[4].mxu0 %vm23_vm0, %v1051_v29  ;;  %1021 = vmatmul.mubr.msk.bf16.gmra.mrb[4].mxu1 %vm23_vm0, %v1052_v30  ;;  %v1304_v50 = vpop.permute.xlu1 %532 }
 0x158   :  { %1008 = vmatprep.mubr.msk.bf16.mxu0 %vm23_vm0, %v1053_v31  ;;  %1024 = vmatprep.mubr.msk.bf16.mxu1 %vm23_vm0, %v1054_v32 }
 0x15b   :  { %v1308_v52 = vpop.permute.xlu1 %542 }
 0x15f   :  { %1009 = vmatmul.mubr.msk.bf16.gmra.mrb[8].mxu0 %vm23_vm0, %v1055_v33  ;;  %1025 = vmatmul.mubr.msk.bf16.gmra.mrb[8].mxu1 %vm23_vm0, %v1056_v34  ;;  %v553_v54 = vpop.permute.xlu1 %552 }
 0x160   :  { %1012 = vmatprep.mubr.msk.bf16.mxu0 %vm23_vm0, %v1057_v35  ;;  %1028 = vmatprep.mubr.msk.bf16.mxu1 %vm23_vm0, %v1058_v36 }
 0x163   :  { %v563_v56 = vpop.permute.xlu1 %562 }
 0x167   :  { %1013 = vmatmul.mubr.msk.bf16.gmra.mrb[12].mxu0 %vm23_vm0, %v1059_v37  ;;  %1029 = vmatmul.mubr.msk.bf16.gmra.mrb[12].mxu1 %vm23_vm0, %v1060_v38  ;;  %v573_v58 = vpop.permute.xlu1 %572 }
 0x16b   :  { %v583_v60 = vpop.permute.xlu1 %582 }
 0x16f   :  { %v1334_v27 = vpop.permute.xlu1 %592 }
 0x222   :  { %v1002_v62 = vpop.f32.mrb[0].mxu0  ;;  %v1018_v63 = vpop.f32.mrb[0].mxu1 }
 0x223   :  { %v440_v0 = vmul.f32 2.0, %v1002_v62  ;;  %v456_v1 = vmul.f32 2.0, %v1018_v63  ;;  %v311_v2 = vpop.f32.mrb[1].mxu0  ;;  %v375_v3 = vpop.f32.mrb[1].mxu1 }
 0x224   :  { %v438_v4 = vmul.f32 2.0, %v311_v2  ;;  %v454_v5 = vmul.f32 2.0, %v375_v3  ;;  %v1003_v6 = vpop.f32.mrb[2].mxu0  ;;  %v1019_v7 = vpop.f32.mrb[2].mxu1 }
 0x225   :  { %v1316_v8 = vsub.f32 %v563_v56, %v456_v1  ;;  %v441_v9 = vmul.f32 2.0, %v1003_v6  ;;  %v457_v10 = vmul.f32 2.0, %v1019_v7  ;;  %v314_v11 = vpop.f32.mrb[3].mxu0  ;;  %v378_v12 = vpop.f32.mrb[3].mxu1  ;;  %v1318_v13 = vsub.f32 %v483_v40, %v440_v0 }
 0x226   :  { %v1320_v16 = vsub.f32 %v473_v47, %v438_v4  ;;  %v1322_v17 = vsub.f32 %v553_v54, %v454_v5  ;;  %v455_v18 = vmul.f32 2.0, %v378_v12  ;;  %v439_v24 = vmul.f32 2.0, %v314_v11 }
 0x227   :  { %v728_v19 = vsel %vm1893_vm1, %v1316_v8, inf  ;;  %v1326_v20 = vsub.f32 %v488_v41, %v441_v9  ;;  %v1328_v21 = vsub.f32 %v568_v59, %v457_v10  ;;  %v1340_v23 = vsel %vm1893_vm1, %v1318_v13, inf  ;;  %v603_v9 = vpop.permute.xlu1 %602  ;;  %v598_v10 = vpop.permute.xlu0 %597 }
 0x228   :  { %v724_v25 = vsel %vm1893_vm1, %v1322_v17, inf  ;;  %v1332_v26 = vsub.f32 %v558_v57, %v455_v18  ;;  %v1344_v28 = vsel %vm1893_vm1, %v1320_v16, inf  ;;  %v1346_v32 = vsub.f32 %v478_v39, %v439_v24 }
 0x229   :  { %v729_v22 = vmin.f32 %v724_v25, %v728_v19  ;;  %v730_v15 = vsel %vm1893_vm1, %v1328_v21, inf  ;;  %v1350_v37 = vsel %vm1893_vm1, %v1326_v20, inf }
 0x22a   :  { %v1006_v29 = vpop.f32.mrb[4].mxu0  ;;  %v1022_v30 = vpop.f32.mrb[4].mxu1  ;;  %v726_v38 = vsel %vm1893_vm1, %v1332_v26, inf  ;;  %v697_v19 = vsel %vm1893_vm1, %v1346_v32, inf }
 0x22b   :  { %v737_v31 = vmin.f32 %v729_v22, %v730_v15  ;;  %v444_v33 = vmul.f32 2.0, %v1006_v29  ;;  %v460_v34 = vmul.f32 2.0, %v1022_v30  ;;  %v327_v35 = vpop.f32.mrb[5].mxu0  ;;  %v391_v36 = vpop.f32.mrb[5].mxu1 }
 0x22c   :  { %v442_v40 = vmul.f32 2.0, %v327_v35  ;;  %v458_v41 = vmul.f32 2.0, %v391_v36  ;;  %v1007_v47 = vpop.f32.mrb[6].mxu0  ;;  %v1023_v54 = vpop.f32.mrb[6].mxu1 }
 0x22d   :  { %v745_v56 = vmin.f32 %v737_v31, %v726_v38  ;;  %v1355_v57 = vsub.f32 %v1294_v44, %v444_v33  ;;  %v1357_v39 = vsub.f32 %v583_v60, %v460_v34  ;;  %v445_v59 = vmul.f32 2.0, %v1007_v47  ;;  %v330_v62 = vpop.f32.mrb[7].mxu0  ;;  %v394_v63 = vpop.f32.mrb[7].mxu1 }
 0x22e   :  { %v1360_v0 = vsub.f32 %v1290_v42, %v442_v40  ;;  %v1362_v1 = vsub.f32 %v573_v58, %v458_v41  ;;  %v461_v2 = vmul.f32 2.0, %v1023_v54  ;;  %v443_v3 = vmul.f32 2.0, %v330_v62 }
 0x22f   :  { %v704_v4 = vsel %vm1893_vm1, %v1355_v57, inf  ;;  %v736_v5 = vsel %vm1893_vm1, %v1357_v39, inf  ;;  %v1369_v44 = vsub.f32 %v1296_v45, %v445_v59  ;;  %v459_v60 = vmul.f32 2.0, %v394_v63 }
 0x230   :  { %v705_v6 = vmin.f32 %v1340_v23, %v704_v4  ;;  %v753_v7 = vmin.f32 %v745_v56, %v736_v5  ;;  %v700_v42 = vsel %vm1893_vm1, %v1360_v0, inf  ;;  %v732_v58 = vsel %vm1893_vm1, %v1362_v1, inf }
 0x231   :  { %v701_v11 = vmin.f32 %v1344_v28, %v700_v42  ;;  %v706_v12 = vsel %vm1893_vm1, %v1369_v44, inf  ;;  %v1379_v18 = vsub.f32 %v588_v14, %v461_v2  ;;  %v1382_v45 = vsub.f32 %v1292_v43, %v443_v3  ;;  %v608_v3 = vpop.permute.xlu0 %607 }
 0x232   :  { %v725_v24 = vmin.f32 %v732_v58, %v753_v7  ;;  %v707_v25 = vmin.f32 %v1350_v37, %v706_v12  ;;  %v1388_v22 = vsub.f32 %v1314_v61, %v459_v60  ;;  %v1010_v15 = vpop.f32.mrb[8].mxu0  ;;  %v1026_v23 = vpop.f32.mrb[8].mxu1 }
 0x233   :  { %v738_v28 = vsel %vm1893_vm1, %v1379_v18, inf  ;;  %v702_v14 = vsel %vm1893_vm1, %v1382_v45, inf  ;;  %v448_v29 = vmul.f32 2.0, %v1010_v15  ;;  %v464_v43 = vmul.f32 2.0, %v1026_v23  ;;  %v343_v30 = vpop.f32.mrb[9].mxu0  ;;  %v407_v31 = vpop.f32.mrb[9].mxu1 }
 0x234   :  { %v733_v33 = vmin.f32 %v725_v24, %v738_v28  ;;  %v703_v34 = vmin.f32 %v697_v19, %v702_v14  ;;  %v734_v35 = vsel %vm1893_vm1, %v1388_v22, inf  ;;  %v446_v36 = vmul.f32 2.0, %v343_v30  ;;  %v1011_v61 = vpop.f32.mrb[10].mxu0  ;;  %v1027_v37 = vpop.f32.mrb[10].mxu1 }
 0x235   :  { %v1397_v38 = vsub.f32 %v1300_v48, %v448_v29  ;;  %v1399_v40 = vsub.f32 %v603_v9, %v464_v43  ;;  %v462_v41 = vmul.f32 2.0, %v407_v31  ;;  %v449_v47 = vmul.f32 2.0, %v1011_v61  ;;  %v346_v54 = vpop.f32.mrb[11].mxu0  ;;  %v410_v56 = vpop.f32.mrb[11].mxu1 }
 0x236   :  { %v741_v59 = vmin.f32 %v733_v33, %v734_v35  ;;  %v1402_v62 = vsub.f32 %v1298_v46, %v446_v36  ;;  %v465_v63 = vmul.f32 2.0, %v1027_v37  ;;  %v447_v2 = vmul.f32 2.0, %v346_v54  ;;  %v613_v7 = vpop.permute.xlu1 %612 }
 0x237   :  { %v712_v4 = vsel %vm1893_vm1, %v1397_v38, inf  ;;  %v744_v48 = vsel %vm1893_vm1, %v1399_v40, inf  ;;  %v1409_v5 = vsub.f32 %v1334_v27, %v462_v41  ;;  %v1412_v60 = vsub.f32 %v1306_v51, %v449_v47 }
 0x238   :  { %v713_v42 = vmin.f32 %v705_v6, %v712_v4  ;;  %v749_v58 = vmin.f32 %v741_v59, %v744_v48  ;;  %v708_v46 = vsel %vm1893_vm1, %v1402_v62, inf  ;;  %v1416_v9 = vsub.f32 %v608_v3, %v465_v63 }
 0x239   :  { %v709_v12 = vmin.f32 %v701_v11, %v708_v46  ;;  %v740_v19 = vsel %vm1893_vm1, %v1409_v5, inf  ;;  %v714_v24 = vsel %vm1893_vm1, %v1412_v60, inf  ;;  %v1423_v27 = vsub.f32 %v1302_v49, %v447_v2 }
 0x23a   :  { %v731_v51 = vmin.f32 %v740_v19, %v749_v58  ;;  %v715_v15 = vmin.f32 %v707_v25, %v714_v24  ;;  %v463_v23 = vmul.f32 2.0, %v410_v56  ;;  %v1014_v6 = vpop.f32.mrb[12].mxu0  ;;  %v1030_v28 = vpop.f32.mrb[12].mxu1  ;;  %v746_v14 = vsel %vm1893_vm1, %v1416_v9, inf }
 0x23b   :  { %v710_v11 = vsel %vm1893_vm1, %v1423_v27, inf  ;;  %v452_v29 = vmul.f32 2.0, %v1014_v6  ;;  %v468_v43 = vmul.f32 2.0, %v1030_v28  ;;  %v359_v30 = vpop.f32.mrb[13].mxu0  ;;  %v423_v31 = vpop.f32.mrb[13].mxu1 }
 0x23c   :  { %v739_v33 = vmin.f32 %v731_v51, %v746_v14  ;;  %v711_v35 = vmin.f32 %v703_v34, %v710_v11  ;;  %v1429_v36 = vsub.f32 %v598_v10, %v463_v23  ;;  %v450_v49 = vmul.f32 2.0, %v359_v30  ;;  %v1015_v61 = vpop.f32.mrb[14].mxu0  ;;  %v1031_v25 = vpop.f32.mrb[14].mxu1 }
 0x23d   :  { %v1432_v37 = vsub.f32 %v1308_v52, %v452_v29  ;;  %v453_v41 = vmul.f32 2.0, %v1015_v61  ;;  %v362_v47 = vpop.f32.mrb[15].mxu0  ;;  %v426_v54 = vpop.f32.mrb[15].mxu1  ;;  %v466_v4 = vmul.f32 2.0, %v423_v31  ;;  %v469_v23 = vmul.f32 2.0, %v1031_v25 }
 0x23e   :  { %v623_v56 = vpop.permute.xlu1 %622  ;;  %v742_v59 = vsel %vm1893_vm1, %v1429_v36, inf  ;;  %v1437_v63 = vsub.f32 %v1304_v50, %v450_v49  ;;  %v451_v2 = vmul.f32 2.0, %v362_v47  ;;  %v618_v52 = vpop.permute.xlu0 %617  ;;  %v467_v30 = vmul.f32 2.0, %v426_v54 }
 0x23f   :  { %v747_v34 = vmin.f32 %v739_v33, %v742_v59  ;;  %v720_v10 = vsel %vm1893_vm1, %v1432_v37, inf  ;;  %v1441_v3 = vsub.f32 %v623_v56, %v468_v43  ;;  %v1446_v46 = vsub.f32 %v1312_v55, %v453_v41 }
 0x240   :  { %v721_v48 = vmin.f32 %v713_v42, %v720_v10  ;;  %v716_v58 = vsel %vm1893_vm1, %v1437_v63, inf  ;;  %v1449_v50 = vsub.f32 %v1310_v53, %v451_v2  ;;  %v1455_v28 = vsub.f32 %v613_v7, %v466_v4 }
 0x241   :  { %v717_v19 = vmin.f32 %v709_v12, %v716_v58  ;;  %v722_v51 = vsel %vm1893_vm1, %v1446_v46, inf  ;;  %v752_v6 = vsel %vm1893_vm1, %v1441_v3, inf  ;;  %v1465_v49 = vsub.f32 %v618_v52, %v467_v30 }
 0x242   :  { %v755_v24 = vmin.f32 %v747_v34, %v721_v48  ;;  %v723_v42 = vmin.f32 %v715_v15, %v722_v51  ;;  %v718_v14 = vsel %vm1893_vm1, %v1449_v50, inf  ;;  %v628_v12 = vpop.permute.xlu0 %627  ;;  %v748_v53 = vsel %vm1893_vm1, %v1455_v28, inf }
 0x243   :  { %v719_v11 = vmin.f32 %v711_v35, %v718_v14  ;;  %v1461_v43 = vsub.f32 %v628_v12, %v469_v23  ;;  %v662_v61 = vlaneseq  ;;  %v750_v35 = vsel %vm1893_vm1, %v1465_v49, inf }
 0x244   :  { %v757_v55 = vmin.f32 %v752_v6, %v755_v24 }
 0x245   :  { %1895 = vst [vmem:[#allocation2_spill] sm:$0xff] %v1461_v43  ;;  %v754_v7 = vsel %vm1893_vm1, %v1461_v43, inf  ;;  %v1469_v47 = vshrl.u32 %v662_v61, 7 }
 0x246   :  { %v727_v29 = vmin.f32 %v717_v19, %v757_v55 }
 0x247   :  { %v1472_v54 = vadd.s32 8, %v1469_v47  ;;  %v1475_v2 = vadd.s32 16, %v1469_v47  ;;  %v1478_v34 = vadd.s32 24, %v1469_v47  ;;  %v1481_v10 = vadd.s32 32, %v1469_v47 }
 0x248   :  { %v735_v31 = vmin.f32 %v727_v29, %v748_v53  ;;  %v1484_v4 = vadd.s32 40, %v1469_v47  ;;  %v1487_v52 = vadd.s32 48, %v1469_v47  ;;  %v1490_v58 = vadd.s32 56, %v1469_v47 }
 0x249   :  { %v1493_v19 = vadd.s32 64, %v1469_v47  ;;  %v1496_v24 = vadd.s32 72, %v1469_v47  ;;  %v1499_v51 = vadd.s32 80, %v1469_v47  ;;  %v1502_v23 = vadd.s32 88, %v1469_v47 }
 0x24a   :  { %v743_v33 = vmin.f32 %v735_v31, %v723_v42  ;;  %v1505_v6 = vadd.s32 96, %v1469_v47  ;;  %v1508_v42 = vadd.s32 104, %v1469_v47  ;;  %v1511_v55 = vadd.s32 112, %v1469_v47 }
 0x24b   :  { %v1517_v12 = vadd.s32 128, %v1469_v47  ;;  %v1520_v29 = vadd.s32 136, %v1469_v47  ;;  %v1523_v53 = vadd.s32 144, %v1469_v47  ;;  %v1526_v30 = vadd.s32 152, %v1469_v47 }
 0x24c   :  { %v751_v15 = vmin.f32 %v743_v33, %v754_v7  ;;  %v1529_v31 = vadd.s32 160, %v1469_v47  ;;  %v1532_v7 = vadd.s32 168, %v1469_v47  ;;  %v1538_v61 = vadd.s32 184, %v1469_v47 }
 0x24e   :  { %v756_v25 = vmin.f32 %v719_v11, %v751_v15  ;;  %v1514_v11 = vadd.s32 120, %v1469_v47  ;;  %v1535_v15 = vadd.s32 176, %v1469_v47  ;;  %1897 = vst [vmem:[#allocation4_spill] sm:$0xff] %v1538_v61  ;;  %v1561_v61 = vadd.s32 240, %v1469_v47 }
 0x250   :  { %v758_v41 = vmin.f32 %v756_v25, %v750_v35  ;;  %1896 = vst [vmem:[#allocation3_spill] sm:$0xff] %v1535_v15  ;;  %v1541_v25 = vadd.s32 192, %v1469_v47  ;;  %v1544_v35 = vadd.s32 200, %v1469_v47  ;;  %v1558_v15 = vadd.s32 232, %v1469_v47 }
 0x252   :  { %v759_v56 = vrot.slane %v758_v41, 4  ;;  %1898 = vst [vmem:[#allocation5_spill] sm:$0xff] %v1541_v25  ;;  %v1564_v25 = vadd.s32 248, %v1469_v47 }
 0x254   :  { %v760_v59 = vmin.f32 %v758_v41, %v759_v56  ;;  %v1547_v41 = vadd.s32 208, %v1469_v47  ;;  %v1550_v56 = vadd.s32 216, %v1469_v47  ;;  %1899 = vst [vmem:[#allocation6_spill] sm:$0xff] %v1564_v25 }
 0x256   :  { %v761_v48 = vrot.slane %v760_v59, 2 }
 0x258   :  { %v762_v14 = vmin.f32 %v760_v59, %v761_v48  ;;  %v1555_v48 = vadd.s32 224, %v1469_v47 }
 0x25a   :  { %v763_v33 = vrot.slane %v762_v14, 1 }
 0x25c   :  { %v1552_v59 = vmin.f32 %v762_v14, %v763_v33 }
 0x25e   :  { %vm765_vm2 = vcmp.eq.f32.partialorder %v1320_v16, %v1552_v59  ;;  %vm766_vm3 = vcmp.eq.f32.partialorder %v1346_v32, %v1552_v59  ;;  %vm767_vm4 = vcmp.eq.f32.partialorder %v1318_v13, %v1552_v59  ;;  %vm768_vm5 = vcmp.eq.f32.partialorder %v1326_v20, %v1552_v59 }
 0x25f   :  { %vm769_vm6 = vcmp.eq.f32.partialorder %v1360_v0, %v1552_v59  ;;  %vm770_vm7 = vcmp.eq.f32.partialorder %v1382_v45, %v1552_v59  ;;  %vm771_vm8 = vcmp.eq.f32.partialorder %v1355_v57, %v1552_v59  ;;  %vm772_vm9 = vcmp.eq.f32.partialorder %v1369_v44, %v1552_v59 }
 0x260   :  { %vm773_vm10 = vcmp.eq.f32.partialorder %v1402_v62, %v1552_v59  ;;  %vm790_vm13 = vcmp.eq.f32.partialorder %v1429_v36, %v1552_v59  ;;  %vm791_vm14 = vcmp.eq.f32.partialorder %v1399_v40, %v1552_v59  ;;  %vm792_vm15 = vcmp.eq.f32.partialorder %v1416_v9, %v1552_v59  ;;  %v1919_v9 = vld [vmem:[#allocation6_spill] sm:$0xff] }
 0x261   :  { %vm793_vm0 = vcmp.eq.f32.partialorder %v1455_v28, %v1552_v59  ;;  %vm794_vm1 = vcmp.eq.f32.partialorder %v1465_v49, %v1552_v59  ;;  %vm795_vm11 = vcmp.eq.f32.partialorder %v1441_v3, %v1552_v59  ;;  %vm796_vm12 = vcmp.eq.f32.partialorder %v1461_v43, %v1552_v59 }
 0x262   :  { %v1634_v14 = vsel %vm765_vm2, %v1469_v47, 256  ;;  %v1640_v33 = vsel %vm766_vm3, %v1472_v54, 256  ;;  %v1646_v25 = vsel %vm767_vm4, %v1475_v2, 256  ;;  %v1652_v43 = vsel %vm768_vm5, %v1478_v34, 256 }
 0x263   :  { %v1658_v16 = vsel %vm769_vm6, %v1481_v10, 256  ;;  %v1664_v32 = vsel %vm770_vm7, %v1484_v4, 256  ;;  %v1670_v13 = vsel %vm771_vm8, %v1487_v52, 256  ;;  %v1676_v20 = vsel %vm772_vm9, %v1490_v58, 256 }
 0x264   :  { %v1682_v0 = vsel %vm773_vm10, %v1493_v19, 256  ;;  %vm1900_vm2 = vcmp.eq.f32.partialorder %v1423_v27, %v1552_v59  ;;  %vm1901_vm3 = vcmp.eq.f32.partialorder %v1397_v38, %v1552_v59  ;;  %vm1902_vm4 = vcmp.eq.f32.partialorder %v1412_v60, %v1552_v59 }
 0x265   :  { %v1688_v45 = vsel %vm1900_vm2, %v1496_v24, 256  ;;  %v1694_v57 = vsel %vm1901_vm3, %v1499_v51, 256  ;;  %v1700_v44 = vsel %vm1902_vm4, %v1502_v23, 256  ;;  %vm1903_vm5 = vcmp.eq.f32.partialorder %v1437_v63, %v1552_v59 }
 0x266   :  { %v1706_v62 = vsel %vm1903_vm5, %v1505_v6, 256  ;;  %vm1904_vm6 = vcmp.eq.f32.partialorder %v1449_v50, %v1552_v59  ;;  %vm1905_vm7 = vcmp.eq.f32.partialorder %v1432_v37, %v1552_v59  ;;  %vm1906_vm8 = vcmp.eq.f32.partialorder %v1446_v46, %v1552_v59 }
 0x267   :  { %v1712_v27 = vsel %vm1904_vm6, %v1508_v42, 256  ;;  %v1718_v38 = vsel %vm1905_vm7, %v1511_v55, 256  ;;  %v1724_v60 = vsel %vm1906_vm8, %v1514_v11, 256  ;;  %vm1907_vm9 = vcmp.eq.f32.partialorder %v1322_v17, %v1552_v59 }
 0x268   :  { %v1730_v63 = vsel %vm1907_vm9, %v1517_v12, 256  ;;  %vm1908_vm10 = vcmp.eq.f32.partialorder %v1332_v26, %v1552_v59  ;;  %vm1909_vm2 = vcmp.eq.f32.partialorder %v1316_v8, %v1552_v59  ;;  %vm1910_vm3 = vcmp.eq.f32.partialorder %v1328_v21, %v1552_v59  ;;  %v1913_v8 = vld [vmem:[#allocation3_spill] sm:$0xff]  ;;  %v1915_v21 = vld [vmem:[#allocation4_spill] sm:$0xff] }
 0x269   :  { %v1736_v50 = vsel %vm1908_vm10, %v1520_v29, 256  ;;  %v1742_v37 = vsel %vm1909_vm2, %v1523_v53, 256  ;;  %v1748_v46 = vsel %vm1910_vm3, %v1526_v30, 256  ;;  %vm1911_vm4 = vcmp.eq.f32.partialorder %v1362_v1, %v1552_v59  ;;  %v1917_v1 = vld [vmem:[#allocation5_spill] sm:$0xff] }
 0x26a   :  { %v1754_v17 = vsel %vm1911_vm4, %v1529_v31, 256  ;;  %vm1912_vm5 = vcmp.eq.f32.partialorder %v1388_v22, %v1552_v59  ;;  %vm1914_vm6 = vcmp.eq.f32.partialorder %v1357_v39, %v1552_v59  ;;  %vm1916_vm7 = vcmp.eq.f32.partialorder %v1379_v18, %v1552_v59 }
 0x26b   :  { %v1760_v26 = vsel %vm1912_vm5, %v1532_v7, 256  ;;  %v1766_v47 = vsel %vm1914_vm6, %v1913_v8, 256  ;;  %v1772_v54 = vsel %vm1916_vm7, %v1915_v21, 256  ;;  %vm1918_vm8 = vcmp.eq.f32.partialorder %v1409_v5, %v1552_v59 }
 0x26c   :  { %v1778_v2 = vsel %vm1918_vm8, %v1917_v1, 256  ;;  %v1784_v22 = vsel %vm790_vm13, %v1544_v35, 256  ;;  %v1790_v39 = vsel %vm791_vm14, %v1547_v41, 256  ;;  %v1796_v18 = vsel %vm792_vm15, %v1550_v56, 256 }
 0x26d   :  { %v1802_v5 = vsel %vm793_vm0, %v1555_v48, 256  ;;  %v1808_v36 = vsel %vm794_vm1, %v1558_v15, 256  ;;  %v1814_v40 = vsel %vm795_vm11, %v1561_v61, 256  ;;  %v1820_v10 = vsel %vm796_vm12, %v1919_v9, 256 }
 0x26e   :  { %v829_v28 = vcvt.s32.f32 %v1634_v14  ;;  %v830_v4 = vcvt.s32.f32 %v1640_v33  ;;  %v831_v49 = vcvt.s32.f32 %v1646_v25  ;;  %v832_v52 = vcvt.s32.f32 %v1652_v43 }
 0x26f   :  { %v833_v58 = vcvt.s32.f32 %v1658_v16  ;;  %v834_v3 = vcvt.s32.f32 %v1664_v32  ;;  %v835_v19 = vcvt.s32.f32 %v1670_v13  ;;  %v836_v24 = vcvt.s32.f32 %v1676_v20 }
 0x270   :  { %v837_v51 = vcvt.s32.f32 %v1682_v0  ;;  %v838_v23 = vcvt.s32.f32 %v1688_v45  ;;  %v839_v6 = vcvt.s32.f32 %v1694_v57  ;;  %v840_v42 = vcvt.s32.f32 %v1700_v44 }
 0x271   :  { %v841_v55 = vcvt.s32.f32 %v1706_v62  ;;  %v842_v43 = vcvt.s32.f32 %v1712_v27  ;;  %v843_v11 = vcvt.s32.f32 %v1718_v38  ;;  %v844_v12 = vcvt.s32.f32 %v1724_v60 }
 0x272   :  { %v845_v29 = vcvt.s32.f32 %v1730_v63  ;;  %v846_v53 = vcvt.s32.f32 %v1736_v50  ;;  %v847_v30 = vcvt.s32.f32 %v1742_v37  ;;  %v848_v31 = vcvt.s32.f32 %v1748_v46 }
 0x273   :  { %v849_v7 = vcvt.s32.f32 %v1754_v17  ;;  %v850_v15 = vcvt.s32.f32 %v1760_v26  ;;  %v851_v61 = vcvt.s32.f32 %v1766_v47  ;;  %v852_v25 = vcvt.s32.f32 %v1772_v54 }
 0x274   :  { %v853_v35 = vcvt.s32.f32 %v1778_v2  ;;  %v854_v41 = vcvt.s32.f32 %v1784_v22  ;;  %v855_v56 = vcvt.s32.f32 %v1790_v39  ;;  %v856_v59 = vcvt.s32.f32 %v1796_v18 }
 0x275   :  { %v857_v48 = vcvt.s32.f32 %v1802_v5  ;;  %v858_v14 = vcvt.s32.f32 %v1808_v36  ;;  %v859_v33 = vcvt.s32.f32 %v1814_v40  ;;  %v860_v16 = vcvt.s32.f32 %v1820_v10 }
 0x276   :  { %vm1921_vm1 = vcmask 261120  }
 0x277   :  { %v861_v32 = vsel %vm1921_vm1, %v829_v28, inf  ;;  %vm1922_vm11 = vmmov %vm1921_vm1 }
 0x278   :  { %v862_v13 = vsel %vm1922_vm11, %v830_v4, inf  ;;  %vm1923_vm12 = vmmov %vm1921_vm1 }
 0x279   :  { %v863_v20 = vsel %vm1923_vm12, %v831_v49, inf  ;;  %vm1924_vm13 = vmmov %vm1921_vm1 }
 0x27a   :  { %v864_v0 = vsel %vm1924_vm13, %v832_v52, inf  ;;  %vm1925_vm14 = vmmov %vm1921_vm1 }
 0x27b   :  { %v865_v45 = vsel %vm1925_vm14, %v833_v58, inf  ;;  %vm1926_vm15 = vmmov %vm1921_vm1 }
 0x27c   :  { %v867_v57 = vsel %vm1926_vm15, %v834_v3, inf  ;;  %vm1927_vm0 = vmmov %vm1921_vm1  ;;  %v866_v27 = vmin.f32 %v861_v32, %v865_v45 }
 0x27d   :  { %v869_v44 = vsel %vm1927_vm0, %v835_v19, inf  ;;  %vm1928_vm9 = vmmov %vm1927_vm0  ;;  %v868_v38 = vmin.f32 %v862_v13, %v867_v57  ;;  %v901_v19 = vsel %vm1927_vm0, %v851_v61, inf }
 0x27e   :  { %v871_v62 = vsel %vm1928_vm9, %v836_v24, inf  ;;  %v870_v60 = vmin.f32 %v863_v20, %v869_v44  ;;  %vm1929_vm10 = vmmov %vm1927_vm0 }
 0x27f   :  { %v872_v63 = vmin.f32 %v864_v0, %v871_v62  ;;  %v873_v50 = vsel %vm1929_vm10, %v837_v51, inf  ;;  %vm1930_vm2 = vmmov %vm1927_vm0 }
 0x280   :  { %v875_v37 = vsel %vm1930_vm2, %v838_v23, inf  ;;  %vm1931_vm3 = vmmov %vm1927_vm0  ;;  %v874_v26 = vmin.f32 %v866_v27, %v873_v50 }
 0x281   :  { %v877_v46 = vsel %vm1931_vm3, %v839_v6, inf  ;;  %vm1932_vm4 = vmmov %vm1927_vm0  ;;  %v876_v8 = vmin.f32 %v868_v38, %v875_v37 }
 0x282   :  { %v879_v17 = vsel %vm1932_vm4, %v840_v42, inf  ;;  %v878_v47 = vmin.f32 %v870_v60, %v877_v46  ;;  %vm1933_vm5 = vmmov %vm1927_vm0 }
 0x283   :  { %v880_v21 = vmin.f32 %v872_v63, %v879_v17  ;;  %v881_v54 = vsel %vm1933_vm5, %v841_v55, inf  ;;  %vm1934_vm6 = vmmov %vm1927_vm0 }
 0x284   :  { %v883_v1 = vsel %vm1934_vm6, %v842_v43, inf  ;;  %vm1935_vm7 = vmmov %vm1927_vm0  ;;  %v882_v39 = vmin.f32 %v874_v26, %v881_v54 }
 0x285   :  { %v885_v2 = vsel %vm1935_vm7, %v843_v11, inf  ;;  %vm1936_vm8 = vmmov %vm1927_vm0  ;;  %v884_v18 = vmin.f32 %v876_v8, %v883_v1 }
 0x286   :  { %v887_v22 = vsel %vm1936_vm8, %v844_v12, inf  ;;  %v886_v5 = vmin.f32 %v878_v47, %v885_v2  ;;  %vm1937_vm1 = vmmov %vm1927_vm0 }
 0x287   :  { %v888_v36 = vmin.f32 %v880_v21, %v887_v22  ;;  %v889_v40 = vsel %vm1937_vm1, %v845_v29, inf  ;;  %vm1938_vm11 = vmmov %vm1927_vm0  ;;  %vm931_vm1 = vcmask 253952  }
 0x288   :  { %v891_v9 = vsel %vm1938_vm11, %v846_v53, inf  ;;  %vm1939_vm12 = vmmov %vm1927_vm0  ;;  %v890_v28 = vmin.f32 %v882_v39, %v889_v40 }
 0x289   :  { %v893_v34 = vsel %vm1939_vm12, %v847_v30, inf  ;;  %vm1940_vm13 = vmmov %vm1927_vm0  ;;  %v892_v4 = vmin.f32 %v884_v18, %v891_v9 }
 0x28a   :  { %v895_v10 = vsel %vm1940_vm13, %v848_v31, inf  ;;  %v894_v49 = vmin.f32 %v886_v5, %v893_v34  ;;  %vm1941_vm14 = vmmov %vm1927_vm0 }
 0x28b   :  { %v896_v52 = vmin.f32 %v888_v36, %v895_v10  ;;  %v897_v58 = vsel %vm1941_vm14, %v849_v7, inf  ;;  %vm1942_vm15 = vmmov %vm1927_vm0 }
 0x28c   :  { %v899_v3 = vsel %vm1942_vm15, %v850_v15, inf  ;;  %vm1943_vm9 = vmmov %vm1927_vm0  ;;  %v898_v51 = vmin.f32 %v890_v28, %v897_v58  ;;  %v902_v6 = vmin.f32 %v894_v49, %v901_v19 }
 0x28d   :  { %v903_v24 = vsel %vm1943_vm9, %v852_v25, inf  ;;  %v900_v23 = vmin.f32 %v892_v4, %v899_v3  ;;  %vm1944_vm10 = vmmov %vm1927_vm0 }
 0x28e   :  { %v904_v42 = vmin.f32 %v896_v52, %v903_v24  ;;  %v905_v55 = vsel %vm1944_vm10, %v853_v35, inf  ;;  %vm1945_vm2 = vmmov %vm1927_vm0 }
 0x28f   :  { %v907_v43 = vsel %vm1945_vm2, %v854_v41, inf  ;;  %vm1946_vm3 = vmmov %vm1927_vm0  ;;  %v906_v29 = vmin.f32 %v898_v51, %v905_v55 }
 0x290   :  { %v909_v11 = vsel %vm1946_vm3, %v855_v56, inf  ;;  %vm1947_vm4 = vmmov %vm1927_vm0  ;;  %v908_v53 = vmin.f32 %v900_v23, %v907_v43 }
 0x291   :  { %v911_v12 = vsel %vm1947_vm4, %v856_v59, inf  ;;  %v910_v30 = vmin.f32 %v902_v6, %v909_v11  ;;  %vm1948_vm5 = vmmov %vm1927_vm0 }
 0x292   :  { %v912_v31 = vmin.f32 %v904_v42, %v911_v12  ;;  %v913_v7 = vsel %vm1948_vm5, %v857_v48, inf  ;;  %vm1949_vm6 = vmmov %vm1927_vm0 }
 0x293   :  { %v915_v15 = vsel %vm1949_vm6, %v858_v14, inf  ;;  %vm1950_vm7 = vmmov %vm1927_vm0  ;;  %v914_v32 = vmin.f32 %v906_v29, %v913_v7 }
 0x294   :  { %v917_v61 = vsel %vm1950_vm7, %v859_v33, inf  ;;  %vm1951_vm8 = vmmov %vm1927_vm0  ;;  %v916_v35 = vmin.f32 %v908_v53, %v915_v15 }
 0x295   :  { %v919_v25 = vsel %vm1951_vm8, %v860_v16, inf  ;;  %v918_v13 = vmin.f32 %v910_v30, %v917_v61 }
 0x296   :  { %v920_v41 = vmin.f32 %v912_v31, %v919_v25  ;;  %v921_v20 = vmin.f32 %v914_v32, %v916_v35 }
 0x298   :  { %v922_v56 = vmin.f32 %v918_v13, %v920_v41 }
 0x29a   :  { %v923_v0 = vmin.f32 %v921_v20, %v922_v56 }
 0x29c   :  { %v924_v59 = vrot.slane %v923_v0, 4 }
 0x29e   :  { %v925_v45 = vmin.f32 %v923_v0, %v924_v59 }
 0x2a0   :  { %v926_v57 = vrot.slane %v925_v45, 2 }
 0x2a2   :  { %v927_v44 = vmin.f32 %v925_v45, %v926_v57 }
 0x2a4   :  { %v928_v62 = vrot.slane %v927_v44, 1 }
 0x2a6   :  { %v929_v27 = vmin.f32 %v927_v44, %v928_v62 }
 0x2a8   :  { %v1040_v48 = vtrunc.f32 %v929_v27 }
 0x2aa   :  { %v1041_v14 = vcvt.f32.s32 %v1040_v48 }
 0x2ac   :  { %932 = vst.msk [vmem:[%s1892_s3] sm:$0x1] %vm931_vm1, %v1041_v14 }

</bundles_post_ra>
